<compile_context>
chip_gen: v6e
topology: v6e:2x2x1
jax: 0.10.0
libtpu: 0.0.40
codegen_flags: <defaults>
</compile_context>

<pallas_src>
import functools

import jax
import jax.numpy as jnp
from jax.experimental import pallas as pl
from jax.experimental.pallas import tpu as pltpu

BN_EPS = 1e-5

# Static network geometry (BOARD_DQN, input_size=(10, 21), kernel 5, stride 1).
H0, W0 = 10, 21
K = 5
H1, W1 = H0 - K + 1, W0 - K + 1           # 6, 17
H2, W2 = H1 - K + 1, W1 - K + 1           # 2, 13
C1, C2 = 8, 16
HW2 = H2 * W2                             # 26
FLAT = C2 * HW2                           # 416
HID = 64
MAX_SHIFT = (K - 1) * W0 + (K - 1)        # 88: largest tap offset in flat cols
TAPS = [(ki, kj) for ki in range(K) for kj in range(K)]


# ------------------------------ fused kernel ------------------------------- #

def _dqn_fused_kernel(B, NCOL, PADCOL,
                      x_ref, m1_ref, w1_ref, g1_ref, be1_ref,
                      w2_ref, g2_ref, be2_ref,
                      w3_ref, b3_ref, w4_ref, b4_ref, w5_ref, b5_ref,
                      o_ref, y1p_ref, z2e_ref):
    f32 = jnp.float32
    n1 = B * H1 * W1                       # valid conv1 positions (BN pop.)
    n2 = B * H2 * W2                       # valid conv2 positions (BN pop.)

    # ---- conv1 (single input channel) as shift-and-accumulate over 25 taps.
    # Flat column index: col = b*H0*W0 + i*W0 + j; tap (ki,kj) reads col+shift.
    # Conv bias omitted: exactly cancelled by train-mode BatchNorm mean.
    z1 = jnp.zeros((C1, NCOL), f32)
    for r, (ki, kj) in enumerate(TAPS):
        s = ki * W0 + kj
        z1 = z1 + w1_ref[:, r:r + 1] * x_ref[0:1, s:s + NCOL]   # (C1, NCOL)

    # ---- BatchNorm2d(8) with train-mode batch stats over the n1 valid
    # positions (mask m1 selects i<H1, j<W1 inside each board) + ReLU.
    m1 = m1_ref[...]                                         # (1, NCOL)
    s1 = jnp.sum(z1 * m1, axis=1, keepdims=True)
    q1 = jnp.sum(z1 * z1 * m1, axis=1, keepdims=True)
    mu1 = s1 * (1.0 / n1)
    var1 = jnp.maximum(q1 * (1.0 / n1) - mu1 * mu1, 0.0)     # biased batch var
    sc1 = g1_ref[...] * jax.lax.rsqrt(var1 + BN_EPS)
    sh1 = be1_ref[...] - mu1 * sc1
    y1 = jnp.maximum(z1 * sc1 + sh1, 0.0)                    # (C1, NCOL)

    # ---- Stage y1 in a lane-padded VMEM scratch so every conv2 tap is a
    # single shifted (C1, NCOL) block load.  Zero the pad tail so stale VMEM
    # can never leak into the arithmetic (it only feeds invalid columns).
    y1p_ref[:, NCOL:PADCOL] = jnp.zeros((C1, PADCOL - NCOL), f32)
    y1p_ref[:, 0:NCOL] = y1

    # ---- conv2 as 25 accumulated (C2,C1)@(C1,NCOL) MXU matmuls over shifted
    # views of y1.  Valid outputs (i2<H2, j2<W2) only read valid conv1 cols.
    z2 = jnp.zeros((C2, NCOL), f32)
    for r, (ki, kj) in enumerate(TAPS):
        s = ki * W0 + kj
        z2 = z2 + jnp.dot(w2_ref[:, r * C1:(r + 1) * C1],
                          y1p_ref[:, s:s + NCOL],
                          preferred_element_type=f32)

    # ---- Extract the valid (H2, W2) window into compact (C2, B, H2*W2):
    # only 2*B small block copies (replaces the old 16*B-copy NCHW flatten).
    for b in range(B):
        base = b * (H0 * W0)
        for i2 in range(H2):
            z2e_ref[:, b, i2 * W2:(i2 + 1) * W2] = (
                z2[:, base + i2 * W0: base + i2 * W0 + W2])

    # ---- BatchNorm2d(16) on the all-valid compact tensor + ReLU.
    z2e = z2e_ref[...]                                       # (C2, B, HW2)
    s2 = jnp.sum(jnp.sum(z2e, axis=2, keepdims=True), axis=1, keepdims=True)
    q2 = jnp.sum(jnp.sum(z2e * z2e, axis=2, keepdims=True), axis=1,
                 keepdims=True)
    mu2 = s2 * (1.0 / n2)
    var2 = jnp.maximum(q2 * (1.0 / n2) - mu2 * mu2, 0.0)
    sc2 = g2_ref[...] * jax.lax.rsqrt(var2 + BN_EPS)         # (C2, 1, 1)
    sh2 = be2_ref[...] - mu2 * sc2
    y2 = jnp.maximum(z2e * sc2 + sh2, 0.0)                   # (C2, B, HW2)

    # ---- MLP head.  The PyTorch x.view(B,-1) NCHW flatten (f = c*HW2 + q)
    # is folded into w3's (C2, HW2, HID) layout: a channel-batched matmul plus
    # a channel sum replaces the flatten scratch entirely.
    t = jnp.einsum("cbq,cqk->cbk", y2, w3_ref[...],
                   preferred_element_type=f32)               # (C2, B, HID)
    h = jnp.sum(t, axis=0) + b3_ref[...]                     # (B, HID)
    h = jnp.maximum(h, 0.0)
    h = jnp.dot(h, w4_ref[...], preferred_element_type=f32) + b4_ref[...]
    h = jnp.maximum(h, 0.0)
    # TODO(synk): cast matmul operands to bf16 on v6e/v7x once the batched
    # grid variant lands (negligible at B=2).
    o_ref[...] = jnp.dot(h, w5_ref[...], preferred_element_type=f32) + b5_ref[...]


# --------------------------------- wrapper ---------------------------------- #

def dqn_forward(params, x_nchw):
    """x_nchw: (B, 1, 10, 21) float32 board input, like the PyTorch module."""
    B = x_nchw.shape[0]
    NCOL = B * H0 * W0
    PADCOL = pl.cdiv(NCOL + MAX_SHIFT, 128) * 128

    # Layout plumbing only (no arithmetic): flatten to one lane-dense row and
    # zero-pad so in-kernel shifted tap reads never run out of bounds.
    x_pad = jnp.pad(x_nchw.reshape(1, NCOL), ((0, 0), (0, PADCOL - NCOL)))

    # Validity mask of conv1 output positions in the full-grid column layout.
    pos = jnp.arange(H0 * W0, dtype=jnp.int32)
    valid1 = ((pos // W0 < H1) & (pos % W0 < W1)).astype(jnp.float32)
    m1 = jnp.tile(valid1, B).reshape(1, NCOL)

    vmem = pl.BlockSpec(memory_space=pltpu.MemorySpace.VMEM)
    return pl.pallas_call(
        functools.partial(_dqn_fused_kernel, B, NCOL, PADCOL),
        out_shape=jax.ShapeDtypeStruct((B, 1), jnp.float32),
        in_specs=[vmem] * 14,
        out_specs=vmem,
        scratch_shapes=[
            pltpu.VMEM((C1, PADCOL), jnp.float32),   # lane-padded y1
            pltpu.VMEM((C2, B, HW2), jnp.float32),   # valid conv2 window
        ],
    )(x_pad, m1,
      params["w1"], params["g1"], params["be1"],
      params["w2"], params["g2"], params["be2"],
      params["w3r"], params["b3"], params["w4"], params["b4"],
      params["w5"], params["b5"])


# ------------------------------- parameters --------------------------------- #

def init_params(key):
    def conv_uniform(k_, shape, fan_in):          # PyTorch default conv init
        bound = 1.0 / (fan_in ** 0.5)
        return jax.random.uniform(k_, shape, jnp.float32, -bound, bound)

    def xavier_uniform(k_, fan_in, fan_out):      # nn.init.xavier_uniform_
        bound = (6.0 / (fan_in + fan_out)) ** 0.5
        return jax.random.uniform(k_, (fan_in, fan_out), jnp.float32,
                                  -bound, bound)

    ks = jax.random.split(key, 5)
    # Conv weights drawn in PyTorch layout (OC, IC, KH, KW), rearranged once at
    # init time into the matmul layouts the kernel uses.  Conv biases are not
    # created: with train-mode BatchNorm right after each conv they are
    # mathematically cancelled by the mean subtraction.
    w1_pt = conv_uniform(ks[0], (C1, 1, K, K), 1 * K * K)
    w2_pt = conv_uniform(ks[1], (C2, C1, K, K), C1 * K * K)
    w1 = w1_pt.reshape(C1, K * K)                                    # [c, tap]
    w2 = jnp.transpose(w2_pt, (0, 2, 3, 1)).reshape(C2, K * K * C1)  # [co, tap*C1+c]
    # Linear layers: xavier_uniform weights, zero bias (_create_weights).
    # w3 reshaped to (C2, H2*W2, HID) so the kernel's channel-batched
    # contraction reproduces PyTorch's NCHW x.view(B,-1) flatten order exactly.
    w3 = xavier_uniform(ks[2], FLAT, HID)
    return dict(
        w1=w1,
        g1=jnp.ones((C1, 1), jnp.float32),            # BatchNorm2d gamma
        be1=jnp.zeros((C1, 1), jnp.float32),          # BatchNorm2d beta
        w2=w2,
        g2=jnp.ones((C2, 1, 1), jnp.float32),
        be2=jnp.zeros((C2, 1, 1), jnp.float32),
        w3r=w3.reshape(C2, HW2, HID),
        b3=jnp.zeros((1, HID), jnp.float32),
        w4=xavier_uniform(ks[3], HID, HID),
        b4=jnp.zeros((1, HID), jnp.float32),
        w5=xavier_uniform(ks[4], HID, 1),
        b5=jnp.zeros((1, 1), jnp.float32),
    )


# -------------------------- pure-JAX reference check ------------------------ #

def dqn_reference(params, x_nchw):
    """Plain XLA reference of the PyTorch forward (train-mode BatchNorm)."""
    def bn_relu(z, g, be):
        mu = jnp.mean(z, axis=(0, 2, 3), keepdims=True)
        var = jnp.mean((z - mu) ** 2, axis=(0, 2, 3), keepdims=True)
        zn = (z - mu) * jax.lax.rsqrt(var + BN_EPS)
        return jnp.maximum(zn * g.reshape(1, -1, 1, 1) + be.reshape(1, -1, 1, 1),
                           0.0)

    dn = ("NCHW", "OIHW", "NCHW")
    w1 = params["w1"].reshape(C1, 1, K, K)
    w2 = params["w2"].reshape(C2, K, K, C1).transpose(0, 3, 1, 2)
    y1 = bn_relu(jax.lax.conv_general_dilated(x_nchw, w1, (1, 1), "VALID",
                                              dimension_numbers=dn),
                 params["g1"], params["be1"])
    y2 = bn_relu(jax.lax.conv_general_dilated(y1, w2, (1, 1), "VALID",
                                              dimension_numbers=dn),
                 params["g2"], params["be2"])
    flat = y2.reshape(y2.shape[0], -1)                       # NCHW flatten
    h = jnp.maximum(flat @ params["w3r"].reshape(FLAT, HID) + params["b3"], 0.0)
    h = jnp.maximum(h @ params["w4"] + params["b4"], 0.0)
    return h @ params["w5"] + params["b5"]


if __name__ == "__main__":
    key = jax.random.PRNGKey(0)
    pkey, xkey = jax.random.split(key)
    params = init_params(pkey)
    # NCHW board input, like the PyTorch module: (batch=2, C=1, H=10, W=21)
    x = jax.random.normal(xkey, (2, 1, H0, W0), jnp.float32)

    out = jax.jit(dqn_forward)(params, x)
    out = jax.block_until_ready(out)
    assert out.shape == (2, 1) and out.dtype == jnp.float32
    assert bool(jnp.all(jnp.isfinite(out)))

    ref = dqn_reference(params, x)
    assert bool(jnp.allclose(out, ref, rtol=2e-2, atol=2e-2)), (out, ref)
    print("KERNEL_OK")
</pallas_src>

<mosaic_0001>
module attributes {stable_mosaic.version = 11 : i64} {
  func.func @_dqn_fused_kernel(%arg0: memref<1x512xf32, #tpu.memory_space<vmem>>, %arg1: memref<1x420xf32, #tpu.memory_space<vmem>>, %arg2: memref<8x25xf32, #tpu.memory_space<vmem>>, %arg3: memref<8x1xf32, #tpu.memory_space<vmem>>, %arg4: memref<8x1xf32, #tpu.memory_space<vmem>>, %arg5: memref<16x200xf32, #tpu.memory_space<vmem>>, %arg6: memref<16x1x1xf32, #tpu.memory_space<vmem>>, %arg7: memref<16x1x1xf32, #tpu.memory_space<vmem>>, %arg8: memref<16x26x64xf32, #tpu.memory_space<vmem>>, %arg9: memref<1x64xf32, #tpu.memory_space<vmem>>, %arg10: memref<64x64xf32, #tpu.memory_space<vmem>>, %arg11: memref<1x64xf32, #tpu.memory_space<vmem>>, %arg12: memref<64x1xf32, #tpu.memory_space<vmem>>, %arg13: memref<1x1xf32, #tpu.memory_space<vmem>>, %arg14: memref<2x1xf32, #tpu.memory_space<vmem>>, %arg15: memref<8x512xf32, #tpu.memory_space<vmem>>, %arg16: memref<16x2x26xf32, #tpu.memory_space<vmem>>) attributes {dimension_semantics = [], scalar_prefetch = 0 : i64, scratch_operands = 2 : i64, tpu.core_type = #tpu.core_type<tc>} {
    %cst = arith.constant 0.000000e+00 : f32
    %0 = vector.broadcast %cst : f32 to vector<8x420xf32>
    %c0 = arith.constant 0 : index
    %c0_0 = arith.constant 0 : index
    %1 = vector.load %arg2[%c0, %c0_0] : memref<8x25xf32, #tpu.memory_space<vmem>>, vector<8x1xf32>
    %c0_1 = arith.constant 0 : index
    %c0_2 = arith.constant 0 : index
    %2 = vector.load %arg0[%c0_1, %c0_2] : memref<1x512xf32, #tpu.memory_space<vmem>>, vector<1x420xf32>
    %3 = vector.broadcast %1 : vector<8x1xf32> to vector<8x420xf32>
    %4 = vector.broadcast %2 : vector<1x420xf32> to vector<8x420xf32>
    %5 = arith.mulf %3, %4 : vector<8x420xf32>
    %6 = arith.addf %0, %5 : vector<8x420xf32>
    %c0_3 = arith.constant 0 : index
    %c1 = arith.constant 1 : index
    %7 = vector.load %arg2[%c0_3, %c1] : memref<8x25xf32, #tpu.memory_space<vmem>>, vector<8x1xf32>
    %c0_4 = arith.constant 0 : index
    %c1_5 = arith.constant 1 : index
    %8 = vector.load %arg0[%c0_4, %c1_5] : memref<1x512xf32, #tpu.memory_space<vmem>>, vector<1x420xf32>
    %9 = vector.broadcast %7 : vector<8x1xf32> to vector<8x420xf32>
    %10 = vector.broadcast %8 : vector<1x420xf32> to vector<8x420xf32>
    %11 = arith.mulf %9, %10 : vector<8x420xf32>
    %12 = arith.addf %6, %11 : vector<8x420xf32>
    %c0_6 = arith.constant 0 : index
    %c2 = arith.constant 2 : index
    %13 = vector.load %arg2[%c0_6, %c2] : memref<8x25xf32, #tpu.memory_space<vmem>>, vector<8x1xf32>
    %c0_7 = arith.constant 0 : index
    %c2_8 = arith.constant 2 : index
    %14 = vector.load %arg0[%c0_7, %c2_8] : memref<1x512xf32, #tpu.memory_space<vmem>>, vector<1x420xf32>
    %15 = vector.broadcast %13 : vector<8x1xf32> to vector<8x420xf32>
    %16 = vector.broadcast %14 : vector<1x420xf32> to vector<8x420xf32>
    %17 = arith.mulf %15, %16 : vector<8x420xf32>
    %18 = arith.addf %12, %17 : vector<8x420xf32>
    %c0_9 = arith.constant 0 : index
    %c3 = arith.constant 3 : index
    %19 = vector.load %arg2[%c0_9, %c3] : memref<8x25xf32, #tpu.memory_space<vmem>>, vector<8x1xf32>
    %c0_10 = arith.constant 0 : index
    %c3_11 = arith.constant 3 : index
    %20 = vector.load %arg0[%c0_10, %c3_11] : memref<1x512xf32, #tpu.memory_space<vmem>>, vector<1x420xf32>
    %21 = vector.broadcast %19 : vector<8x1xf32> to vector<8x420xf32>
    %22 = vector.broadcast %20 : vector<1x420xf32> to vector<8x420xf32>
    %23 = arith.mulf %21, %22 : vector<8x420xf32>
    %24 = arith.addf %18, %23 : vector<8x420xf32>
    %c0_12 = arith.constant 0 : index
    %c4 = arith.constant 4 : index
    %25 = vector.load %arg2[%c0_12, %c4] : memref<8x25xf32, #tpu.memory_space<vmem>>, vector<8x1xf32>
    %c0_13 = arith.constant 0 : index
    %c4_14 = arith.constant 4 : index
    %26 = vector.load %arg0[%c0_13, %c4_14] : memref<1x512xf32, #tpu.memory_space<vmem>>, vector<1x420xf32>
    %27 = vector.broadcast %25 : vector<8x1xf32> to vector<8x420xf32>
    %28 = vector.broadcast %26 : vector<1x420xf32> to vector<8x420xf32>
    %29 = arith.mulf %27, %28 : vector<8x420xf32>
    %30 = arith.addf %24, %29 : vector<8x420xf32>
    %c0_15 = arith.constant 0 : index
    %c5 = arith.constant 5 : index
    %31 = vector.load %arg2[%c0_15, %c5] : memref<8x25xf32, #tpu.memory_space<vmem>>, vector<8x1xf32>
    %c0_16 = arith.constant 0 : index
    %c21 = arith.constant 21 : index
    %32 = vector.load %arg0[%c0_16, %c21] : memref<1x512xf32, #tpu.memory_space<vmem>>, vector<1x420xf32>
    %33 = vector.broadcast %31 : vector<8x1xf32> to vector<8x420xf32>
    %34 = vector.broadcast %32 : vector<1x420xf32> to vector<8x420xf32>
    %35 = arith.mulf %33, %34 : vector<8x420xf32>
    %36 = arith.addf %30, %35 : vector<8x420xf32>
    %c0_17 = arith.constant 0 : index
    %c6 = arith.constant 6 : index
    %37 = vector.load %arg2[%c0_17, %c6] : memref<8x25xf32, #tpu.memory_space<vmem>>, vector<8x1xf32>
    %c0_18 = arith.constant 0 : index
    %c22 = arith.constant 22 : index
    %38 = vector.load %arg0[%c0_18, %c22] : memref<1x512xf32, #tpu.memory_space<vmem>>, vector<1x420xf32>
    %39 = vector.broadcast %37 : vector<8x1xf32> to vector<8x420xf32>
    %40 = vector.broadcast %38 : vector<1x420xf32> to vector<8x420xf32>
    %41 = arith.mulf %39, %40 : vector<8x420xf32>
    %42 = arith.addf %36, %41 : vector<8x420xf32>
    %c0_19 = arith.constant 0 : index
    %c7 = arith.constant 7 : index
    %43 = vector.load %arg2[%c0_19, %c7] : memref<8x25xf32, #tpu.memory_space<vmem>>, vector<8x1xf32>
    %c0_20 = arith.constant 0 : index
    %c23 = arith.constant 23 : index
    %44 = vector.load %arg0[%c0_20, %c23] : memref<1x512xf32, #tpu.memory_space<vmem>>, vector<1x420xf32>
    %45 = vector.broadcast %43 : vector<8x1xf32> to vector<8x420xf32>
    %46 = vector.broadcast %44 : vector<1x420xf32> to vector<8x420xf32>
    %47 = arith.mulf %45, %46 : vector<8x420xf32>
    %48 = arith.addf %42, %47 : vector<8x420xf32>
    %c0_21 = arith.constant 0 : index
    %c8 = arith.constant 8 : index
    %49 = vector.load %arg2[%c0_21, %c8] : memref<8x25xf32, #tpu.memory_space<vmem>>, vector<8x1xf32>
    %c0_22 = arith.constant 0 : index
    %c24 = arith.constant 24 : index
    %50 = vector.load %arg0[%c0_22, %c24] : memref<1x512xf32, #tpu.memory_space<vmem>>, vector<1x420xf32>
    %51 = vector.broadcast %49 : vector<8x1xf32> to vector<8x420xf32>
    %52 = vector.broadcast %50 : vector<1x420xf32> to vector<8x420xf32>
    %53 = arith.mulf %51, %52 : vector<8x420xf32>
    %54 = arith.addf %48, %53 : vector<8x420xf32>
    %c0_23 = arith.constant 0 : index
    %c9 = arith.constant 9 : index
    %55 = vector.load %arg2[%c0_23, %c9] : memref<8x25xf32, #tpu.memory_space<vmem>>, vector<8x1xf32>
    %c0_24 = arith.constant 0 : index
    %c25 = arith.constant 25 : index
    %56 = vector.load %arg0[%c0_24, %c25] : memref<1x512xf32, #tpu.memory_space<vmem>>, vector<1x420xf32>
    %57 = vector.broadcast %55 : vector<8x1xf32> to vector<8x420xf32>
    %58 = vector.broadcast %56 : vector<1x420xf32> to vector<8x420xf32>
    %59 = arith.mulf %57, %58 : vector<8x420xf32>
    %60 = arith.addf %54, %59 : vector<8x420xf32>
    %c0_25 = arith.constant 0 : index
    %c10 = arith.constant 10 : index
    %61 = vector.load %arg2[%c0_25, %c10] : memref<8x25xf32, #tpu.memory_space<vmem>>, vector<8x1xf32>
    %c0_26 = arith.constant 0 : index
    %c42 = arith.constant 42 : index
    %62 = vector.load %arg0[%c0_26, %c42] : memref<1x512xf32, #tpu.memory_space<vmem>>, vector<1x420xf32>
    %63 = vector.broadcast %61 : vector<8x1xf32> to vector<8x420xf32>
    %64 = vector.broadcast %62 : vector<1x420xf32> to vector<8x420xf32>
    %65 = arith.mulf %63, %64 : vector<8x420xf32>
    %66 = arith.addf %60, %65 : vector<8x420xf32>
    %c0_27 = arith.constant 0 : index
    %c11 = arith.constant 11 : index
    %67 = vector.load %arg2[%c0_27, %c11] : memref<8x25xf32, #tpu.memory_space<vmem>>, vector<8x1xf32>
    %c0_28 = arith.constant 0 : index
    %c43 = arith.constant 43 : index
    %68 = vector.load %arg0[%c0_28, %c43] : memref<1x512xf32, #tpu.memory_space<vmem>>, vector<1x420xf32>
    %69 = vector.broadcast %67 : vector<8x1xf32> to vector<8x420xf32>
    %70 = vector.broadcast %68 : vector<1x420xf32> to vector<8x420xf32>
    %71 = arith.mulf %69, %70 : vector<8x420xf32>
    %72 = arith.addf %66, %71 : vector<8x420xf32>
    %c0_29 = arith.constant 0 : index
    %c12 = arith.constant 12 : index
    %73 = vector.load %arg2[%c0_29, %c12] : memref<8x25xf32, #tpu.memory_space<vmem>>, vector<8x1xf32>
    %c0_30 = arith.constant 0 : index
    %c44 = arith.constant 44 : index
    %74 = vector.load %arg0[%c0_30, %c44] : memref<1x512xf32, #tpu.memory_space<vmem>>, vector<1x420xf32>
    %75 = vector.broadcast %73 : vector<8x1xf32> to vector<8x420xf32>
    %76 = vector.broadcast %74 : vector<1x420xf32> to vector<8x420xf32>
    %77 = arith.mulf %75, %76 : vector<8x420xf32>
    %78 = arith.addf %72, %77 : vector<8x420xf32>
    %c0_31 = arith.constant 0 : index
    %c13 = arith.constant 13 : index
    %79 = vector.load %arg2[%c0_31, %c13] : memref<8x25xf32, #tpu.memory_space<vmem>>, vector<8x1xf32>
    %c0_32 = arith.constant 0 : index
    %c45 = arith.constant 45 : index
    %80 = vector.load %arg0[%c0_32, %c45] : memref<1x512xf32, #tpu.memory_space<vmem>>, vector<1x420xf32>
    %81 = vector.broadcast %79 : vector<8x1xf32> to vector<8x420xf32>
    %82 = vector.broadcast %80 : vector<1x420xf32> to vector<8x420xf32>
    %83 = arith.mulf %81, %82 : vector<8x420xf32>
    %84 = arith.addf %78, %83 : vector<8x420xf32>
    %c0_33 = arith.constant 0 : index
    %c14 = arith.constant 14 : index
    %85 = vector.load %arg2[%c0_33, %c14] : memref<8x25xf32, #tpu.memory_space<vmem>>, vector<8x1xf32>
    %c0_34 = arith.constant 0 : index
    %c46 = arith.constant 46 : index
    %86 = vector.load %arg0[%c0_34, %c46] : memref<1x512xf32, #tpu.memory_space<vmem>>, vector<1x420xf32>
    %87 = vector.broadcast %85 : vector<8x1xf32> to vector<8x420xf32>
    %88 = vector.broadcast %86 : vector<1x420xf32> to vector<8x420xf32>
    %89 = arith.mulf %87, %88 : vector<8x420xf32>
    %90 = arith.addf %84, %89 : vector<8x420xf32>
    %c0_35 = arith.constant 0 : index
    %c15 = arith.constant 15 : index
    %91 = vector.load %arg2[%c0_35, %c15] : memref<8x25xf32, #tpu.memory_space<vmem>>, vector<8x1xf32>
    %c0_36 = arith.constant 0 : index
    %c63 = arith.constant 63 : index
    %92 = vector.load %arg0[%c0_36, %c63] : memref<1x512xf32, #tpu.memory_space<vmem>>, vector<1x420xf32>
    %93 = vector.broadcast %91 : vector<8x1xf32> to vector<8x420xf32>
    %94 = vector.broadcast %92 : vector<1x420xf32> to vector<8x420xf32>
    %95 = arith.mulf %93, %94 : vector<8x420xf32>
    %96 = arith.addf %90, %95 : vector<8x420xf32>
    %c0_37 = arith.constant 0 : index
    %c16 = arith.constant 16 : index
    %97 = vector.load %arg2[%c0_37, %c16] : memref<8x25xf32, #tpu.memory_space<vmem>>, vector<8x1xf32>
    %c0_38 = arith.constant 0 : index
    %c64 = arith.constant 64 : index
    %98 = vector.load %arg0[%c0_38, %c64] : memref<1x512xf32, #tpu.memory_space<vmem>>, vector<1x420xf32>
    %99 = vector.broadcast %97 : vector<8x1xf32> to vector<8x420xf32>
    %100 = vector.broadcast %98 : vector<1x420xf32> to vector<8x420xf32>
    %101 = arith.mulf %99, %100 : vector<8x420xf32>
    %102 = arith.addf %96, %101 : vector<8x420xf32>
    %c0_39 = arith.constant 0 : index
    %c17 = arith.constant 17 : index
    %103 = vector.load %arg2[%c0_39, %c17] : memref<8x25xf32, #tpu.memory_space<vmem>>, vector<8x1xf32>
    %c0_40 = arith.constant 0 : index
    %c65 = arith.constant 65 : index
    %104 = vector.load %arg0[%c0_40, %c65] : memref<1x512xf32, #tpu.memory_space<vmem>>, vector<1x420xf32>
    %105 = vector.broadcast %103 : vector<8x1xf32> to vector<8x420xf32>
    %106 = vector.broadcast %104 : vector<1x420xf32> to vector<8x420xf32>
    %107 = arith.mulf %105, %106 : vector<8x420xf32>
    %108 = arith.addf %102, %107 : vector<8x420xf32>
    %c0_41 = arith.constant 0 : index
    %c18 = arith.constant 18 : index
    %109 = vector.load %arg2[%c0_41, %c18] : memref<8x25xf32, #tpu.memory_space<vmem>>, vector<8x1xf32>
    %c0_42 = arith.constant 0 : index
    %c66 = arith.constant 66 : index
    %110 = vector.load %arg0[%c0_42, %c66] : memref<1x512xf32, #tpu.memory_space<vmem>>, vector<1x420xf32>
    %111 = vector.broadcast %109 : vector<8x1xf32> to vector<8x420xf32>
    %112 = vector.broadcast %110 : vector<1x420xf32> to vector<8x420xf32>
    %113 = arith.mulf %111, %112 : vector<8x420xf32>
    %114 = arith.addf %108, %113 : vector<8x420xf32>
    %c0_43 = arith.constant 0 : index
    %c19 = arith.constant 19 : index
    %115 = vector.load %arg2[%c0_43, %c19] : memref<8x25xf32, #tpu.memory_space<vmem>>, vector<8x1xf32>
    %c0_44 = arith.constant 0 : index
    %c67 = arith.constant 67 : index
    %116 = vector.load %arg0[%c0_44, %c67] : memref<1x512xf32, #tpu.memory_space<vmem>>, vector<1x420xf32>
    %117 = vector.broadcast %115 : vector<8x1xf32> to vector<8x420xf32>
    %118 = vector.broadcast %116 : vector<1x420xf32> to vector<8x420xf32>
    %119 = arith.mulf %117, %118 : vector<8x420xf32>
    %120 = arith.addf %114, %119 : vector<8x420xf32>
    %c0_45 = arith.constant 0 : index
    %c20 = arith.constant 20 : index
    %121 = vector.load %arg2[%c0_45, %c20] : memref<8x25xf32, #tpu.memory_space<vmem>>, vector<8x1xf32>
    %c0_46 = arith.constant 0 : index
    %c84 = arith.constant 84 : index
    %122 = vector.load %arg0[%c0_46, %c84] : memref<1x512xf32, #tpu.memory_space<vmem>>, vector<1x420xf32>
    %123 = vector.broadcast %121 : vector<8x1xf32> to vector<8x420xf32>
    %124 = vector.broadcast %122 : vector<1x420xf32> to vector<8x420xf32>
    %125 = arith.mulf %123, %124 : vector<8x420xf32>
    %126 = arith.addf %120, %125 : vector<8x420xf32>
    %c0_47 = arith.constant 0 : index
    %c21_48 = arith.constant 21 : index
    %127 = vector.load %arg2[%c0_47, %c21_48] : memref<8x25xf32, #tpu.memory_space<vmem>>, vector<8x1xf32>
    %c0_49 = arith.constant 0 : index
    %c85 = arith.constant 85 : index
    %128 = vector.load %arg0[%c0_49, %c85] : memref<1x512xf32, #tpu.memory_space<vmem>>, vector<1x420xf32>
    %129 = vector.broadcast %127 : vector<8x1xf32> to vector<8x420xf32>
    %130 = vector.broadcast %128 : vector<1x420xf32> to vector<8x420xf32>
    %131 = arith.mulf %129, %130 : vector<8x420xf32>
    %132 = arith.addf %126, %131 : vector<8x420xf32>
    %c0_50 = arith.constant 0 : index
    %c22_51 = arith.constant 22 : index
    %133 = vector.load %arg2[%c0_50, %c22_51] : memref<8x25xf32, #tpu.memory_space<vmem>>, vector<8x1xf32>
    %c0_52 = arith.constant 0 : index
    %c86 = arith.constant 86 : index
    %134 = vector.load %arg0[%c0_52, %c86] : memref<1x512xf32, #tpu.memory_space<vmem>>, vector<1x420xf32>
    %135 = vector.broadcast %133 : vector<8x1xf32> to vector<8x420xf32>
    %136 = vector.broadcast %134 : vector<1x420xf32> to vector<8x420xf32>
    %137 = arith.mulf %135, %136 : vector<8x420xf32>
    %138 = arith.addf %132, %137 : vector<8x420xf32>
    %c0_53 = arith.constant 0 : index
    %c23_54 = arith.constant 23 : index
    %139 = vector.load %arg2[%c0_53, %c23_54] : memref<8x25xf32, #tpu.memory_space<vmem>>, vector<8x1xf32>
    %c0_55 = arith.constant 0 : index
    %c87 = arith.constant 87 : index
    %140 = vector.load %arg0[%c0_55, %c87] : memref<1x512xf32, #tpu.memory_space<vmem>>, vector<1x420xf32>
    %141 = vector.broadcast %139 : vector<8x1xf32> to vector<8x420xf32>
    %142 = vector.broadcast %140 : vector<1x420xf32> to vector<8x420xf32>
    %143 = arith.mulf %141, %142 : vector<8x420xf32>
    %144 = arith.addf %138, %143 : vector<8x420xf32>
    %c0_56 = arith.constant 0 : index
    %c24_57 = arith.constant 24 : index
    %145 = vector.load %arg2[%c0_56, %c24_57] : memref<8x25xf32, #tpu.memory_space<vmem>>, vector<8x1xf32>
    %c0_58 = arith.constant 0 : index
    %c88 = arith.constant 88 : index
    %146 = vector.load %arg0[%c0_58, %c88] : memref<1x512xf32, #tpu.memory_space<vmem>>, vector<1x420xf32>
    %147 = vector.broadcast %145 : vector<8x1xf32> to vector<8x420xf32>
    %148 = vector.broadcast %146 : vector<1x420xf32> to vector<8x420xf32>
    %149 = arith.mulf %147, %148 : vector<8x420xf32>
    %150 = arith.addf %144, %149 : vector<8x420xf32>
    %c0_59 = arith.constant 0 : index
    %c0_60 = arith.constant 0 : index
    %151 = vector.load %arg1[%c0_59, %c0_60] : memref<1x420xf32, #tpu.memory_space<vmem>>, vector<1x420xf32>
    %152 = vector.broadcast %151 : vector<1x420xf32> to vector<8x420xf32>
    %153 = arith.mulf %150, %152 : vector<8x420xf32>
    %cst_61 = arith.constant dense<0.000000e+00> : vector<8xf32>
    %154 = vector.multi_reduction <add>, %153, %cst_61 [1] : vector<8x420xf32> to vector<8xf32>
    %155 = vector.shape_cast %154 : vector<8xf32> to vector<8x1xf32>
    %156 = arith.mulf %150, %150 : vector<8x420xf32>
    %157 = vector.broadcast %151 : vector<1x420xf32> to vector<8x420xf32>
    %158 = arith.mulf %156, %157 : vector<8x420xf32>
    %cst_62 = arith.constant dense<0.000000e+00> : vector<8xf32>
    %159 = vector.multi_reduction <add>, %158, %cst_62 [1] : vector<8x420xf32> to vector<8xf32>
    %160 = vector.shape_cast %159 : vector<8xf32> to vector<8x1xf32>
    %cst_63 = arith.constant 0.00490196096 : f32
    %161 = vector.broadcast %cst_63 : f32 to vector<8x1xf32>
    %162 = arith.mulf %155, %161 : vector<8x1xf32>
    %cst_64 = arith.constant 0.00490196096 : f32
    %163 = vector.broadcast %cst_64 : f32 to vector<8x1xf32>
    %164 = arith.mulf %160, %163 : vector<8x1xf32>
    %165 = arith.mulf %162, %162 : vector<8x1xf32>
    %166 = arith.subf %164, %165 : vector<8x1xf32>
    %cst_65 = arith.constant 0.000000e+00 : f32
    %167 = vector.broadcast %cst_65 : f32 to vector<8x1xf32>
    %168 = arith.maximumf %166, %167 : vector<8x1xf32>
    %c0_66 = arith.constant 0 : index
    %c0_67 = arith.constant 0 : index
    %169 = vector.load %arg3[%c0_66, %c0_67] : memref<8x1xf32, #tpu.memory_space<vmem>>, vector<8x1xf32>
    %cst_68 = arith.constant 9.99999974E-6 : f32
    %170 = vector.broadcast %cst_68 : f32 to vector<8x1xf32>
    %171 = arith.addf %168, %170 : vector<8x1xf32>
    %172 = math.rsqrt %171 : vector<8x1xf32>
    %173 = arith.mulf %169, %172 : vector<8x1xf32>
    %c0_69 = arith.constant 0 : index
    %c0_70 = arith.constant 0 : index
    %174 = vector.load %arg4[%c0_69, %c0_70] : memref<8x1xf32, #tpu.memory_space<vmem>>, vector<8x1xf32>
    %175 = arith.mulf %162, %173 : vector<8x1xf32>
    %176 = arith.subf %174, %175 : vector<8x1xf32>
    %177 = vector.broadcast %173 : vector<8x1xf32> to vector<8x420xf32>
    %178 = arith.mulf %150, %177 : vector<8x420xf32>
    %179 = vector.broadcast %176 : vector<8x1xf32> to vector<8x420xf32>
    %180 = arith.addf %178, %179 : vector<8x420xf32>
    %cst_71 = arith.constant 0.000000e+00 : f32
    %181 = vector.broadcast %cst_71 : f32 to vector<8x420xf32>
    %182 = arith.maximumf %180, %181 : vector<8x420xf32>
    %cst_72 = arith.constant 0.000000e+00 : f32
    %183 = vector.broadcast %cst_72 : f32 to vector<8x92xf32>
    %c0_73 = arith.constant 0 : index
    %c420 = arith.constant 420 : index
    %184 = vector.load %arg15[%c0_73, %c420] : memref<8x512xf32, #tpu.memory_space<vmem>>, vector<8x92xf32>
    tpu.vector_store %arg15[%c0_73, %c420], %183 {strides = array<i32>} : memref<8x512xf32, #tpu.memory_space<vmem>>, vector<8x92xf32>,
    %c0_74 = arith.constant 0 : index
    %c0_75 = arith.constant 0 : index
    %185 = vector.load %arg15[%c0_74, %c0_75] : memref<8x512xf32, #tpu.memory_space<vmem>>, vector<8x420xf32>
    tpu.vector_store %arg15[%c0_74, %c0_75], %182 {strides = array<i32>} : memref<8x512xf32, #tpu.memory_space<vmem>>, vector<8x420xf32>,
    %cst_76 = arith.constant 0.000000e+00 : f32
    %186 = vector.broadcast %cst_76 : f32 to vector<16x420xf32>
    %c0_77 = arith.constant 0 : index
    %c0_78 = arith.constant 0 : index
    %187 = vector.load %arg5[%c0_77, %c0_78] : memref<16x200xf32, #tpu.memory_space<vmem>>, vector<16x8xf32>
    %c0_79 = arith.constant 0 : index
    %c0_80 = arith.constant 0 : index
    %188 = vector.load %arg15[%c0_79, %c0_80] : memref<8x512xf32, #tpu.memory_space<vmem>>, vector<8x420xf32>
    %cst_81 = arith.constant dense<0.000000e+00> : vector<16x420xf32>
    %189 = tpu.matmul %187, %188, %cst_81 {dimension_numbers = #tpu.dot_dimension_numbers<[1], [0], [0], [1], [0, 0, 1, 1], [], []>} : vector<16x8xf32>, vector<8x420xf32>, vector<16x420xf32> -> vector<16x420xf32>
    %190 = arith.addf %186, %189 : vector<16x420xf32>
    %c0_82 = arith.constant 0 : index
    %c8_83 = arith.constant 8 : index
    %191 = vector.load %arg5[%c0_82, %c8_83] : memref<16x200xf32, #tpu.memory_space<vmem>>, vector<16x8xf32>
    %c0_84 = arith.constant 0 : index
    %c1_85 = arith.constant 1 : index
    %192 = vector.load %arg15[%c0_84, %c1_85] : memref<8x512xf32, #tpu.memory_space<vmem>>, vector<8x420xf32>
    %cst_86 = arith.constant dense<0.000000e+00> : vector<16x420xf32>
    %193 = tpu.matmul %191, %192, %cst_86 {dimension_numbers = #tpu.dot_dimension_numbers<[1], [0], [0], [1], [0, 0, 1, 1], [], []>} : vector<16x8xf32>, vector<8x420xf32>, vector<16x420xf32> -> vector<16x420xf32>
    %194 = arith.addf %190, %193 : vector<16x420xf32>
    %c0_87 = arith.constant 0 : index
    %c16_88 = arith.constant 16 : index
    %195 = vector.load %arg5[%c0_87, %c16_88] : memref<16x200xf32, #tpu.memory_space<vmem>>, vector<16x8xf32>
    %c0_89 = arith.constant 0 : index
    %c2_90 = arith.constant 2 : index
    %196 = vector.load %arg15[%c0_89, %c2_90] : memref<8x512xf32, #tpu.memory_space<vmem>>, vector<8x420xf32>
    %cst_91 = arith.constant dense<0.000000e+00> : vector<16x420xf32>
    %197 = tpu.matmul %195, %196, %cst_91 {dimension_numbers = #tpu.dot_dimension_numbers<[1], [0], [0], [1], [0, 0, 1, 1], [], []>} : vector<16x8xf32>, vector<8x420xf32>, vector<16x420xf32> -> vector<16x420xf32>
    %198 = arith.addf %194, %197 : vector<16x420xf32>
    %c0_92 = arith.constant 0 : index
    %c24_93 = arith.constant 24 : index
    %199 = vector.load %arg5[%c0_92, %c24_93] : memref<16x200xf32, #tpu.memory_space<vmem>>, vector<16x8xf32>
    %c0_94 = arith.constant 0 : index
    %c3_95 = arith.constant 3 : index
    %200 = vector.load %arg15[%c0_94, %c3_95] : memref<8x512xf32, #tpu.memory_space<vmem>>, vector<8x420xf32>
    %cst_96 = arith.constant dense<0.000000e+00> : vector<16x420xf32>
    %201 = tpu.matmul %199, %200, %cst_96 {dimension_numbers = #tpu.dot_dimension_numbers<[1], [0], [0], [1], [0, 0, 1, 1], [], []>} : vector<16x8xf32>, vector<8x420xf32>, vector<16x420xf32> -> vector<16x420xf32>
    %202 = arith.addf %198, %201 : vector<16x420xf32>
    %c0_97 = arith.constant 0 : index
    %c32 = arith.constant 32 : index
    %203 = vector.load %arg5[%c0_97, %c32] : memref<16x200xf32, #tpu.memory_space<vmem>>, vector<16x8xf32>
    %c0_98 = arith.constant 0 : index
    %c4_99 = arith.constant 4 : index
    %204 = vector.load %arg15[%c0_98, %c4_99] : memref<8x512xf32, #tpu.memory_space<vmem>>, vector<8x420xf32>
    %cst_100 = arith.constant dense<0.000000e+00> : vector<16x420xf32>
    %205 = tpu.matmul %203, %204, %cst_100 {dimension_numbers = #tpu.dot_dimension_numbers<[1], [0], [0], [1], [0, 0, 1, 1], [], []>} : vector<16x8xf32>, vector<8x420xf32>, vector<16x420xf32> -> vector<16x420xf32>
    %206 = arith.addf %202, %205 : vector<16x420xf32>
    %c0_101 = arith.constant 0 : index
    %c40 = arith.constant 40 : index
    %207 = vector.load %arg5[%c0_101, %c40] : memref<16x200xf32, #tpu.memory_space<vmem>>, vector<16x8xf32>
    %c0_102 = arith.constant 0 : index
    %c21_103 = arith.constant 21 : index
    %208 = vector.load %arg15[%c0_102, %c21_103] : memref<8x512xf32, #tpu.memory_space<vmem>>, vector<8x420xf32>
    %cst_104 = arith.constant dense<0.000000e+00> : vector<16x420xf32>
    %209 = tpu.matmul %207, %208, %cst_104 {dimension_numbers = #tpu.dot_dimension_numbers<[1], [0], [0], [1], [0, 0, 1, 1], [], []>} : vector<16x8xf32>, vector<8x420xf32>, vector<16x420xf32> -> vector<16x420xf32>
    %210 = arith.addf %206, %209 : vector<16x420xf32>
    %c0_105 = arith.constant 0 : index
    %c48 = arith.constant 48 : index
    %211 = vector.load %arg5[%c0_105, %c48] : memref<16x200xf32, #tpu.memory_space<vmem>>, vector<16x8xf32>
    %c0_106 = arith.constant 0 : index
    %c22_107 = arith.constant 22 : index
    %212 = vector.load %arg15[%c0_106, %c22_107] : memref<8x512xf32, #tpu.memory_space<vmem>>, vector<8x420xf32>
    %cst_108 = arith.constant dense<0.000000e+00> : vector<16x420xf32>
    %213 = tpu.matmul %211, %212, %cst_108 {dimension_numbers = #tpu.dot_dimension_numbers<[1], [0], [0], [1], [0, 0, 1, 1], [], []>} : vector<16x8xf32>, vector<8x420xf32>, vector<16x420xf32> -> vector<16x420xf32>
    %214 = arith.addf %210, %213 : vector<16x420xf32>
    %c0_109 = arith.constant 0 : index
    %c56 = arith.constant 56 : index
    %215 = vector.load %arg5[%c0_109, %c56] : memref<16x200xf32, #tpu.memory_space<vmem>>, vector<16x8xf32>
    %c0_110 = arith.constant 0 : index
    %c23_111 = arith.constant 23 : index
    %216 = vector.load %arg15[%c0_110, %c23_111] : memref<8x512xf32, #tpu.memory_space<vmem>>, vector<8x420xf32>
    %cst_112 = arith.constant dense<0.000000e+00> : vector<16x420xf32>
    %217 = tpu.matmul %215, %216, %cst_112 {dimension_numbers = #tpu.dot_dimension_numbers<[1], [0], [0], [1], [0, 0, 1, 1], [], []>} : vector<16x8xf32>, vector<8x420xf32>, vector<16x420xf32> -> vector<16x420xf32>
    %218 = arith.addf %214, %217 : vector<16x420xf32>
    %c0_113 = arith.constant 0 : index
    %c64_114 = arith.constant 64 : index
    %219 = vector.load %arg5[%c0_113, %c64_114] : memref<16x200xf32, #tpu.memory_space<vmem>>, vector<16x8xf32>
    %c0_115 = arith.constant 0 : index
    %c24_116 = arith.constant 24 : index
    %220 = vector.load %arg15[%c0_115, %c24_116] : memref<8x512xf32, #tpu.memory_space<vmem>>, vector<8x420xf32>
    %cst_117 = arith.constant dense<0.000000e+00> : vector<16x420xf32>
    %221 = tpu.matmul %219, %220, %cst_117 {dimension_numbers = #tpu.dot_dimension_numbers<[1], [0], [0], [1], [0, 0, 1, 1], [], []>} : vector<16x8xf32>, vector<8x420xf32>, vector<16x420xf32> -> vector<16x420xf32>
    %222 = arith.addf %218, %221 : vector<16x420xf32>
    %c0_118 = arith.constant 0 : index
    %c72 = arith.constant 72 : index
    %223 = vector.load %arg5[%c0_118, %c72] : memref<16x200xf32, #tpu.memory_space<vmem>>, vector<16x8xf32>
    %c0_119 = arith.constant 0 : index
    %c25_120 = arith.constant 25 : index
    %224 = vector.load %arg15[%c0_119, %c25_120] : memref<8x512xf32, #tpu.memory_space<vmem>>, vector<8x420xf32>
    %cst_121 = arith.constant dense<0.000000e+00> : vector<16x420xf32>
    %225 = tpu.matmul %223, %224, %cst_121 {dimension_numbers = #tpu.dot_dimension_numbers<[1], [0], [0], [1], [0, 0, 1, 1], [], []>} : vector<16x8xf32>, vector<8x420xf32>, vector<16x420xf32> -> vector<16x420xf32>
    %226 = arith.addf %222, %225 : vector<16x420xf32>
    %c0_122 = arith.constant 0 : index
    %c80 = arith.constant 80 : index
    %227 = vector.load %arg5[%c0_122, %c80] : memref<16x200xf32, #tpu.memory_space<vmem>>, vector<16x8xf32>
    %c0_123 = arith.constant 0 : index
    %c42_124 = arith.constant 42 : index
    %228 = vector.load %arg15[%c0_123, %c42_124] : memref<8x512xf32, #tpu.memory_space<vmem>>, vector<8x420xf32>
    %cst_125 = arith.constant dense<0.000000e+00> : vector<16x420xf32>
    %229 = tpu.matmul %227, %228, %cst_125 {dimension_numbers = #tpu.dot_dimension_numbers<[1], [0], [0], [1], [0, 0, 1, 1], [], []>} : vector<16x8xf32>, vector<8x420xf32>, vector<16x420xf32> -> vector<16x420xf32>
    %230 = arith.addf %226, %229 : vector<16x420xf32>
    %c0_126 = arith.constant 0 : index
    %c88_127 = arith.constant 88 : index
    %231 = vector.load %arg5[%c0_126, %c88_127] : memref<16x200xf32, #tpu.memory_space<vmem>>, vector<16x8xf32>
    %c0_128 = arith.constant 0 : index
    %c43_129 = arith.constant 43 : index
    %232 = vector.load %arg15[%c0_128, %c43_129] : memref<8x512xf32, #tpu.memory_space<vmem>>, vector<8x420xf32>
    %cst_130 = arith.constant dense<0.000000e+00> : vector<16x420xf32>
    %233 = tpu.matmul %231, %232, %cst_130 {dimension_numbers = #tpu.dot_dimension_numbers<[1], [0], [0], [1], [0, 0, 1, 1], [], []>} : vector<16x8xf32>, vector<8x420xf32>, vector<16x420xf32> -> vector<16x420xf32>
    %234 = arith.addf %230, %233 : vector<16x420xf32>
    %c0_131 = arith.constant 0 : index
    %c96 = arith.constant 96 : index
    %235 = vector.load %arg5[%c0_131, %c96] : memref<16x200xf32, #tpu.memory_space<vmem>>, vector<16x8xf32>
    %c0_132 = arith.constant 0 : index
    %c44_133 = arith.constant 44 : index
    %236 = vector.load %arg15[%c0_132, %c44_133] : memref<8x512xf32, #tpu.memory_space<vmem>>, vector<8x420xf32>
    %cst_134 = arith.constant dense<0.000000e+00> : vector<16x420xf32>
    %237 = tpu.matmul %235, %236, %cst_134 {dimension_numbers = #tpu.dot_dimension_numbers<[1], [0], [0], [1], [0, 0, 1, 1], [], []>} : vector<16x8xf32>, vector<8x420xf32>, vector<16x420xf32> -> vector<16x420xf32>
    %238 = arith.addf %234, %237 : vector<16x420xf32>
    %c0_135 = arith.constant 0 : index
    %c104 = arith.constant 104 : index
    %239 = vector.load %arg5[%c0_135, %c104] : memref<16x200xf32, #tpu.memory_space<vmem>>, vector<16x8xf32>
    %c0_136 = arith.constant 0 : index
    %c45_137 = arith.constant 45 : index
    %240 = vector.load %arg15[%c0_136, %c45_137] : memref<8x512xf32, #tpu.memory_space<vmem>>, vector<8x420xf32>
    %cst_138 = arith.constant dense<0.000000e+00> : vector<16x420xf32>
    %241 = tpu.matmul %239, %240, %cst_138 {dimension_numbers = #tpu.dot_dimension_numbers<[1], [0], [0], [1], [0, 0, 1, 1], [], []>} : vector<16x8xf32>, vector<8x420xf32>, vector<16x420xf32> -> vector<16x420xf32>
    %242 = arith.addf %238, %241 : vector<16x420xf32>
    %c0_139 = arith.constant 0 : index
    %c112 = arith.constant 112 : index
    %243 = vector.load %arg5[%c0_139, %c112] : memref<16x200xf32, #tpu.memory_space<vmem>>, vector<16x8xf32>
    %c0_140 = arith.constant 0 : index
    %c46_141 = arith.constant 46 : index
    %244 = vector.load %arg15[%c0_140, %c46_141] : memref<8x512xf32, #tpu.memory_space<vmem>>, vector<8x420xf32>
    %cst_142 = arith.constant dense<0.000000e+00> : vector<16x420xf32>
    %245 = tpu.matmul %243, %244, %cst_142 {dimension_numbers = #tpu.dot_dimension_numbers<[1], [0], [0], [1], [0, 0, 1, 1], [], []>} : vector<16x8xf32>, vector<8x420xf32>, vector<16x420xf32> -> vector<16x420xf32>
    %246 = arith.addf %242, %245 : vector<16x420xf32>
    %c0_143 = arith.constant 0 : index
    %c120 = arith.constant 120 : index
    %247 = vector.load %arg5[%c0_143, %c120] : memref<16x200xf32, #tpu.memory_space<vmem>>, vector<16x8xf32>
    %c0_144 = arith.constant 0 : index
    %c63_145 = arith.constant 63 : index
    %248 = vector.load %arg15[%c0_144, %c63_145] : memref<8x512xf32, #tpu.memory_space<vmem>>, vector<8x420xf32>
    %cst_146 = arith.constant dense<0.000000e+00> : vector<16x420xf32>
    %249 = tpu.matmul %247, %248, %cst_146 {dimension_numbers = #tpu.dot_dimension_numbers<[1], [0], [0], [1], [0, 0, 1, 1], [], []>} : vector<16x8xf32>, vector<8x420xf32>, vector<16x420xf32> -> vector<16x420xf32>
    %250 = arith.addf %246, %249 : vector<16x420xf32>
    %c0_147 = arith.constant 0 : index
    %c128 = arith.constant 128 : index
    %251 = vector.load %arg5[%c0_147, %c128] : memref<16x200xf32, #tpu.memory_space<vmem>>, vector<16x8xf32>
    %c0_148 = arith.constant 0 : index
    %c64_149 = arith.constant 64 : index
    %252 = vector.load %arg15[%c0_148, %c64_149] : memref<8x512xf32, #tpu.memory_space<vmem>>, vector<8x420xf32>
    %cst_150 = arith.constant dense<0.000000e+00> : vector<16x420xf32>
    %253 = tpu.matmul %251, %252, %cst_150 {dimension_numbers = #tpu.dot_dimension_numbers<[1], [0], [0], [1], [0, 0, 1, 1], [], []>} : vector<16x8xf32>, vector<8x420xf32>, vector<16x420xf32> -> vector<16x420xf32>
    %254 = arith.addf %250, %253 : vector<16x420xf32>
    %c0_151 = arith.constant 0 : index
    %c136 = arith.constant 136 : index
    %255 = vector.load %arg5[%c0_151, %c136] : memref<16x200xf32, #tpu.memory_space<vmem>>, vector<16x8xf32>
    %c0_152 = arith.constant 0 : index
    %c65_153 = arith.constant 65 : index
    %256 = vector.load %arg15[%c0_152, %c65_153] : memref<8x512xf32, #tpu.memory_space<vmem>>, vector<8x420xf32>
    %cst_154 = arith.constant dense<0.000000e+00> : vector<16x420xf32>
    %257 = tpu.matmul %255, %256, %cst_154 {dimension_numbers = #tpu.dot_dimension_numbers<[1], [0], [0], [1], [0, 0, 1, 1], [], []>} : vector<16x8xf32>, vector<8x420xf32>, vector<16x420xf32> -> vector<16x420xf32>
    %258 = arith.addf %254, %257 : vector<16x420xf32>
    %c0_155 = arith.constant 0 : index
    %c144 = arith.constant 144 : index
    %259 = vector.load %arg5[%c0_155, %c144] : memref<16x200xf32, #tpu.memory_space<vmem>>, vector<16x8xf32>
    %c0_156 = arith.constant 0 : index
    %c66_157 = arith.constant 66 : index
    %260 = vector.load %arg15[%c0_156, %c66_157] : memref<8x512xf32, #tpu.memory_space<vmem>>, vector<8x420xf32>
    %cst_158 = arith.constant dense<0.000000e+00> : vector<16x420xf32>
    %261 = tpu.matmul %259, %260, %cst_158 {dimension_numbers = #tpu.dot_dimension_numbers<[1], [0], [0], [1], [0, 0, 1, 1], [], []>} : vector<16x8xf32>, vector<8x420xf32>, vector<16x420xf32> -> vector<16x420xf32>
    %262 = arith.addf %258, %261 : vector<16x420xf32>
    %c0_159 = arith.constant 0 : index
    %c152 = arith.constant 152 : index
    %263 = vector.load %arg5[%c0_159, %c152] : memref<16x200xf32, #tpu.memory_space<vmem>>, vector<16x8xf32>
    %c0_160 = arith.constant 0 : index
    %c67_161 = arith.constant 67 : index
    %264 = vector.load %arg15[%c0_160, %c67_161] : memref<8x512xf32, #tpu.memory_space<vmem>>, vector<8x420xf32>
    %cst_162 = arith.constant dense<0.000000e+00> : vector<16x420xf32>
    %265 = tpu.matmul %263, %264, %cst_162 {dimension_numbers = #tpu.dot_dimension_numbers<[1], [0], [0], [1], [0, 0, 1, 1], [], []>} : vector<16x8xf32>, vector<8x420xf32>, vector<16x420xf32> -> vector<16x420xf32>
    %266 = arith.addf %262, %265 : vector<16x420xf32>
    %c0_163 = arith.constant 0 : index
    %c160 = arith.constant 160 : index
    %267 = vector.load %arg5[%c0_163, %c160] : memref<16x200xf32, #tpu.memory_space<vmem>>, vector<16x8xf32>
    %c0_164 = arith.constant 0 : index
    %c84_165 = arith.constant 84 : index
    %268 = vector.load %arg15[%c0_164, %c84_165] : memref<8x512xf32, #tpu.memory_space<vmem>>, vector<8x420xf32>
    %cst_166 = arith.constant dense<0.000000e+00> : vector<16x420xf32>
    %269 = tpu.matmul %267, %268, %cst_166 {dimension_numbers = #tpu.dot_dimension_numbers<[1], [0], [0], [1], [0, 0, 1, 1], [], []>} : vector<16x8xf32>, vector<8x420xf32>, vector<16x420xf32> -> vector<16x420xf32>
    %270 = arith.addf %266, %269 : vector<16x420xf32>
    %c0_167 = arith.constant 0 : index
    %c168 = arith.constant 168 : index
    %271 = vector.load %arg5[%c0_167, %c168] : memref<16x200xf32, #tpu.memory_space<vmem>>, vector<16x8xf32>
    %c0_168 = arith.constant 0 : index
    %c85_169 = arith.constant 85 : index
    %272 = vector.load %arg15[%c0_168, %c85_169] : memref<8x512xf32, #tpu.memory_space<vmem>>, vector<8x420xf32>
    %cst_170 = arith.constant dense<0.000000e+00> : vector<16x420xf32>
    %273 = tpu.matmul %271, %272, %cst_170 {dimension_numbers = #tpu.dot_dimension_numbers<[1], [0], [0], [1], [0, 0, 1, 1], [], []>} : vector<16x8xf32>, vector<8x420xf32>, vector<16x420xf32> -> vector<16x420xf32>
    %274 = arith.addf %270, %273 : vector<16x420xf32>
    %c0_171 = arith.constant 0 : index
    %c176 = arith.constant 176 : index
    %275 = vector.load %arg5[%c0_171, %c176] : memref<16x200xf32, #tpu.memory_space<vmem>>, vector<16x8xf32>
    %c0_172 = arith.constant 0 : index
    %c86_173 = arith.constant 86 : index
    %276 = vector.load %arg15[%c0_172, %c86_173] : memref<8x512xf32, #tpu.memory_space<vmem>>, vector<8x420xf32>
    %cst_174 = arith.constant dense<0.000000e+00> : vector<16x420xf32>
    %277 = tpu.matmul %275, %276, %cst_174 {dimension_numbers = #tpu.dot_dimension_numbers<[1], [0], [0], [1], [0, 0, 1, 1], [], []>} : vector<16x8xf32>, vector<8x420xf32>, vector<16x420xf32> -> vector<16x420xf32>
    %278 = arith.addf %274, %277 : vector<16x420xf32>
    %c0_175 = arith.constant 0 : index
    %c184 = arith.constant 184 : index
    %279 = vector.load %arg5[%c0_175, %c184] : memref<16x200xf32, #tpu.memory_space<vmem>>, vector<16x8xf32>
    %c0_176 = arith.constant 0 : index
    %c87_177 = arith.constant 87 : index
    %280 = vector.load %arg15[%c0_176, %c87_177] : memref<8x512xf32, #tpu.memory_space<vmem>>, vector<8x420xf32>
    %cst_178 = arith.constant dense<0.000000e+00> : vector<16x420xf32>
    %281 = tpu.matmul %279, %280, %cst_178 {dimension_numbers = #tpu.dot_dimension_numbers<[1], [0], [0], [1], [0, 0, 1, 1], [], []>} : vector<16x8xf32>, vector<8x420xf32>, vector<16x420xf32> -> vector<16x420xf32>
    %282 = arith.addf %278, %281 : vector<16x420xf32>
    %c0_179 = arith.constant 0 : index
    %c192 = arith.constant 192 : index
    %283 = vector.load %arg5[%c0_179, %c192] : memref<16x200xf32, #tpu.memory_space<vmem>>, vector<16x8xf32>
    %c0_180 = arith.constant 0 : index
    %c88_181 = arith.constant 88 : index
    %284 = vector.load %arg15[%c0_180, %c88_181] : memref<8x512xf32, #tpu.memory_space<vmem>>, vector<8x420xf32>
    %cst_182 = arith.constant dense<0.000000e+00> : vector<16x420xf32>
    %285 = tpu.matmul %283, %284, %cst_182 {dimension_numbers = #tpu.dot_dimension_numbers<[1], [0], [0], [1], [0, 0, 1, 1], [], []>} : vector<16x8xf32>, vector<8x420xf32>, vector<16x420xf32> -> vector<16x420xf32>
    %286 = arith.addf %282, %285 : vector<16x420xf32>
    %287 = vector.extract_strided_slice %286 {offsets = [0, 0], sizes = [16, 13], strides = [1, 1]} : vector<16x420xf32> to vector<16x13xf32>
    %c0_183 = arith.constant 0 : index
    %c0_184 = arith.constant 0 : index
    %c0_185 = arith.constant 0 : index
    %288 = vector.load %arg16[%c0_183, %c0_184, %c0_185] : memref<16x2x26xf32, #tpu.memory_space<vmem>>, vector<16x1x13xf32>
    %289 = vector.shape_cast %288 : vector<16x1x13xf32> to vector<16x13xf32>
    %290 = vector.shape_cast %287 : vector<16x13xf32> to vector<16x1x13xf32>
    tpu.vector_store %arg16[%c0_183, %c0_184, %c0_185], %290 {strides = array<i32>} : memref<16x2x26xf32, #tpu.memory_space<vmem>>, vector<16x1x13xf32>,
    %291 = vector.extract_strided_slice %286 {offsets = [0, 21], sizes = [16, 13], strides = [1, 1]} : vector<16x420xf32> to vector<16x13xf32>
    %c0_186 = arith.constant 0 : index
    %c0_187 = arith.constant 0 : index
    %c13_188 = arith.constant 13 : index
    %292 = vector.load %arg16[%c0_186, %c0_187, %c13_188] : memref<16x2x26xf32, #tpu.memory_space<vmem>>, vector<16x1x13xf32>
    %293 = vector.shape_cast %292 : vector<16x1x13xf32> to vector<16x13xf32>
    %294 = vector.shape_cast %291 : vector<16x13xf32> to vector<16x1x13xf32>
    tpu.vector_store %arg16[%c0_186, %c0_187, %c13_188], %294 {strides = array<i32>} : memref<16x2x26xf32, #tpu.memory_space<vmem>>, vector<16x1x13xf32>,
    %295 = vector.extract_strided_slice %286 {offsets = [0, 210], sizes = [16, 13], strides = [1, 1]} : vector<16x420xf32> to vector<16x13xf32>
    %c0_189 = arith.constant 0 : index
    %c1_190 = arith.constant 1 : index
    %c0_191 = arith.constant 0 : index
    %296 = vector.load %arg16[%c0_189, %c1_190, %c0_191] : memref<16x2x26xf32, #tpu.memory_space<vmem>>, vector<16x1x13xf32>
    %297 = vector.shape_cast %296 : vector<16x1x13xf32> to vector<16x13xf32>
    %298 = vector.shape_cast %295 : vector<16x13xf32> to vector<16x1x13xf32>
    tpu.vector_store %arg16[%c0_189, %c1_190, %c0_191], %298 {strides = array<i32>} : memref<16x2x26xf32, #tpu.memory_space<vmem>>, vector<16x1x13xf32>,
    %299 = vector.extract_strided_slice %286 {offsets = [0, 231], sizes = [16, 13], strides = [1, 1]} : vector<16x420xf32> to vector<16x13xf32>
    %c0_192 = arith.constant 0 : index
    %c1_193 = arith.constant 1 : index
    %c13_194 = arith.constant 13 : index
    %300 = vector.load %arg16[%c0_192, %c1_193, %c13_194] : memref<16x2x26xf32, #tpu.memory_space<vmem>>, vector<16x1x13xf32>
    %301 = vector.shape_cast %300 : vector<16x1x13xf32> to vector<16x13xf32>
    %302 = vector.shape_cast %299 : vector<16x13xf32> to vector<16x1x13xf32>
    tpu.vector_store %arg16[%c0_192, %c1_193, %c13_194], %302 {strides = array<i32>} : memref<16x2x26xf32, #tpu.memory_space<vmem>>, vector<16x1x13xf32>,
    %c0_195 = arith.constant 0 : index
    %c0_196 = arith.constant 0 : index
    %c0_197 = arith.constant 0 : index
    %303 = vector.load %arg16[%c0_195, %c0_196, %c0_197] : memref<16x2x26xf32, #tpu.memory_space<vmem>>, vector<16x2x26xf32>
    %cst_198 = arith.constant dense<0.000000e+00> : vector<16x2xf32>
    %304 = vector.multi_reduction <add>, %303, %cst_198 [2] : vector<16x2x26xf32> to vector<16x2xf32>
    %305 = vector.shape_cast %304 : vector<16x2xf32> to vector<16x2x1xf32>
    %cst_199 = arith.constant dense<0.000000e+00> : vector<16x1xf32>
    %306 = vector.multi_reduction <add>, %305, %cst_199 [1] : vector<16x2x1xf32> to vector<16x1xf32>
    %307 = vector.shape_cast %306 : vector<16x1xf32> to vector<16x1x1xf32>
    %308 = arith.mulf %303, %303 : vector<16x2x26xf32>
    %cst_200 = arith.constant dense<0.000000e+00> : vector<16x2xf32>
    %309 = vector.multi_reduction <add>, %308, %cst_200 [2] : vector<16x2x26xf32> to vector<16x2xf32>
    %310 = vector.shape_cast %309 : vector<16x2xf32> to vector<16x2x1xf32>
    %cst_201 = arith.constant dense<0.000000e+00> : vector<16x1xf32>
    %311 = vector.multi_reduction <add>, %310, %cst_201 [1] : vector<16x2x1xf32> to vector<16x1xf32>
    %312 = vector.shape_cast %311 : vector<16x1xf32> to vector<16x1x1xf32>
    %cst_202 = arith.constant 0.0192307699 : f32
    %313 = vector.broadcast %cst_202 : f32 to vector<16x1x1xf32>
    %314 = arith.mulf %307, %313 : vector<16x1x1xf32>
    %cst_203 = arith.constant 0.0192307699 : f32
    %315 = vector.broadcast %cst_203 : f32 to vector<16x1x1xf32>
    %316 = arith.mulf %312, %315 : vector<16x1x1xf32>
    %317 = arith.mulf %314, %314 : vector<16x1x1xf32>
    %318 = arith.subf %316, %317 : vector<16x1x1xf32>
    %cst_204 = arith.constant 0.000000e+00 : f32
    %319 = vector.broadcast %cst_204 : f32 to vector<16x1x1xf32>
    %320 = arith.maximumf %318, %319 : vector<16x1x1xf32>
    %c0_205 = arith.constant 0 : index
    %c0_206 = arith.constant 0 : index
    %c0_207 = arith.constant 0 : index
    %321 = vector.load %arg6[%c0_205, %c0_206, %c0_207] : memref<16x1x1xf32, #tpu.memory_space<vmem>>, vector<16x1x1xf32>
    %cst_208 = arith.constant 9.99999974E-6 : f32
    %322 = vector.broadcast %cst_208 : f32 to vector<16x1x1xf32>
    %323 = arith.addf %320, %322 : vector<16x1x1xf32>
    %324 = math.rsqrt %323 : vector<16x1x1xf32>
    %325 = arith.mulf %321, %324 : vector<16x1x1xf32>
    %c0_209 = arith.constant 0 : index
    %c0_210 = arith.constant 0 : index
    %c0_211 = arith.constant 0 : index
    %326 = vector.load %arg7[%c0_209, %c0_210, %c0_211] : memref<16x1x1xf32, #tpu.memory_space<vmem>>, vector<16x1x1xf32>
    %327 = arith.mulf %314, %325 : vector<16x1x1xf32>
    %328 = arith.subf %326, %327 : vector<16x1x1xf32>
    %329 = vector.broadcast %325 : vector<16x1x1xf32> to vector<16x2x26xf32>
    %330 = arith.mulf %303, %329 : vector<16x2x26xf32>
    %331 = vector.broadcast %328 : vector<16x1x1xf32> to vector<16x2x26xf32>
    %332 = arith.addf %330, %331 : vector<16x2x26xf32>
    %cst_212 = arith.constant 0.000000e+00 : f32
    %333 = vector.broadcast %cst_212 : f32 to vector<16x2x26xf32>
    %334 = arith.maximumf %332, %333 : vector<16x2x26xf32>
    %c0_213 = arith.constant 0 : index
    %c0_214 = arith.constant 0 : index
    %c0_215 = arith.constant 0 : index
    %335 = vector.load %arg8[%c0_213, %c0_214, %c0_215] : memref<16x26x64xf32, #tpu.memory_space<vmem>>, vector<16x26x64xf32>
    "tpu.trace_start"() <{level = 10 : i32, message = "cbq,cqk->cbk"}> : () -> ()
    %cst_216 = arith.constant dense<0.000000e+00> : vector<16x2x64xf32>
    %336 = tpu.matmul %334, %335, %cst_216 {dimension_numbers = #tpu.dot_dimension_numbers<[2], [1], [1], [2], [0, 0, 0, 1, 1, 2], [0], [0]>} : vector<16x2x26xf32>, vector<16x26x64xf32>, vector<16x2x64xf32> -> vector<16x2x64xf32>
    "tpu.trace_stop"() : () -> ()
    %cst_217 = arith.constant dense<0.000000e+00> : vector<2x64xf32>
    %337 = vector.multi_reduction <add>, %336, %cst_217 [0] : vector<16x2x64xf32> to vector<2x64xf32>
    %c0_218 = arith.constant 0 : index
    %c0_219 = arith.constant 0 : index
    %338 = vector.load %arg9[%c0_218, %c0_219] : memref<1x64xf32, #tpu.memory_space<vmem>>, vector<1x64xf32>
    %339 = vector.broadcast %338 : vector<1x64xf32> to vector<2x64xf32>
    %340 = arith.addf %337, %339 : vector<2x64xf32>
    %cst_220 = arith.constant 0.000000e+00 : f32
    %341 = vector.broadcast %cst_220 : f32 to vector<2x64xf32>
    %342 = arith.maximumf %340, %341 : vector<2x64xf32>
    %c0_221 = arith.constant 0 : index
    %c0_222 = arith.constant 0 : index
    %343 = vector.load %arg10[%c0_221, %c0_222] : memref<64x64xf32, #tpu.memory_space<vmem>>, vector<64x64xf32>
    %cst_223 = arith.constant dense<0.000000e+00> : vector<2x64xf32>
    %344 = tpu.matmul %342, %343, %cst_223 {dimension_numbers = #tpu.dot_dimension_numbers<[1], [0], [0], [1], [0, 0, 1, 1], [], []>} : vector<2x64xf32>, vector<64x64xf32>, vector<2x64xf32> -> vector<2x64xf32>
    %c0_224 = arith.constant 0 : index
    %c0_225 = arith.constant 0 : index
    %345 = vector.load %arg11[%c0_224, %c0_225] : memref<1x64xf32, #tpu.memory_space<vmem>>, vector<1x64xf32>
    %346 = vector.broadcast %345 : vector<1x64xf32> to vector<2x64xf32>
    %347 = arith.addf %344, %346 : vector<2x64xf32>
    %cst_226 = arith.constant 0.000000e+00 : f32
    %348 = vector.broadcast %cst_226 : f32 to vector<2x64xf32>
    %349 = arith.maximumf %347, %348 : vector<2x64xf32>
    %c0_227 = arith.constant 0 : index
    %c0_228 = arith.constant 0 : index
    %350 = vector.load %arg12[%c0_227, %c0_228] : memref<64x1xf32, #tpu.memory_space<vmem>>, vector<64x1xf32>
    %cst_229 = arith.constant dense<0.000000e+00> : vector<2x1xf32>
    %351 = tpu.matmul %349, %350, %cst_229 {dimension_numbers = #tpu.dot_dimension_numbers<[1], [0], [0], [1], [0, 0, 1, 1], [], []>} : vector<2x64xf32>, vector<64x1xf32>, vector<2x1xf32> -> vector<2x1xf32>
    %c0_230 = arith.constant 0 : index
    %c0_231 = arith.constant 0 : index
    %352 = vector.load %arg13[%c0_230, %c0_231] : memref<1x1xf32, #tpu.memory_space<vmem>>, vector<1x1xf32>
    %353 = vector.broadcast %352 : vector<1x1xf32> to vector<2x1xf32>
    %354 = arith.addf %351, %353 : vector<2x1xf32>
    %c0_232 = arith.constant 0 : index
    %c0_233 = arith.constant 0 : index
    %355 = vector.load %arg14[%c0_232, %c0_233] : memref<2x1xf32, #tpu.memory_space<vmem>>, vector<2x1xf32>
    tpu.vector_store %arg14[%c0_232, %c0_233], %354 {strides = array<i32>} : memref<2x1xf32, #tpu.memory_space<vmem>>, vector<2x1xf32>,
    return
  }
}

</mosaic_0001>

<bundles_post_ra>
// kernel: tile.9
= control target key start
LH: loop header
LB: loop body
LE: loop exit
PB: predicated region body
PF: predicated region fallthrough
CT: control target
= control target key end

     0   :  { %vm23_vm0 = vcmask 375808   ;;  %vm13_vm1 = vcmask 670720   ;;  %s75_s10 = smov 82   ;;  %vm27_vm2 = vcmask 293888   ;;  %vm30_vm3 = vcmask 1048208   ;;  %s106_s0 = inlined_call_operand.vmem [shape: f32[2,210], index: 0, kind: input, shape index: {}]   ;;  %s107_s1 = inlined_call_operand.vmem [shape: f32[1,420], index: 1, kind: output, shape index: {}]  }
   0x1   :  { %v70_v0 = vld [vmem:[%s106_s0 + $0x2] sm:$0x3]  ;;  %v9_v1 = vld [vmem:[%s106_s0] sm:$0x3]  ;;  %s21_s0 = smov 3 }
   0x2   :  { %8 = vst [vmem:[#allocation1 + $0x8] sm:$0x3] %v70_v0  ;;  %10 = vst [vmem:[#allocation1] sm:$0x3] %v9_v1 }
   0x9   :  { %v19_v2 = vld [vmem:[#allocation1 + $0x9] sm:$0x1]   ;;  %v16_v4 = vld [vmem:[#allocation1] sm:$0x1]   ;;  %v12_v6 = vld [vmem:[#allocation1 + $0x8] sm:$0x1]  }
   0xa   :  { %v22_v3 = vld [vmem:[#allocation1 + $0x1] ss:$8 sm:%s21_s0]   ;;  %17 = vst [vmem:[#allocation0] sm:$0x1] %v16_v4   ;;  %15 = vst.msk [vmem:[#allocation0 + $0x8] sm:$0x1] %vm13_vm1, %v12_v6  }
   0xb   :  { %v24_v5 = vsel %vm23_vm0, %v22_v3, %v19_v2  ;;  %v34_v7 = vld [vmem:[#allocation1 + $0x1] sm:$0x1]  }
   0xc   :  { %25 = vrot.lane.b32.xlu0 %v24_v5, %s75_s10 }
  0x10   :  { %35 = vrot.lane.b32.xlu0 %v34_v7, %s75_s10 }
  0x11   :  { %v44_v8 = vld [vmem:[#allocation0] sm:$0x1] }
  0x12   :  { %47 = vst [vmem:[%s107_s1] sm:$0x1] %v44_v8 }
  0x7e   :  { %v26_v9 = vpop.permute.xlu0 %25  }
  0x7f   :  { %29 = vst.msk [vmem:[#allocation0 + $0x18] sm:$0x1] %vm27_vm2, %v26_v9  }
  0x80   :  { %32 = vst.msk [vmem:[#allocation0 + $0x8] ss:$8 sm:$0x3] %vm30_vm3, %v26_v9  }
  0x82   :  { %v36_v10 = vpop.permute.xlu0 %35  }
  0x83   :  { %39 = vst.msk [vmem:[#allocation0 + $0x10] sm:$0x1] %vm13_vm1, %v36_v10  }
  0x86   :  { %v62_v12 = vld [vmem:[#allocation0 + $0x18] sm:$0x1] }
  0x87   :  { %v49_v11 = vld [vmem:[#allocation0 + $0x8] sm:$0x1]  ;;  %73 = vst [vmem:[%s107_s1 + $0x3] sm:$0x1] %v62_v12 }
  0x88   :  { %71 = vst [vmem:[%s107_s1 + $0x1] sm:$0x1] %v49_v11 }
  0x8a   :  { %v55_v13 = vld [vmem:[#allocation0 + $0x10] sm:$0x1] }
  0x8b   :  { %72 = vst [vmem:[%s107_s1 + $0x2] sm:$0x1] %v55_v13 }

// kernel: tile.8
= control target key start
LH: loop header
LB: loop body
LE: loop exit
PB: predicated region body
PF: predicated region fallthrough
CT: control target
= control target key end

     0   :  { %s34_s0 = inlined_call_operand.vmem [shape: f32[210], index: 0, kind: input, shape index: {}]   ;;  %s35_s1 = inlined_call_operand.vmem [shape: f32[2,210], index: 1, kind: output, shape index: {}]  }
   0x1   :  { %v4_v0 = vld [vmem:[%s34_s0] ss:$0 sm:$0xff]  ;;  %v10_v1 = vld [vmem:[%s34_s0 + $0x1] ss:$0 sm:$0xff] }
   0x2   :  { %5 = vst [vmem:[%s35_s1] sm:$0x3] %v4_v0  ;;  %11 = vst [vmem:[%s35_s1 + $0x2] sm:$0x3] %v10_v1 }

// kernel: dqn_forward.1
= control target key start
LH: loop header
LB: loop body
LE: loop exit
PB: predicated region body
PF: predicated region fallthrough
CT: control target
= control target key end

     0   :  { %v6888_v0 = vmov 1   ;;  %v6889_v2 = vmov 3   ;;  %v6890_v3 = vmov 2   ;;  %v6891_v4 = vmov 4   ;;  %s6914_s16 = smov 126   ;;  %s6915_s17 = smov 125   ;;  %s9407_s2 = inlined_call_operand.vmem [shape: f32[8,25], index: 2, kind: input, shape index: {}]   ;;  %s9408_s0 = inlined_call_operand.vmem [shape: f32[1,512], index: 0, kind: input, shape index: {}]   ;;  %s9409_s1 = inlined_call_operand.vmem [shape: f32[1,420], index: 1, kind: input, shape index: {}]   ;;  %s9410_s5 = inlined_call_operand.vmem [shape: f32[16,200], index: 5, kind: input, shape index: {}]   ;;  %s9411_s3 = inlined_call_operand.vmem [shape: f32[8,1], index: 3, kind: input, shape index: {}]   ;;  %s9412_s4 = inlined_call_operand.vmem [shape: f32[8,1], index: 4, kind: input, shape index: {}]   ;;  %s9413_s6 = inlined_call_operand.vmem [shape: f32[16,1,1], index: 6, kind: input, shape index: {}]   ;;  %s9414_s7 = inlined_call_operand.vmem [shape: f32[16,1,1], index: 7, kind: input, shape index: {}]   ;;  %s9415_s8 = inlined_call_operand.vmem [shape: f32[16,26,64], index: 8, kind: input, shape index: {}]   ;;  %s9416_s10 = inlined_call_operand.vmem [shape: f32[64,64], index: 10, kind: input, shape index: {}]   ;;  %s9417_s12 = inlined_call_operand.vmem [shape: f32[64,1], index: 12, kind: input, shape index: {}]   ;;  %s9418_s9 = inlined_call_operand.vmem [shape: f32[1,64], index: 9, kind: input, shape index: {}]   ;;  %s9419_s13 = inlined_call_operand.<no memory space> [shape: f32[1,1], index: 13, kind: input, shape index: {}]   ;;  %s9420_s11 = inlined_call_operand.vmem [shape: f32[1,64], index: 11, kind: input, shape index: {}]   ;;  %s9421_s14 = inlined_call_operand.vmem [shape: f32[2,1], index: 14, kind: output, shape index: {}]  }
   0x1   :  { %6812 = vset.pattern.permute.xlu0 %v6888_v0  ;;  %v7032_v1 = vld [vmem:[%s9407_s2] sm:$0xff]  ;;  %6814 = vset.pattern.permute.xlu1 %v6889_v2  ;;  %v6892_v5 = vmov 5   ;;  %v6893_v6 = vmov 6   ;;  %v6894_v7 = vmov 7   ;;  %v6895_v8 = vmov 9   ;;  %s6916_s18 = smov 124  }
   0x2   :  { %86 = vperm.xlu0 %6812, %v7032_v1   ;;  %150 = vperm.xlu1 %6814, %v7032_v1   ;;  %v6896_v9 = vmov 8   ;;  %v6897_v10 = vmov 12   ;;  %v6898_v11 = vmov 10   ;;  %v6899_v12 = vmov 15   ;;  %v50_v30 = vld [vmem:[%s9408_s0] sm:$0xf] }
   0x3   :  { %v6900_v13 = vmov 11   ;;  %v6901_v14 = vmov 18   ;;  %v6902_v15 = vmov 13   ;;  %v6903_v16 = vmov 21   ;;  %s6913_s0 = smov 127   ;;  %s6917_s19 = smov 107  }
   0x4   :  { %v6904_v17 = vmov 14   ;;  %v6905_v18 = vmov 24   ;;  %v6906_v19 = vmov 16   ;;  %v6907_v20 = vmov 0   ;;  %s9488_s20 = smov 106   ;;  %s9484_s21 = smov 105  }
   0x5   :  { %v6908_v21 = vmov 17   ;;  %v6909_v22 = vmov 19   ;;  %v6910_v23 = vmov 20   ;;  %v6911_v24 = vmov 22   ;;  %s6920_s22 = smov 104   ;;  %s9482_s23 = smov 103  }
   0x6   :  { %6813 = vset.pattern.permute.xlu0 %v6890_v3  ;;  %6815 = vset.pattern.permute.xlu1 %v6891_v4  ;;  %v6912_v25 = vmov 23   ;;  %v57_v26 = vlaneseq  ;;  %s9480_s24 = smov 86   ;;  %s9478_s25 = smov 85   ;;  %vm105_vm0 = vcmask 1039360   ;;  %vm137_vm1 = vcmask 1031168  }
   0x7   :  { %118 = vperm.xlu0 %6813, %v7032_v1   ;;  %182 = vperm.xlu1 %6815, %v7032_v1   ;;  %s9476_s26 = smov 84   ;;  %s9474_s27 = smov 83   ;;  %vm169_vm2 = vcmask 1022976   ;;  %vm201_vm3 = vcmask 1014784   ;;  %vm233_vm4 = vcmask 875520   ;;  %vm265_vm5 = vcmask 867328  }
   0x8   :  { %v7059_v27 = vshrl.u32 %v57_v26, 7  ;;  %s9472_s28 = smov 82   ;;  %s9469_s29 = smov 65   ;;  %vm297_vm6 = vcmask 859136   ;;  %vm329_vm7 = vcmask 850944   ;;  %vm361_vm8 = vcmask 842752  }
   0x9   :  { %s9486_s30 = smov 64   ;;  %s9422_s2 = smov 63   ;;  %vm393_vm9 = vcmask 703488   ;;  %vm425_vm10 = vcmask 695296   ;;  %vm9459_vm11 = vcmask 687104   ;;  %vm9460_vm12 = vcmask 678912  }
   0xa   :  { %9493 = vst [vmem:[#allocation5_spill] sm:$0xff] %v7059_v27  ;;  %v7062_v28 = vsub.s32 0, %v7059_v27  ;;  %v9436_v29 = vsub.s32 1, %v7059_v27  ;;  %v9435_v33 = vsub.s32 3, %v7059_v27  ;;  %v9434_v34 = vsub.s32 2, %v7059_v27  ;;  %s9424_s15 = smov 62  }
   0xb   :  { %6816 = vset.pattern.permute.xlu1 %v6892_v5  ;;  %6817 = vset.pattern.permute.xlu0 %v6893_v6  ;;  %vm9461_vm13 = vcmask 670720   ;;  %vm9462_vm14 = vcmask 531456   ;;  %vm9463_vm15 = vcmask 523264  }
   0xc   :  { %214 = vperm.xlu1 %6816, %v7032_v1   ;;  %246 = vperm.xlu0 %6817, %v7032_v1   ;;  %9494 = vst [vmem:[#allocation6_spill] sm:$0xff] %v7062_v28  ;;  %v7070_v31 = vrot.slane %v50_v30, %v9436_v29  ;;  %v7073_v32 = vrot.slane %v50_v30, %v7062_v28 }
   0xd   :  { %v7081_v38 = vrot.slane %v50_v30, %v9435_v33  ;;  %v7085_v39 = vrot.slane %v50_v30, %v9434_v34 }
  0x10   :  { %6818 = vset.pattern.permute.xlu1 %v6894_v7  ;;  %6820 = vset.pattern.permute.xlu0 %v6895_v8 }
  0x11   :  { %278 = vperm.xlu1 %6818, %v7032_v1   ;;  %342 = vperm.xlu0 %6820, %v7032_v1  }
  0x15   :  { %6819 = vset.pattern.permute.xlu1 %v6896_v9  ;;  %6823 = vset.pattern.permute.xlu0 %v6897_v10 }
  0x16   :  { %310 = vperm.xlu1 %6819, %v7032_v1   ;;  %438 = vperm.xlu0 %6823, %v7032_v1  }
  0x1a   :  { %6821 = vset.pattern.permute.xlu1 %v6898_v11  ;;  %6826 = vset.pattern.permute.xlu0 %v6899_v12 }
  0x1b   :  { %374 = vperm.xlu1 %6821, %v7032_v1   ;;  %534 = vperm.xlu0 %6826, %v7032_v1  }
  0x1f   :  { %6822 = vset.pattern.permute.xlu1 %v6900_v13  ;;  %6829 = vset.pattern.permute.xlu0 %v6901_v14 }
  0x20   :  { %406 = vperm.xlu1 %6822, %v7032_v1   ;;  %630 = vperm.xlu0 %6829, %v7032_v1  }
  0x24   :  { %6824 = vset.pattern.permute.xlu1 %v6902_v15  ;;  %6832 = vset.pattern.permute.xlu0 %v6903_v16 }
  0x25   :  { %470 = vperm.xlu1 %6824, %v7032_v1   ;;  %726 = vperm.xlu0 %6832, %v7032_v1  }
  0x29   :  { %6825 = vset.pattern.permute.xlu1 %v6904_v17  ;;  %6835 = vset.pattern.permute.xlu0 %v6905_v18 }
  0x2a   :  { %502 = vperm.xlu1 %6825, %v7032_v1   ;;  %822 = vperm.xlu0 %6835, %v7032_v1  }
  0x2e   :  { %6827 = vset.pattern.permute.xlu1 %v6906_v19  ;;  %6837 = vset.pattern.permute.xlu0 %v6907_v20 }
  0x2f   :  { %566 = vperm.xlu1 %6827, %v7032_v1  }
  0x33   :  { %6828 = vset.pattern.permute.xlu1 %v6908_v21 }
  0x34   :  { %598 = vperm.xlu1 %6828, %v7032_v1  }
  0x38   :  { %6830 = vset.pattern.permute.xlu1 %v6909_v22 }
  0x39   :  { %662 = vperm.xlu1 %6830, %v7032_v1  }
  0x3d   :  { %6831 = vset.pattern.permute.xlu1 %v6910_v23 }
  0x3e   :  { %694 = vperm.xlu1 %6831, %v7032_v1  }
  0x42   :  { %6833 = vset.pattern.permute.xlu1 %v6911_v24 }
  0x43   :  { %758 = vperm.xlu1 %6833, %v7032_v1  }
  0x47   :  { %6834 = vset.pattern.permute.xlu1 %v6912_v25 }
  0x48   :  { %790 = vperm.xlu1 %6834, %v7032_v1  }
  0x4c   :  { %6836 = vset.pattern.permute.xlu1 %v6907_v20 }
  0x4d   :  { %53 = vperm.xlu1 %6836, %v7032_v1  }
  0x7d   :  { %v87_v35 = vpop.permute.xlu0 %86  ;;  %v151_v45 = vpop.permute.xlu1 %150 }
  0x7e   :  { %v90_v36 = vmul.f32 %v87_v35, %v7070_v31  ;;  %v89_v37 = vmul.f32 %v87_v35, %v7073_v32  ;;  %v92_v40 = vmul.f32 %v87_v35, %v7081_v38  ;;  %v91_v41 = vmul.f32 %v87_v35, %v7085_v39 }
  0x7f   :  { %v154_v48 = vmul.f32 %v151_v45, %v7070_v31  ;;  %v153_v49 = vmul.f32 %v151_v45, %v7073_v32  ;;  %v156_v51 = vmul.f32 %v151_v45, %v7081_v38  ;;  %v155_v52 = vmul.f32 %v151_v45, %v7085_v39 }
  0x80   :  { %99 = vrot.lane.b32.xlu0 %v90_v36, %s6913_s0  ;;  %97 = vrot.lane.b32.xlu1 %v89_v37, %s6913_s0 }
  0x82   :  { %v119_v42 = vpop.permute.xlu0 %118  ;;  %v183_v50 = vpop.permute.xlu1 %182 }
  0x83   :  { %v122_v43 = vmul.f32 %v119_v42, %v7070_v31  ;;  %v121_v44 = vmul.f32 %v119_v42, %v7073_v32  ;;  %v124_v46 = vmul.f32 %v119_v42, %v7081_v38  ;;  %v123_v47 = vmul.f32 %v119_v42, %v7085_v39 }
  0x84   :  { %103 = vrot.lane.b32.xlu0 %v92_v40, %s6913_s0  ;;  %101 = vrot.lane.b32.xlu1 %v91_v41, %s6913_s0  ;;  %v186_v53 = vmul.f32 %v183_v50, %v7070_v31  ;;  %v185_v54 = vmul.f32 %v183_v50, %v7073_v32  ;;  %v188_v56 = vmul.f32 %v183_v50, %v7081_v38 }
  0x85   :  { %v187_v57 = vmul.f32 %v183_v50, %v7085_v39 }
  0x87   :  { %v215_v55 = vpop.permute.xlu1 %214  ;;  %v247_v60 = vpop.permute.xlu0 %246 }
  0x88   :  { %131 = vrot.lane.b32.xlu0 %v122_v43, %s6914_s16  ;;  %129 = vrot.lane.b32.xlu1 %v121_v44, %s6914_s16  ;;  %v218_v58 = vmul.f32 %v215_v55, %v7070_v31  ;;  %v217_v59 = vmul.f32 %v215_v55, %v7073_v32  ;;  %v220_v61 = vmul.f32 %v215_v55, %v7081_v38 }
  0x89   :  { %v219_v62 = vmul.f32 %v215_v55, %v7085_v39  ;;  %v250_v63 = vmul.f32 %v247_v60, %v7070_v31  ;;  %v249_v0 = vmul.f32 %v247_v60, %v7073_v32  ;;  %v252_v2 = vmul.f32 %v247_v60, %v7081_v38 }
  0x8a   :  { %v251_v3 = vmul.f32 %v247_v60, %v7085_v39 }
  0x8c   :  { %135 = vrot.lane.b32.xlu0 %v124_v46, %s6914_s16  ;;  %133 = vrot.lane.b32.xlu1 %v123_v47, %s6914_s16  ;;  %v279_v1 = vpop.permute.xlu1 %278  ;;  %v343_v13 = vpop.permute.xlu0 %342 }
  0x8d   :  { %v282_v4 = vmul.f32 %v279_v1, %v7070_v31  ;;  %v281_v5 = vmul.f32 %v279_v1, %v7073_v32  ;;  %v284_v8 = vmul.f32 %v279_v1, %v7081_v38  ;;  %v283_v9 = vmul.f32 %v279_v1, %v7085_v39 }
  0x8e   :  { %v346_v16 = vmul.f32 %v343_v13, %v7070_v31  ;;  %v345_v17 = vmul.f32 %v343_v13, %v7073_v32  ;;  %v348_v19 = vmul.f32 %v343_v13, %v7081_v38  ;;  %v347_v20 = vmul.f32 %v343_v13, %v7085_v39 }
  0x90   :  { %163 = vrot.lane.b32.xlu0 %v154_v48, %s6915_s17  ;;  %161 = vrot.lane.b32.xlu1 %v153_v49, %s6915_s17 }
  0x91   :  { %v311_v6 = vpop.permute.xlu1 %310  ;;  %v439_v37 = vpop.permute.xlu0 %438 }
  0x92   :  { %v314_v10 = vmul.f32 %v311_v6, %v7070_v31  ;;  %v313_v11 = vmul.f32 %v311_v6, %v7073_v32  ;;  %v316_v14 = vmul.f32 %v311_v6, %v7081_v38  ;;  %v315_v15 = vmul.f32 %v311_v6, %v7085_v39 }
  0x93   :  { %v442_v42 = vmul.f32 %v439_v37, %v7070_v31  ;;  %v441_v43 = vmul.f32 %v439_v37, %v7073_v32  ;;  %v444_v45 = vmul.f32 %v439_v37, %v7081_v38  ;;  %v443_v46 = vmul.f32 %v439_v37, %v7085_v39 }
  0x94   :  { %167 = vrot.lane.b32.xlu0 %v156_v51, %s6915_s17  ;;  %165 = vrot.lane.b32.xlu1 %v155_v52, %s6915_s17 }
  0x96   :  { %v375_v7 = vpop.permute.xlu1 %374  ;;  %v535_v48 = vpop.permute.xlu0 %534 }
  0x97   :  { %v378_v22 = vmul.f32 %v375_v7, %v7070_v31  ;;  %v377_v23 = vmul.f32 %v375_v7, %v7073_v32  ;;  %v380_v25 = vmul.f32 %v375_v7, %v7081_v38  ;;  %v379_v26 = vmul.f32 %v375_v7, %v7085_v39 }
  0x98   :  { %195 = vrot.lane.b32.xlu0 %v186_v53, %s6916_s18  ;;  %193 = vrot.lane.b32.xlu1 %v185_v54, %s6916_s18 }
  0x9b   :  { %v407_v12 = vpop.permute.xlu1 %406  ;;  %v7195_v52 = vpop.permute.xlu0 %630 }
  0x9c   :  { %199 = vrot.lane.b32.xlu0 %v188_v56, %s6916_s18  ;;  %197 = vrot.lane.b32.xlu1 %v187_v57, %s6916_s18  ;;  %v410_v30 = vmul.f32 %v407_v12, %v7070_v31  ;;  %v409_v35 = vmul.f32 %v407_v12, %v7073_v32  ;;  %v412_v40 = vmul.f32 %v407_v12, %v7081_v38 }
  0x9d   :  { %v411_v41 = vmul.f32 %v407_v12, %v7085_v39 }
  0xa0   :  { %227 = vrot.lane.b32.xlu0 %v218_v58, %s6917_s19  ;;  %225 = vrot.lane.b32.xlu1 %v217_v59, %s6917_s19  ;;  %v471_v18 = vpop.permute.xlu1 %470  ;;  %v7205_v58 = vpop.permute.xlu0 %726 }
  0xa1   :  { %v474_v49 = vmul.f32 %v471_v18, %v7070_v31  ;;  %v473_v50 = vmul.f32 %v471_v18, %v7073_v32  ;;  %v476_v53 = vmul.f32 %v471_v18, %v7081_v38  ;;  %v475_v54 = vmul.f32 %v471_v18, %v7085_v39 }
  0xa4   :  { %231 = vrot.lane.b32.xlu0 %v220_v61, %s6917_s19  ;;  %229 = vrot.lane.b32.xlu1 %v219_v62, %s6917_s19 }
  0xa5   :  { %v503_v21 = vpop.permute.xlu1 %502  ;;  %v7215_v62 = vpop.permute.xlu0 %822 }
  0xa6   :  { %v506_v55 = vmul.f32 %v503_v21, %v7070_v31  ;;  %v505_v56 = vmul.f32 %v503_v21, %v7073_v32  ;;  %v508_v59 = vmul.f32 %v503_v21, %v7081_v38  ;;  %v507_v60 = vmul.f32 %v503_v21, %v7085_v39 }
  0xa8   :  { %259 = vrot.lane.b32.xlu0 %v250_v63, %s9488_s20  ;;  %257 = vrot.lane.b32.xlu1 %v249_v0, %s9488_s20  ;;  %v538_v63 = vmul.f32 %v535_v48, %v7070_v31  ;;  %v537_v0 = vmul.f32 %v535_v48, %v7073_v32 }
  0xaa   :  { %v7161_v24 = vpop.permute.xlu1 %566 }
  0xab   :  { %v570_v7 = vmul.f32 %v7161_v24, %v7070_v31  ;;  %v571_v12 = vmul.f32 %v7161_v24, %v7085_v39 }
  0xac   :  { %263 = vrot.lane.b32.xlu0 %v252_v2, %s9488_s20  ;;  %261 = vrot.lane.b32.xlu1 %v251_v3, %s9488_s20  ;;  %v540_v3 = vmul.f32 %v535_v48, %v7081_v38  ;;  %s6946_s20 = smov 48  }
  0xaf   :  { %v7169_v36 = vpop.permute.xlu1 %598 }
  0xb0   :  { %291 = vrot.lane.b32.xlu0 %v282_v4, %s9484_s21  ;;  %289 = vrot.lane.b32.xlu1 %v281_v5, %s9484_s21  ;;  %v539_v4 = vmul.f32 %v535_v48, %v7085_v39 }
  0xb4   :  { %295 = vrot.lane.b32.xlu0 %v284_v8, %s9484_s21  ;;  %293 = vrot.lane.b32.xlu1 %v283_v9, %s9484_s21  ;;  %v7179_v44 = vpop.permute.xlu1 %662  ;;  %v569_v8 = vmul.f32 %v7161_v24, %v7073_v32 }
  0xb8   :  { %323 = vrot.lane.b32.xlu0 %v314_v10, %s6920_s22  ;;  %321 = vrot.lane.b32.xlu1 %v313_v11, %s6920_s22  ;;  %v572_v11 = vmul.f32 %v7161_v24, %v7081_v38  ;;  %v633_v24 = vmul.f32 %v7195_v52, %v7073_v32 }
  0xb9   :  { %v7185_v47 = vpop.permute.xlu1 %694 }
  0xbc   :  { %327 = vrot.lane.b32.xlu0 %v316_v14, %s6920_s22  ;;  %325 = vrot.lane.b32.xlu1 %v315_v15, %s6920_s22  ;;  %v602_v15 = vmul.f32 %v7169_v36, %v7070_v31 }
  0xbe   :  { %v7193_v51 = vpop.permute.xlu1 %758 }
  0xc0   :  { %355 = vrot.lane.b32.xlu0 %v346_v16, %s9482_s23  ;;  %353 = vrot.lane.b32.xlu1 %v345_v17, %s9482_s23  ;;  %v601_v16 = vmul.f32 %v7169_v36, %v7073_v32 }
  0xc3   :  { %v7203_v57 = vpop.permute.xlu1 %790 }
  0xc4   :  { %359 = vrot.lane.b32.xlu0 %v348_v19, %s9482_s23  ;;  %357 = vrot.lane.b32.xlu1 %v347_v20, %s9482_s23  ;;  %v604_v19 = vmul.f32 %v7169_v36, %v7081_v38  ;;  %v603_v20 = vmul.f32 %v7169_v36, %v7085_v39  ;;  %s9553_s23 = smov 62  }
  0xc8   :  { %387 = vrot.lane.b32.xlu0 %v378_v22, %s9480_s24  ;;  %385 = vrot.lane.b32.xlu1 %v377_v23, %s9480_s24  ;;  %v7213_v61 = vpop.permute.xlu1 %53  ;;  %v634_v23 = vmul.f32 %v7195_v52, %v7070_v31 }
  0xcc   :  { %391 = vrot.lane.b32.xlu0 %v380_v25, %s9480_s24  ;;  %389 = vrot.lane.b32.xlu1 %v379_v26, %s9480_s24  ;;  %s6944_s24 = smov 24  }
  0xd0   :  { %419 = vrot.lane.b32.xlu0 %v410_v30, %s9478_s25  ;;  %417 = vrot.lane.b32.xlu1 %v409_v35, %s9478_s25  ;;  %v636_v30 = vmul.f32 %v7195_v52, %v7081_v38  ;;  %v635_v35 = vmul.f32 %v7195_v52, %v7085_v39  ;;  %v697_v52 = vmul.f32 %v7185_v47, %v7073_v32 }
  0xd4   :  { %423 = vrot.lane.b32.xlu0 %v412_v40, %s9478_s25  ;;  %421 = vrot.lane.b32.xlu1 %v411_v41, %s9478_s25  ;;  %v666_v40 = vmul.f32 %v7179_v44, %v7070_v31  ;;  %v665_v41 = vmul.f32 %v7179_v44, %v7073_v32  ;;  %s6943_s25 = smov 80  }
  0xd8   :  { %451 = vrot.lane.b32.xlu0 %v442_v42, %s9476_s26  ;;  %449 = vrot.lane.b32.xlu1 %v441_v43, %s9476_s26 }
  0xdc   :  { %455 = vrot.lane.b32.xlu0 %v444_v45, %s9476_s26  ;;  %453 = vrot.lane.b32.xlu1 %v443_v46, %s9476_s26  ;;  %v668_v45 = vmul.f32 %v7179_v44, %v7081_v38  ;;  %v667_v46 = vmul.f32 %v7179_v44, %v7085_v39  ;;  %s6938_s26 = smov 112  }
  0xe0   :  { %483 = vrot.lane.b32.xlu0 %v474_v49, %s9474_s27  ;;  %481 = vrot.lane.b32.xlu1 %v473_v50, %s9474_s27  ;;  %v698_v50 = vmul.f32 %v7185_v47, %v7070_v31 }
  0xe4   :  { %487 = vrot.lane.b32.xlu0 %v476_v53, %s9474_s27  ;;  %485 = vrot.lane.b32.xlu1 %v475_v54, %s9474_s27  ;;  %v700_v54 = vmul.f32 %v7185_v47, %v7081_v38  ;;  %s6940_s27 = smov 88  }
  0xe8   :  { %515 = vrot.lane.b32.xlu0 %v506_v55, %s9472_s28  ;;  %513 = vrot.lane.b32.xlu1 %v505_v56, %s9472_s28  ;;  %v699_v55 = vmul.f32 %v7185_v47, %v7085_v39 }
  0xec   :  { %519 = vrot.lane.b32.xlu0 %v508_v59, %s9472_s28  ;;  %517 = vrot.lane.b32.xlu1 %v507_v60, %s9472_s28  ;;  %v730_v60 = vmul.f32 %v7205_v58, %v7070_v31  ;;  %s6941_s28 = smov 72  }
  0xf0   :  { %547 = vrot.lane.b32.xlu0 %v538_v63, %s9469_s29  ;;  %545 = vrot.lane.b32.xlu1 %v537_v0, %s9469_s29  ;;  %v729_v63 = vmul.f32 %v7205_v58, %v7073_v32 }
  0xf2   :  { %v7221_v1 = vpop.permute.xlu0 %99  ;;  %v7223_v2 = vpop.permute.xlu1 %97 }
  0xf4   :  { %551 = vrot.lane.b32.xlu0 %v540_v3, %s9469_s29  ;;  %549 = vrot.lane.b32.xlu1 %v539_v4, %s9469_s29  ;;  %v732_v3 = vmul.f32 %v7205_v58, %v7081_v38  ;;  %v731_v4 = vmul.f32 %v7205_v58, %v7085_v39  ;;  %s6942_s29 = smov 56  }
  0xf6   :  { %v7229_v5 = vpop.permute.xlu0 %103  ;;  %v7231_v6 = vpop.permute.xlu1 %101 }
  0xf8   :  { %579 = vrot.lane.b32.xlu0 %v570_v7, %s9486_s30  ;;  %577 = vrot.lane.b32.xlu1 %v569_v8, %s9486_s30 }
  0xfa   :  { %v7239_v9 = vpop.permute.xlu0 %131  ;;  %v7241_v10 = vpop.permute.xlu1 %129 }
  0xfc   :  { %583 = vrot.lane.b32.xlu0 %v572_v11, %s9486_s30  ;;  %581 = vrot.lane.b32.xlu1 %v571_v12, %s9486_s30  ;;  %v762_v11 = vmul.f32 %v7193_v51, %v7070_v31  ;;  %v761_v12 = vmul.f32 %v7193_v51, %v7073_v32 }
  0xfe   :  { %v7249_v13 = vpop.permute.xlu0 %135  ;;  %v7251_v14 = vpop.permute.xlu1 %133 }
 0x100   :  { %611 = vrot.lane.b32.xlu0 %v602_v15, %s9422_s2  ;;  %609 = vrot.lane.b32.xlu1 %v601_v16, %s9422_s2  ;;  %v764_v16 = vmul.f32 %v7193_v51, %v7081_v38 }
 0x102   :  { %v7259_v17 = vpop.permute.xlu0 %163  ;;  %v7261_v18 = vpop.permute.xlu1 %161 }
 0x104   :  { %615 = vrot.lane.b32.xlu0 %v604_v19, %s9422_s2  ;;  %613 = vrot.lane.b32.xlu1 %v603_v20, %s9422_s2  ;;  %s9426_s2 = smov 61   ;;  %v763_v19 = vmul.f32 %v7193_v51, %v7085_v39 }
 0x106   :  { %v7269_v21 = vpop.permute.xlu0 %167  ;;  %v7271_v22 = vpop.permute.xlu1 %165 }
 0x108   :  { %643 = vrot.lane.b32.xlu0 %v634_v23, %s9424_s15  ;;  %641 = vrot.lane.b32.xlu1 %v633_v24, %s9424_s15  ;;  %v794_v24 = vmul.f32 %v7203_v57, %v7070_v31 }
 0x10a   :  { %v7279_v25 = vpop.permute.xlu0 %195  ;;  %v7281_v26 = vpop.permute.xlu1 %193 }
 0x10c   :  { %647 = vrot.lane.b32.xlu0 %v636_v30, %s9424_s15  ;;  %645 = vrot.lane.b32.xlu1 %v635_v35, %s9424_s15  ;;  %s9428_s15 = smov 44   ;;  %v793_v30 = vmul.f32 %v7203_v57, %v7073_v32 }
 0x10e   :  { %v7289_v36 = vpop.permute.xlu0 %199  ;;  %v7291_v37 = vpop.permute.xlu1 %197 }
 0x110   :  { %675 = vrot.lane.b32.xlu0 %v666_v40, %s9426_s2  ;;  %673 = vrot.lane.b32.xlu1 %v665_v41, %s9426_s2  ;;  %v796_v40 = vmul.f32 %v7203_v57, %v7081_v38  ;;  %v795_v41 = vmul.f32 %v7203_v57, %v7085_v39 }
 0x112   :  { %v7299_v42 = vpop.permute.xlu0 %227  ;;  %v7301_v43 = vpop.permute.xlu1 %225 }
 0x114   :  { %679 = vrot.lane.b32.xlu0 %v668_v45, %s9426_s2  ;;  %677 = vrot.lane.b32.xlu1 %v667_v46, %s9426_s2  ;;  %s9430_s2 = smov 43  }
 0x116   :  { %v7309_v48 = vpop.permute.xlu0 %231  ;;  %v7311_v49 = vpop.permute.xlu1 %229 }
 0x118   :  { %707 = vrot.lane.b32.xlu0 %v698_v50, %s9428_s15  ;;  %705 = vrot.lane.b32.xlu1 %v697_v52, %s9428_s15  ;;  %v826_v50 = vmul.f32 %v7215_v62, %v7070_v31  ;;  %v825_v52 = vmul.f32 %v7215_v62, %v7073_v32 }
 0x11a   :  { %v7319_v44 = vpop.permute.xlu0 %259  ;;  %v7321_v53 = vpop.permute.xlu1 %257 }
 0x11c   :  { %711 = vrot.lane.b32.xlu0 %v700_v54, %s9428_s15  ;;  %709 = vrot.lane.b32.xlu1 %v699_v55, %s9428_s15  ;;  %s9432_s15 = smov 42   ;;  %v828_v55 = vmul.f32 %v7215_v62, %v7081_v38 }
 0x11e   :  { %v7329_v56 = vpop.permute.xlu0 %263  ;;  %v7331_v59 = vpop.permute.xlu1 %261 }
 0x120   :  { %739 = vrot.lane.b32.xlu0 %v730_v60, %s9430_s2  ;;  %737 = vrot.lane.b32.xlu1 %v729_v63, %s9430_s2  ;;  %v827_v60 = vmul.f32 %v7215_v62, %v7085_v39 }
 0x122   :  { %v7339_v47 = vpop.permute.xlu0 %291  ;;  %v7341_v0 = vpop.permute.xlu1 %289 }
 0x124   :  { %743 = vrot.lane.b32.xlu0 %v732_v3, %s9430_s2  ;;  %741 = vrot.lane.b32.xlu1 %v731_v4, %s9430_s2  ;;  %s9467_s2 = smov 41  }
 0x126   :  { %v7349_v7 = vpop.permute.xlu0 %295  ;;  %v7351_v8 = vpop.permute.xlu1 %293 }
 0x128   :  { %771 = vrot.lane.b32.xlu0 %v762_v11, %s9432_s15  ;;  %769 = vrot.lane.b32.xlu1 %v761_v12, %s9432_s15 }
 0x12a   :  { %v7359_v58 = vpop.permute.xlu0 %323  ;;  %v7361_v15 = vpop.permute.xlu1 %321 }
 0x12c   :  { %775 = vrot.lane.b32.xlu0 %v764_v16, %s9432_s15  ;;  %773 = vrot.lane.b32.xlu1 %v763_v19, %s9432_s15  ;;  %s6936_s15 = smov 40  }
 0x12e   :  { %v7369_v20 = vpop.permute.xlu0 %327  ;;  %v7371_v23 = vpop.permute.xlu1 %325 }
 0x130   :  { %803 = vrot.lane.b32.xlu0 %v794_v24, %s9467_s2  ;;  %801 = vrot.lane.b32.xlu1 %v793_v30, %s9467_s2 }
 0x132   :  { %v7379_v51 = vpop.permute.xlu0 %355  ;;  %v7381_v35 = vpop.permute.xlu1 %353 }
 0x134   :  { %807 = vrot.lane.b32.xlu0 %v796_v40, %s9467_s2  ;;  %805 = vrot.lane.b32.xlu1 %v795_v41, %s9467_s2  ;;  %s6937_s2 = smov 120  }
 0x136   :  { %v7389_v45 = vpop.permute.xlu0 %359  ;;  %v7391_v46 = vpop.permute.xlu1 %357 }
 0x138   :  { %835 = vrot.lane.b32.xlu0 %v826_v50, %s6936_s15  ;;  %833 = vrot.lane.b32.xlu1 %v825_v52, %s6936_s15 }
 0x13a   :  { %v7399_v57 = vpop.permute.xlu0 %387  ;;  %v7401_v54 = vpop.permute.xlu1 %385 }
 0x13c   :  { %839 = vrot.lane.b32.xlu0 %v828_v55, %s6936_s15  ;;  %837 = vrot.lane.b32.xlu1 %v827_v60, %s6936_s15 }
 0x13e   :  { %v7409_v63 = vpop.permute.xlu0 %391  ;;  %v7411_v3 = vpop.permute.xlu1 %389 }
 0x142   :  { %v7413_v4 = vpop.permute.xlu0 %419  ;;  %v7415_v11 = vpop.permute.xlu1 %417 }
 0x146   :  { %v7417_v12 = vpop.permute.xlu0 %423  ;;  %v7419_v16 = vpop.permute.xlu1 %421 }
 0x14a   :  { %v7421_v19 = vpop.permute.xlu0 %451  ;;  %v7423_v24 = vpop.permute.xlu1 %449 }
 0x14e   :  { %v7425_v62 = vpop.permute.xlu0 %455  ;;  %v7427_v30 = vpop.permute.xlu1 %453 }
 0x14f   :  { %9495 = vst [vmem:[#allocation7_spill] sm:$0xff] %v7425_v62  ;;  %9496 = vst [vmem:[#allocation8_spill] sm:$0xff] %v7427_v30 }
 0x152   :  { %v7429_v40 = vpop.permute.xlu0 %483  ;;  %v7431_v41 = vpop.permute.xlu1 %481 }
 0x156   :  { %v7433_v50 = vpop.permute.xlu0 %487  ;;  %v7435_v52 = vpop.permute.xlu1 %485 }
 0x157   :  { %9497 = vst [vmem:[#allocation9_spill] sm:$0xff] %v7433_v50  ;;  %9498 = vst [vmem:[#allocation10_spill] sm:$0xff] %v7435_v52 }
 0x15a   :  { %v7437_v55 = vpop.permute.xlu0 %515  ;;  %v7439_v60 = vpop.permute.xlu1 %513 }
 0x15b   :  { %9499 = vst [vmem:[#allocation11_spill] sm:$0xff] %v7437_v55  ;;  %9500 = vst [vmem:[#allocation12_spill] sm:$0xff] %v7439_v60 }
 0x15e   :  { %v7441_v34 = vpop.permute.xlu0 %519  ;;  %v7443_v33 = vpop.permute.xlu1 %517 }
 0x15f   :  { %9501 = vst [vmem:[#allocation13_spill] sm:$0xff] %v7441_v34  ;;  %9502 = vst [vmem:[#allocation14_spill] sm:$0xff] %v7443_v33 }
 0x162   :  { %v7445_v29 = vpop.permute.xlu0 %547  ;;  %v7447_v27 = vpop.permute.xlu1 %545 }
 0x163   :  { %9503 = vst [vmem:[#allocation15_spill] sm:$0xff] %v7445_v29 }
 0x166   :  { %v7449_v28 = vpop.permute.xlu0 %551  ;;  %v7451_v62 = vpop.permute.xlu1 %549 }
 0x167   :  { %9504 = vst [vmem:[#allocation16_spill] sm:$0xff] %v7449_v28  ;;  %9505 = vst [vmem:[#allocation17_spill] sm:$0xff] %v7451_v62 }
 0x16a   :  { %v7453_v30 = vpop.permute.xlu0 %579  ;;  %v7455_v50 = vpop.permute.xlu1 %577 }
 0x16e   :  { %v7457_v52 = vpop.permute.xlu0 %583  ;;  %v7459_v55 = vpop.permute.xlu1 %581 }
 0x16f   :  { %9506 = vst [vmem:[#allocation18_spill] sm:$0xff] %v7457_v52  ;;  %9507 = vst [vmem:[#allocation19_spill] sm:$0xff] %v7459_v55  ;;  %v106_v52 = vsel %vm105_vm0, %v7223_v2, %v7221_v1  ;;  %v77_v55 = vmul.f32 %v7073_v32, %v7213_v61  ;;  %v107_v2 = vsel %vm105_vm0, %v7221_v1, %v7231_v6 }
 0x170   :  { %v108_v32 = vsel %vm105_vm0, %v7231_v6, %v7229_v5  ;;  %v139_v1 = vsel %vm137_vm1, %v7239_v9, %v7251_v14  ;;  %v140_v6 = vsel %vm137_vm1, %v7251_v14, %v7249_v13 }
 0x172   :  { %v7461_v60 = vpop.permute.xlu0 %611  ;;  %v7463_v34 = vpop.permute.xlu1 %609 }
 0x173   :  { %9508 = vst [vmem:[#allocation20_spill] sm:$0xff] %v7461_v60  ;;  %9509 = vst [vmem:[#allocation21_spill] sm:$0xff] %v7463_v34  ;;  %v113_v34 = vadd.f32 %v106_v52, %v77_v55  ;;  %v78_v52 = vmul.f32 %v7070_v31, %v7213_v61  ;;  %v79_v55 = vmul.f32 %v7085_v39, %v7213_v61 }
 0x175   :  { %v114_v31 = vadd.f32 %v107_v2, %v78_v52 }
 0x176   :  { %v7465_v33 = vpop.permute.xlu0 %615  ;;  %v7467_v29 = vpop.permute.xlu1 %613 }
 0x177   :  { %9510 = vst [vmem:[#allocation22_spill] sm:$0xff] %v7465_v33  ;;  %9511 = vst [vmem:[#allocation23_spill] sm:$0xff] %v7467_v29  ;;  %v138_v33 = vsel %vm137_vm1, %v7241_v10, %v7239_v9  ;;  %v170_v10 = vsel %vm169_vm2, %v7261_v18, %v7259_v17  ;;  %v202_v18 = vsel %vm201_vm3, %v7281_v26, %v7279_v25 }
 0x178   :  { %v234_v9 = vsel %vm233_vm4, %v7301_v43, %v7299_v42 }
 0x17a   :  { %v7469_v28 = vpop.permute.xlu0 %643  ;;  %v7471_v62 = vpop.permute.xlu1 %641 }
 0x17b   :  { %9512 = vst [vmem:[#allocation24_spill] sm:$0xff] %v7469_v28  ;;  %9513 = vst [vmem:[#allocation25_spill] sm:$0xff] %v7471_v62  ;;  %v80_v62 = vmul.f32 %v7081_v38, %v7213_v61  ;;  %v171_v61 = vsel %vm169_vm2, %v7259_v17, %v7271_v22  ;;  %v204_v17 = vsel %vm201_vm3, %v7291_v37, %v7289_v36 }
 0x17d   :  { %v116_v38 = vadd.f32 %v7229_v5, %v80_v62  ;;  %v172_v5 = vsel %vm169_vm2, %v7271_v22, %v7269_v21  ;;  %v266_v22 = vsel %vm265_vm5, %v7321_v53, %v7319_v44  ;;  %v298_v53 = vsel %vm297_vm6, %v7341_v0, %v7339_v47 }
 0x17e   :  { %v7481_v29 = vpop.permute.xlu0 %647  ;;  %v7483_v60 = vpop.permute.xlu1 %645 }
 0x17f   :  { %9514 = vst [vmem:[#allocation26_spill] sm:$0xff] %v7481_v29  ;;  %9515 = vst [vmem:[#allocation27_spill] sm:$0xff] %v7483_v60  ;;  %v145_v29 = vadd.f32 %v138_v33, %v113_v34  ;;  %v115_v60 = vadd.f32 %v108_v32, %v79_v55  ;;  %v148_v39 = vadd.f32 %v7249_v13, %v116_v38 }
 0x180   :  { %v203_v13 = vsel %vm201_vm3, %v7279_v25, %v7291_v37  ;;  %v235_v25 = vsel %vm233_vm4, %v7299_v42, %v7311_v49  ;;  %v236_v37 = vsel %vm233_vm4, %v7311_v49, %v7309_v48  ;;  %v268_v42 = vsel %vm265_vm5, %v7331_v59, %v7329_v56 }
 0x181   :  { %v177_v28 = vadd.f32 %v170_v10, %v145_v29  ;;  %v146_v29 = vadd.f32 %v139_v1, %v114_v31  ;;  %v147_v14 = vadd.f32 %v140_v6, %v115_v60  ;;  %v180_v62 = vadd.f32 %v7269_v21, %v148_v39 }
 0x182   :  { %v7510_v33 = vpop.permute.xlu0 %675  ;;  %v7512_v34 = vpop.permute.xlu1 %673  ;;  %v330_v49 = vsel %vm329_vm7, %v7361_v15, %v7359_v58  ;;  %v362_v15 = vsel %vm361_vm8, %v7381_v35, %v7379_v51 }
 0x183   :  { %v209_v26 = vadd.f32 %v202_v18, %v177_v28  ;;  %v178_v2 = vadd.f32 %v171_v61, %v146_v29  ;;  %v179_v43 = vadd.f32 %v172_v5, %v147_v14  ;;  %v212_v21 = vadd.f32 %v7289_v36, %v180_v62 }
 0x184   :  { %v267_v36 = vsel %vm265_vm5, %v7319_v44, %v7331_v59  ;;  %v299_v44 = vsel %vm297_vm6, %v7339_v47, %v7351_v8  ;;  %v300_v59 = vsel %vm297_vm6, %v7351_v8, %v7349_v7  ;;  %v332_v47 = vsel %vm329_vm7, %v7371_v23, %v7369_v20 }
 0x185   :  { %v241_v32 = vadd.f32 %v234_v9, %v209_v26  ;;  %v210_v10 = vadd.f32 %v203_v13, %v178_v2  ;;  %v211_v52 = vadd.f32 %v204_v17, %v179_v43  ;;  %v244_v38 = vadd.f32 %v7309_v48, %v212_v21 }
 0x186   :  { %v7534_v28 = vpop.permute.xlu0 %679  ;;  %v7536_v60 = vpop.permute.xlu1 %677  ;;  %v394_v8 = vsel %vm393_vm9, %v7401_v54, %v7399_v57  ;;  %v426_v54 = vsel %vm425_vm10, %v7415_v11, %v7413_v4 }
 0x187   :  { %v273_v55 = vadd.f32 %v266_v22, %v241_v32  ;;  %v242_v1 = vadd.f32 %v235_v25, %v210_v10  ;;  %v243_v0 = vadd.f32 %v236_v37, %v211_v52  ;;  %v276_v48 = vadd.f32 %v7329_v56, %v244_v38  ;;  %v9517_v38 = vld [vmem:[#allocation7_spill] sm:$0xff] }
 0x188   :  { %v331_v56 = vsel %vm329_vm7, %v7359_v58, %v7371_v23  ;;  %v363_v58 = vsel %vm361_vm8, %v7379_v51, %v7391_v46  ;;  %v364_v23 = vsel %vm361_vm8, %v7391_v46, %v7389_v45  ;;  %v396_v51 = vsel %vm393_vm9, %v7411_v3, %v7409_v63 }
 0x189   :  { %v305_v6 = vadd.f32 %v298_v53, %v273_v55  ;;  %v274_v39 = vadd.f32 %v267_v36, %v242_v1  ;;  %v275_v61 = vadd.f32 %v268_v42, %v243_v0  ;;  %v308_v9 = vadd.f32 %v7349_v7, %v276_v48  ;;  %v9516_v55 = vld [vmem:[#allocation8_spill] sm:$0xff]  ;;  %v9518_v36 = vld [vmem:[#allocation11_spill] sm:$0xff]  ;;  %v9520_v48 = vld [vmem:[#allocation10_spill] sm:$0xff] }
 0x18a   :  { %v7558_v18 = vpop.permute.xlu0 %707  ;;  %v7560_v31 = vpop.permute.xlu1 %705  ;;  %v458_v46 = vsel %vm9459_vm11, %v7423_v24, %v7421_v19  ;;  %v490_v24 = vsel %vm9460_vm12, %v7431_v41, %v7429_v40 }
 0x18b   :  { %v337_v5 = vadd.f32 %v330_v49, %v305_v6  ;;  %v306_v29 = vadd.f32 %v299_v44, %v274_v39  ;;  %v307_v35 = vadd.f32 %v300_v59, %v275_v61  ;;  %v340_v7 = vadd.f32 %v7369_v20, %v308_v9  ;;  %v9521_v44 = vld [vmem:[#allocation9_spill] sm:$0xff] }
 0x18c   :  { %v395_v20 = vsel %vm393_vm9, %v7399_v57, %v7411_v3  ;;  %v427_v57 = vsel %vm425_vm10, %v7413_v4, %v7419_v16  ;;  %v428_v3 = vsel %vm425_vm10, %v7419_v16, %v7417_v12  ;;  %v460_v4 = vsel %vm9459_vm11, %v9516_v55, %v9517_v38  ;;  %v9519_v16 = vld [vmem:[#allocation12_spill] sm:$0xff] }
 0x18d   :  { %v369_v14 = vadd.f32 %v362_v15, %v337_v5  ;;  %v338_v13 = vadd.f32 %v331_v56, %v306_v29  ;;  %v339_v17 = vadd.f32 %v332_v47, %v307_v35  ;;  %v372_v2 = vadd.f32 %v7389_v45, %v340_v7  ;;  %v9522_v15 = vld [vmem:[#allocation15_spill] sm:$0xff]  ;;  %v9523_v47 = vld [vmem:[#allocation14_spill] sm:$0xff]  ;;  %v9524_v29 = vld [vmem:[#allocation13_spill] sm:$0xff] }
 0x18e   :  { %v7582_v26 = vpop.permute.xlu0 %711  ;;  %v7584_v62 = vpop.permute.xlu1 %709  ;;  %v522_v42 = vsel %vm9461_vm13, %v9519_v16, %v9518_v36  ;;  %v492_v59 = vsel %vm9460_vm12, %v9520_v48, %v9521_v44  ;;  %v554_v39 = vsel %vm9462_vm14, %v7447_v27, %v9522_v15  ;;  %v586_v35 = vsel %vm9463_vm15, %v7455_v50, %v7453_v30  ;;  %v9533_v16 = vld [vmem:[#allocation23_spill] sm:$0xff] }
 0x18f   :  { %v401_v22 = vadd.f32 %v394_v8, %v369_v14  ;;  %v370_v43 = vadd.f32 %v363_v58, %v338_v13  ;;  %v371_v11 = vadd.f32 %v364_v23, %v339_v17  ;;  %v404_v45 = vadd.f32 %v7409_v63, %v372_v2  ;;  %v9525_v13 = vld [vmem:[#allocation17_spill] sm:$0xff] }
 0x190   :  { %v459_v63 = vsel %vm9459_vm11, %v7421_v19, %v9516_v55  ;;  %v491_v19 = vsel %vm9460_vm12, %v7429_v40, %v9520_v48  ;;  %vm9464_vm11 = vcmask 515072   ;;  %v523_v8 = vsel %vm9461_vm13, %v9518_v36, %v9523_v47 }
 0x191   :  { %v433_v32 = vadd.f32 %v426_v54, %v401_v22  ;;  %v402_v37 = vadd.f32 %v395_v20, %v370_v43  ;;  %v403_v53 = vadd.f32 %v396_v51, %v371_v11  ;;  %v436_v52 = vadd.f32 %v7417_v12, %v404_v45  ;;  %v9526_v22 = vld [vmem:[#allocation16_spill] sm:$0xff]  ;;  %v9528_v51 = vld [vmem:[#allocation21_spill] sm:$0xff]  ;;  %v9529_v45 = vld [vmem:[#allocation19_spill] sm:$0xff] }
 0x192   :  { %v7606_v21 = vpop.permute.xlu0 %739  ;;  %v7608_v25 = vpop.permute.xlu1 %737  ;;  %v524_v40 = vsel %vm9461_vm13, %v9523_v47, %v9524_v29  ;;  %vm9465_vm12 = vcmask 506880   ;;  %v555_v17 = vsel %vm9462_vm14, %v9522_v15, %v9525_v13  ;;  %v556_v2 = vsel %vm9462_vm14, %v9525_v13, %v9526_v22  ;;  %v9527_v20 = vld [vmem:[#allocation20_spill] sm:$0xff]  ;;  %v9536_v15 = vld [vmem:[#allocation26_spill] sm:$0xff] }
 0x193   :  { %v465_v10 = vadd.f32 %v458_v46, %v433_v32  ;;  %v434_v49 = vadd.f32 %v427_v57, %v402_v37  ;;  %v435_v41 = vadd.f32 %v428_v3, %v403_v53  ;;  %v468_v12 = vadd.f32 %v9517_v38, %v436_v52  ;;  %v9530_v3 = vld [vmem:[#allocation18_spill] sm:$0xff]  ;;  %v9531_v37 = vld [vmem:[#allocation24_spill] sm:$0xff]  ;;  %v9532_v53 = vld [vmem:[#allocation25_spill] sm:$0xff] }
 0x194   :  { %v618_v50 = vsel %vm9464_vm11, %v9528_v51, %v9527_v20  ;;  %vm681_vm13 = vcmask 498688   ;;  %v587_v57 = vsel %vm9463_vm15, %v7453_v30, %v9529_v45  ;;  %vm9466_vm14 = vcmask 359424  }
 0x195   :  { %v497_v1 = vadd.f32 %v490_v24, %v465_v10  ;;  %v466_v61 = vadd.f32 %v459_v63, %v434_v49  ;;  %v467_v5 = vadd.f32 %v460_v4, %v435_v41  ;;  %v500_v56 = vadd.f32 %v9521_v44, %v468_v12  ;;  %v9535_v44 = vld [vmem:[#allocation27_spill] sm:$0xff] }
 0x196   :  { %v7630_v0 = vpop.permute.xlu0 %743  ;;  %v7632_v6 = vpop.permute.xlu1 %741  ;;  %v588_v24 = vsel %vm9463_vm15, %v9529_v45, %v9530_v3  ;;  %v650_v10 = vsel %vm9465_vm12, %v9532_v53, %v9531_v37  ;;  %v619_v30 = vsel %vm9464_vm11, %v9527_v20, %v9533_v16  ;;  %v682_v41 = vsel %vm681_vm13, %v7512_v34, %v7510_v33 }
 0x197   :  { %v529_v9 = vadd.f32 %v522_v42, %v497_v1  ;;  %v498_v14 = vadd.f32 %v491_v19, %v466_v61  ;;  %v499_v27 = vadd.f32 %v492_v59, %v467_v5  ;;  %v532_v54 = vadd.f32 %v9524_v29, %v500_v56  ;;  %v9534_v42 = vld [vmem:[#allocation22_spill] sm:$0xff] }
 0x198   :  { %v620_v49 = vsel %vm9464_vm11, %v9533_v16, %v9534_v42  ;;  %vm745_vm15 = vcmask 351232   ;;  %v651_v59 = vsel %vm9465_vm12, %v9531_v37, %v9535_v44  ;;  %v714_v61 = vsel %vm9466_vm14, %v7560_v31, %v7558_v18  ;;  %v853_v37 = vld [vmem:[%s9409_s1] sm:$0xf]  ;;  %s6939_s1 = smov 96  }
 0x199   :  { %v561_v7 = vadd.f32 %v554_v39, %v529_v9  ;;  %v530_v46 = vadd.f32 %v523_v8, %v498_v14  ;;  %v531_v43 = vadd.f32 %v524_v40, %v499_v27  ;;  %v564_v32 = vadd.f32 %v9526_v22, %v532_v54  ;;  %v9538_v16 = vld [vmem:[#allocation5_spill] sm:$0xff] }
 0x19a   :  { %v7654_v58 = vpop.permute.xlu0 %771  ;;  %v770_v23 = vpop.permute.xlu1 %769  ;;  %v652_v39 = vsel %vm9465_vm12, %v9535_v44, %v9536_v15  ;;  %vm777_vm11 = vcmask 343040   ;;  %v683_v29 = vsel %vm681_vm13, %v7510_v33, %v7536_v60  ;;  %v684_v40 = vsel %vm681_vm13, %v7536_v60, %v7534_v28 }
 0x19b   :  { %v593_v11 = vadd.f32 %v586_v35, %v561_v7  ;;  %v562_v52 = vadd.f32 %v555_v17, %v530_v46  ;;  %v563_v55 = vadd.f32 %v556_v2, %v531_v43  ;;  %v596_v36 = vadd.f32 %v9530_v3, %v564_v32 }
 0x19c   :  { %v746_v31 = vsel %vm745_vm15, %v7608_v25, %v7606_v21  ;;  %vm809_vm12 = vcmask 334848   ;;  %v715_v54 = vsel %vm9466_vm14, %v7558_v18, %v7584_v62  ;;  %v716_v33 = vsel %vm9466_vm14, %v7584_v62, %v7582_v26 }
 0x19d   :  { %v625_v63 = vadd.f32 %v618_v50, %v593_v11  ;;  %v594_v1 = vadd.f32 %v587_v57, %v562_v52  ;;  %v595_v12 = vadd.f32 %v588_v24, %v563_v55  ;;  %v628_v19 = vadd.f32 %v9534_v42, %v596_v36 }
 0x19e   :  { %v776_v38 = vpop.permute.xlu0 %775  ;;  %v774_v4 = vpop.permute.xlu1 %773  ;;  %v778_v60 = vsel %vm777_vm11, %v770_v23, %v7654_v58  ;;  %v748_v18 = vsel %vm745_vm15, %v7632_v6, %v7630_v0  ;;  %vm9471_vm14 = vcmask 326656  }
 0x19f   :  { %v657_v48 = vadd.f32 %v650_v10, %v625_v63  ;;  %v626_v5 = vadd.f32 %v619_v30, %v594_v1  ;;  %v627_v34 = vadd.f32 %v620_v49, %v595_v12  ;;  %v660_v8 = vadd.f32 %v9536_v15, %v628_v19 }
 0x1a0   :  { %v779_v43 = vsel %vm777_vm11, %v7654_v58, %v774_v4  ;;  %v9539_v30 = vsub.s32 1, %v9538_v16 }
 0x1a1   :  { %v689_v9 = vadd.f32 %v682_v41, %v657_v48  ;;  %v658_v35 = vadd.f32 %v651_v59, %v626_v5  ;;  %v659_v14 = vadd.f32 %v652_v39, %v627_v34  ;;  %v692_v7 = vadd.f32 %v7534_v28, %v660_v8 }
 0x1a2   :  { %v804_v56 = vpop.permute.xlu0 %803  ;;  %v802_v47 = vpop.permute.xlu1 %801  ;;  %v747_v28 = vsel %vm745_vm15, %v7606_v21, %v7632_v6  ;;  %v862_v42 = vrot.slane %v853_v37, %v9539_v30  ;;  %v9540_v48 = vsub.s32 3, %v9538_v16  ;;  %v9541_v39 = vsub.s32 2, %v9538_v16 }
 0x1a3   :  { %v721_v27 = vadd.f32 %v714_v61, %v689_v9  ;;  %v690_v13 = vadd.f32 %v683_v29, %v658_v35  ;;  %v691_v17 = vadd.f32 %v684_v40, %v659_v14  ;;  %v724_v20 = vadd.f32 %v7582_v26, %v692_v7 }
 0x1a4   :  { %v810_v62 = vsel %vm809_vm12, %v802_v47, %v804_v56  ;;  %v780_v26 = vsel %vm777_vm11, %v774_v4, %v776_v38  ;;  %v9537_v4 = vld [vmem:[#allocation6_spill] sm:$0xff]  ;;  %v870_v19 = vrot.slane %v853_v37, %v9540_v48  ;;  %v866_v61 = vrot.slane %v853_v37, %v9541_v39 }
 0x1a5   :  { %v753_v25 = vadd.f32 %v746_v31, %v721_v27  ;;  %v722_v51 = vadd.f32 %v715_v54, %v690_v13  ;;  %v723_v50 = vadd.f32 %v716_v33, %v691_v17  ;;  %v756_v46 = vadd.f32 %v7630_v0, %v724_v20  ;;  %v7801_v20 = vld [vmem:[%s9410_s5 + $0x18] sm:$0xff] }
 0x1a6   :  { %v808_v22 = vpop.permute.xlu0 %807  ;;  %v806_v2 = vpop.permute.xlu1 %805  ;;  %v858_v36 = vrot.slane %v853_v37, %v9537_v4 }
 0x1a7   :  { %v785_v23 = vadd.f32 %v778_v60, %v753_v25  ;;  %v754_v11 = vadd.f32 %v747_v28, %v722_v51  ;;  %v755_v32 = vadd.f32 %v748_v18, %v723_v50  ;;  %v788_v3 = vadd.f32 %v776_v38, %v756_v46 }
 0x1a8   :  { %v811_v6 = vsel %vm809_vm12, %v804_v56, %v806_v2  ;;  %v812_v24 = vsel %vm809_vm12, %v806_v2, %v808_v22  ;;  %v7767_v2 = vld [vmem:[%s9410_s5] sm:$0xff] }
 0x1a9   :  { %v817_v21 = vadd.f32 %v810_v62, %v785_v23  ;;  %v786_v53 = vadd.f32 %v779_v43, %v754_v11  ;;  %v787_v58 = vadd.f32 %v780_v26, %v755_v32  ;;  %v820_v52 = vadd.f32 %v808_v22, %v788_v3  ;;  %v7760_v22 = vld [vmem:[%s9410_s5 + $0x10] sm:$0xff]  ;;  %v905_v26 = vld [vmem:[%s9411_s3] sm:$0xff]  ;;  %s6947_s3 = smov 32  }
 0x1aa   :  { %v836_v45 = vpop.permute.xlu0 %835  ;;  %v834_v57 = vpop.permute.xlu1 %833  ;;  %v9490_v32 = vmov 0.0  }
 0x1ab   :  { %v842_v0 = vsel %vm9471_vm14, %v834_v57, %v836_v45  ;;  %v818_v55 = vadd.f32 %v811_v6, %v786_v53  ;;  %v819_v63 = vadd.f32 %v812_v24, %v787_v58  ;;  %1033 = vmatprep.mubr.f32.mxu0 %v9490_v32  ;;  %1039 = vmatprep.mubr.f32.mxu1 %v9490_v32  ;;  %v7839_v6 = vld [vmem:[%s9410_s5 + $0x8] sm:$0xff]  ;;  %s9542_s5 = smov 106  }
 0x1ac   :  { %v7733_v10 = vadd.f32 %v842_v0, %v817_v21 }
 0x1ae   :  { %v840_v38 = vpop.permute.xlu0 %839  ;;  %v838_v49 = vpop.permute.xlu1 %837  ;;  %v886_v44 = vmul.f32 %v7733_v10, %v7733_v10  ;;  %v875_v34 = vmul.f32 %v858_v36, %v7733_v10 }
 0x1af   :  { %v852_v41 = vadd.f32 %v840_v38, %v820_v52  ;;  %v843_v1 = vsel %vm9471_vm14, %v836_v45, %v838_v49  ;;  %v844_v12 = vsel %vm9471_vm14, %v838_v49, %v840_v38  ;;  %vm881_vm14 = vcmask 293888   ;;  %v909_v45 = vld [vmem:[%s9412_s4] sm:$0xff]  ;;  %s6948_s4 = smov 16  }
 0x1b0   :  { %v7744_v59 = vadd.f32 %v843_v1, %v818_v55  ;;  %v7746_v15 = vadd.f32 %v844_v12, %v819_v63  ;;  %v890_v29 = vmul.f32 %v886_v44, %v858_v36 }
 0x1b1   :  { %v889_v5 = vmul.f32 %v852_v41, %v852_v41  ;;  %v878_v8 = vmul.f32 %v870_v19, %v852_v41 }
 0x1b2   :  { %v876_v9 = vmul.f32 %v862_v42, %v7744_v59  ;;  %v887_v56 = vmul.f32 %v7744_v59, %v7744_v59  ;;  %v888_v47 = vmul.f32 %v7746_v15, %v7746_v15  ;;  %v877_v40 = vmul.f32 %v866_v61, %v7746_v15 }
 0x1b3   :  { %v893_v14 = vmul.f32 %v889_v5, %v870_v19  ;;  %v882_v33 = vsel %vm881_vm14, %v878_v8, 0.0 }
 0x1b4   :  { %v879_v31 = vadd.f32 %v876_v9, %v875_v34  ;;  %v891_v35 = vmul.f32 %v887_v56, %v862_v42  ;;  %v892_v7 = vmul.f32 %v888_v47, %v866_v61 }
 0x1b5   :  { %v896_v17 = vsel %vm881_vm14, %v893_v14, 0.0  ;;  %vm964_vm14 = vcmask 64512  }
 0x1b6   :  { %v880_v27 = vadd.f32 %v879_v31, %v877_v40  ;;  %v894_v54 = vadd.f32 %v891_v35, %v890_v29 }
 0x1b8   :  { %v883_v60 = vadd.f32 %v882_v33, %v880_v27  ;;  %v895_v13 = vadd.f32 %v894_v54, %v892_v7 }
 0x1ba   :  { %884 = vadd.xlane.f32.xlu1 %v883_v60  ;;  %v897_v25 = vadd.f32 %v896_v17, %v895_v13 }
 0x1bc   :  { %898 = vadd.xlane.f32.xlu0 %v897_v25 }
 0x1cb   :  { %949 = vrot.lane.b32.xlu1 %v7760_v22, %s6937_s2 }
 0x1cf   :  { %947 = vrot.lane.b32.xlu1 %v7767_v2, %s6937_s2 }
 0x1d2   :  { %1129 = vrot.lane.b32.xlu0 %v7760_v22, %s6938_s26 }
 0x1d3   :  { %1127 = vrot.lane.b32.xlu1 %v7767_v2, %s6938_s26 }
 0x1d6   :  { %1226 = vrot.lane.b32.xlu0 %v7767_v2, %s6920_s22 }
 0x1d7   :  { %1228 = vrot.lane.b32.xlu1 %v7760_v22, %s6920_s22 }
 0x1da   :  { %1325 = vrot.lane.b32.xlu0 %v7767_v2, %s6939_s1 }
 0x1db   :  { %1426 = vrot.lane.b32.xlu1 %v7760_v22, %s6940_s27 }
 0x1de   :  { %1327 = vrot.lane.b32.xlu0 %v7760_v22, %s6939_s1 }
 0x1df   :  { %1624 = vrot.lane.b32.xlu1 %v7760_v22, %s6941_s28 }
 0x1e2   :  { %1424 = vrot.lane.b32.xlu0 %v7767_v2, %s6940_s27 }
 0x1e3   :  { %1822 = vrot.lane.b32.xlu1 %v7760_v22, %s6942_s29 }
 0x1e6   :  { %1523 = vrot.lane.b32.xlu0 %v7767_v2, %s6943_s25 }
 0x1e7   :  { %2020 = vrot.lane.b32.xlu1 %v7760_v22, %s6936_s15 }
 0x1ea   :  { %1525 = vrot.lane.b32.xlu0 %v7760_v22, %s6943_s25 }
 0x1eb   :  { %2218 = vrot.lane.b32.xlu1 %v7760_v22, %s6944_s24 }
 0x1ee   :  { %1622 = vrot.lane.b32.xlu0 %v7767_v2, %s6941_s28 }
 0x1ef   :  { %2614 = vrot.lane.b32.xlu1 %v7801_v20, %s6937_s2 }
 0x1f2   :  { %1721 = vrot.lane.b32.xlu0 %v7767_v2, %s9486_s30 }
 0x1f3   :  { %2812 = vrot.lane.b32.xlu1 %v7801_v20, %s6920_s22 }
 0x1f6   :  { %1723 = vrot.lane.b32.xlu0 %v7760_v22, %s9486_s30  ;;  %s6949_s30 = smov 8  }
 0x1f7   :  { %3010 = vrot.lane.b32.xlu1 %v7801_v20, %s6940_s27 }
 0x1fa   :  { %1820 = vrot.lane.b32.xlu0 %v7767_v2, %s6942_s29  ;;  %s9554_s29 = smov 61  }
 0x243   :  { %v885_v28 = vpop.xlane.xlu1 %884 }
 0x244   :  { %v900_v18 = vmul.f32 0.004901961, %v885_v28 }
 0x245   :  { %v899_v62 = vpop.xlane.xlu0 %898 }
 0x246   :  { %v902_v51 = vmul.f32 %v900_v18, %v900_v18  ;;  %v901_v50 = vmul.f32 0.004901961, %v899_v62 }
 0x247   :  { %v7849_v24 = vpop.permute.xlu1 %949 }
 0x248   :  { %v903_v23 = vsub.f32 %v901_v50, %v902_v51 }
 0x249   :  { %v7851_v37 = vpop.permute.xlu0 %1129 }
 0x24a   :  { %v904_v46 = vmax.f32 %v903_v23, 0.0 }
 0x24b   :  { %v7855_v0 = vpop.permute.xlu1 %947 }
 0x24c   :  { %v906_v43 = vadd.f32 1e-05, %v904_v46 }
 0x24d   :  { %v7859_v53 = vpop.permute.xlu0 %1226 }
 0x24e   :  { %6838 = vrsqrt.f32 %v906_v43 }
 0x24f   :  { %v7863_v58 = vpop.permute.xlu1 %1127 }
 0x251   :  { %v7865_v52 = vpop.permute.xlu0 %1325 }
 0x253   :  { %v7869_v55 = vpop.permute.xlu1 %1228 }
 0x255   :  { %v7873_v63 = vpop.permute.xlu0 %1327 }
 0x257   :  { %v7877_v36 = vpop.permute.xlu1 %1426 }
 0x259   :  { %v7879_v38 = vpop.permute.xlu0 %1424 }
 0x25b   :  { %v6839_v11 = vpop.eup %6838  ;;  %v7881_v30 = vpop.permute.xlu1 %1624 }
 0x25c   :  { %v908_v21 = vmul.f32 %v6839_v11, %v905_v26 }
 0x25d   :  { %v7883_v42 = vpop.permute.xlu0 %1523 }
 0x25e   :  { %914 = vperm.xlu0 %6837, %v908_v21   ;;  %v910_v57 = vmul.f32 %v908_v21, %v900_v18 }
 0x25f   :  { %v7885_v49 = vpop.permute.xlu1 %1822 }
 0x260   :  { %v911_v3 = vsub.f32 %v909_v45, %v910_v57 }
 0x261   :  { %v7887_v41 = vpop.permute.xlu0 %1525 }
 0x262   :  { %923 = vperm.xlu1 %6836, %v911_v3   ;;  %1919 = vrot.lane.b32.xlu0 %v7767_v2, %s6946_s20 }
 0x263   :  { %v7889_v1 = vpop.permute.xlu1 %2020 }
 0x265   :  { %v7891_v12 = vpop.permute.xlu0 %1622 }
 0x266   :  { %1921 = vrot.lane.b32.xlu0 %v7760_v22, %s6946_s20 }
 0x267   :  { %v7893_v48 = vpop.permute.xlu1 %2218 }
 0x269   :  { %v7895_v19 = vpop.permute.xlu0 %1721 }
 0x26a   :  { %2018 = vrot.lane.b32.xlu0 %v7767_v2, %s6936_s15 }
 0x26b   :  { %v7897_v44 = vpop.permute.xlu1 %2614 }
 0x26d   :  { %v7899_v39 = vpop.permute.xlu0 %1723 }
 0x26e   :  { %2117 = vrot.lane.b32.xlu0 %v7767_v2, %s6947_s3 }
 0x26f   :  { %v7901_v61 = vpop.permute.xlu1 %2812 }
 0x271   :  { %v7903_v5 = vpop.permute.xlu0 %1820 }
 0x272   :  { %2119 = vrot.lane.b32.xlu0 %v7760_v22, %s6947_s3  ;;  %s9555_s3 = smov 44  }
 0x273   :  { %v7905_v34 = vpop.permute.xlu1 %3010 }
 0x276   :  { %2216 = vrot.lane.b32.xlu0 %v7767_v2, %s6944_s24  ;;  %s9543_s24 = smov 105  }
 0x27a   :  { %2315 = vrot.lane.b32.xlu0 %v7767_v2, %s6948_s4 }
 0x27e   :  { %2317 = vrot.lane.b32.xlu0 %v7760_v22, %s6948_s4  ;;  %s9556_s4 = smov 43  }
 0x282   :  { %2414 = vrot.lane.b32.xlu0 %v7767_v2, %s6949_s30 }
 0x286   :  { %2416 = vrot.lane.b32.xlu0 %v7760_v22, %s6949_s30  ;;  %s9558_s30 = smov 41  }
 0x28a   :  { %2612 = vrot.lane.b32.xlu0 %v7839_v6, %s6937_s2 }
 0x28e   :  { %2711 = vrot.lane.b32.xlu0 %v7839_v6, %s6938_s26 }
 0x292   :  { %2713 = vrot.lane.b32.xlu0 %v7801_v20, %s6938_s26  ;;  %s9548_s26 = smov 83  }
 0x296   :  { %2810 = vrot.lane.b32.xlu0 %v7839_v6, %s6920_s22 }
 0x29a   :  { %2909 = vrot.lane.b32.xlu0 %v7839_v6, %s6939_s1 }
 0x29e   :  { %2911 = vrot.lane.b32.xlu0 %v7801_v20, %s6939_s1  ;;  %s9550_s1 = smov 65  }
 0x2a2   :  { %3008 = vrot.lane.b32.xlu0 %v7839_v6, %s6940_s27  ;;  %s9552_s27 = smov 63  }
 0x2a6   :  { %3107 = vrot.lane.b32.xlu0 %v7839_v6, %s6943_s25 }
 0x2aa   :  { %3109 = vrot.lane.b32.xlu0 %v7801_v20, %s6943_s25  ;;  %s9546_s25 = smov 85  }
 0x2ae   :  { %3206 = vrot.lane.b32.xlu0 %v7839_v6, %s6941_s28 }
 0x2d9   :  { %v915_v9 = vpop.permute.xlu0 %914 }
 0x2da   :  { %v917_v56 = vmul.f32 %v915_v9, %v7733_v10  ;;  %v918_v47 = vmul.f32 %v915_v9, %v7744_v59  ;;  %v919_v8 = vmul.f32 %v915_v9, %v7746_v15 }
 0x2dd   :  { %v924_v29 = vpop.permute.xlu1 %923  ;;  %v7928_v10 = vpop.permute.xlu0 %1919 }
 0x2de   :  { %v926_v40 = vadd.f32 %v924_v29, %v917_v56  ;;  %v927_v31 = vadd.f32 %v924_v29, %v918_v47  ;;  %v928_v35 = vadd.f32 %v924_v29, %v919_v8 }
 0x2e0   :  { %v7910_v14 = vmax.f32 %v926_v40, 0.0  ;;  %v7912_v27 = vmax.f32 %v927_v31, 0.0  ;;  %v7914_v7 = vmax.f32 %v928_v35, 0.0 }
 0x2e1   :  { %v7934_v59 = vpop.permute.xlu0 %1921 }
 0x2e2   :  { %956 = vrot.lane.b32.xlu1 %v7912_v27, %s6913_s0  ;;  %1131 = vrot.lane.b32.xlu0 %v7910_v14, %s6914_s16 }
 0x2e5   :  { %v7944_v15 = vpop.permute.xlu0 %2018 }
 0x2e6   :  { %958 = vrot.lane.b32.xlu1 %v7914_v7, %s6913_s0  ;;  %1232 = vrot.lane.b32.xlu0 %v7912_v27, %s6915_s17 }
 0x2e9   :  { %v7950_v54 = vpop.permute.xlu0 %2117 }
 0x2ea   :  { %1331 = vrot.lane.b32.xlu0 %v7912_v27, %s6916_s18  ;;  %954 = vrot.lane.b32.xlu1 %v7910_v14, %s6913_s0  ;;  %s9544_s0 = smov 103  }
 0x2ed   :  { %v7960_v33 = vpop.permute.xlu0 %2119 }
 0x2ee   :  { %1430 = vrot.lane.b32.xlu0 %v7912_v27, %s6917_s19  ;;  %1133 = vrot.lane.b32.xlu1 %v7912_v27, %s6914_s16 }
 0x2f1   :  { %v7966_v60 = vpop.permute.xlu0 %2216 }
 0x2f2   :  { %1529 = vrot.lane.b32.xlu0 %v7912_v27, %s9542_s5  ;;  %1135 = vrot.lane.b32.xlu1 %v7914_v7, %s6914_s16  ;;  %s9545_s16 = smov 86  }
 0x2f5   :  { %v7976_v13 = vpop.permute.xlu0 %2315 }
 0x2f6   :  { %1628 = vrot.lane.b32.xlu0 %v7912_v27, %s9543_s24  ;;  %1234 = vrot.lane.b32.xlu1 %v7914_v7, %s6915_s17 }
 0x2f9   :  { %v7982_v17 = vpop.permute.xlu0 %2317 }
 0x2fa   :  { %1727 = vrot.lane.b32.xlu0 %v7912_v27, %s6920_s22  ;;  %1230 = vrot.lane.b32.xlu1 %v7910_v14, %s6915_s17  ;;  %s9547_s17 = smov 84  }
 0x2fd   :  { %v7992_v25 = vpop.permute.xlu0 %2414 }
 0x2fe   :  { %1826 = vrot.lane.b32.xlu0 %v7912_v27, %s9544_s0  ;;  %1333 = vrot.lane.b32.xlu1 %v7914_v7, %s6916_s18 }
 0x301   :  { %v7998_v28 = vpop.permute.xlu0 %2416 }
 0x302   :  { %1925 = vrot.lane.b32.xlu0 %v7912_v27, %s9545_s16  ;;  %1329 = vrot.lane.b32.xlu1 %v7910_v14, %s6916_s18  ;;  %s9549_s18 = smov 82  }
 0x305   :  { %v8008_v18 = vpop.permute.xlu0 %2612 }
 0x306   :  { %2024 = vrot.lane.b32.xlu0 %v7912_v27, %s9546_s25  ;;  %1432 = vrot.lane.b32.xlu1 %v7914_v7, %s6917_s19 }
 0x309   :  { %v8014_v62 = vpop.permute.xlu0 %2711 }
 0x30a   :  { %2123 = vrot.lane.b32.xlu0 %v7912_v27, %s9547_s17  ;;  %1428 = vrot.lane.b32.xlu1 %v7910_v14, %s6917_s19  ;;  %s9551_s19 = smov 64  }
 0x30d   :  { %v8024_v51 = vpop.permute.xlu0 %2713 }
 0x30e   :  { %2222 = vrot.lane.b32.xlu0 %v7912_v27, %s9548_s26  ;;  %1531 = vrot.lane.b32.xlu1 %v7914_v7, %s9542_s5 }
 0x311   :  { %v8030_v50 = vpop.permute.xlu0 %2810 }
 0x312   :  { %2321 = vrot.lane.b32.xlu0 %v7912_v27, %s9549_s18  ;;  %1527 = vrot.lane.b32.xlu1 %v7910_v14, %s9542_s5 }
 0x315   :  { %v8036_v23 = vpop.permute.xlu0 %2909 }
 0x316   :  { %2420 = vrot.lane.b32.xlu0 %v7912_v27, %s9550_s1  ;;  %1630 = vrot.lane.b32.xlu1 %v7914_v7, %s9543_s24 }
 0x319   :  { %v8046_v46 = vpop.permute.xlu0 %2911 }
 0x31a   :  { %2517 = vrot.lane.b32.xlu0 %v7912_v27, %s9551_s19  ;;  %1626 = vrot.lane.b32.xlu1 %v7910_v14, %s9543_s24 }
 0x31d   :  { %v8050_v43 = vpop.permute.xlu0 %3008 }
 0x31e   :  { %2620 = vrot.lane.b32.xlu0 %v7914_v7, %s9552_s27  ;;  %1729 = vrot.lane.b32.xlu1 %v7914_v7, %s6920_s22 }
 0x321   :  { %v8056_v26 = vpop.permute.xlu0 %3107 }
 0x322   :  { %2717 = vrot.lane.b32.xlu0 %v7912_v27, %s9553_s23  ;;  %1725 = vrot.lane.b32.xlu1 %v7910_v14, %s6920_s22  ;;  %s9557_s22 = smov 42  }
 0x325   :  { %v8060_v21 = vpop.permute.xlu0 %3109 }
 0x326   :  { %2816 = vrot.lane.b32.xlu0 %v7912_v27, %s9554_s29  ;;  %1828 = vrot.lane.b32.xlu1 %v7914_v7, %s9544_s0 }
 0x329   :  { %v8067_v3 = vpop.permute.xlu0 %3206 }
 0x32a   :  { %2915 = vrot.lane.b32.xlu0 %v7912_v27, %s9555_s3  ;;  %1824 = vrot.lane.b32.xlu1 %v7910_v14, %s9544_s0 }
 0x32e   :  { %3014 = vrot.lane.b32.xlu0 %v7912_v27, %s9556_s4  ;;  %1927 = vrot.lane.b32.xlu1 %v7914_v7, %s9545_s16 }
 0x332   :  { %3113 = vrot.lane.b32.xlu0 %v7912_v27, %s9557_s22  ;;  %1923 = vrot.lane.b32.xlu1 %v7910_v14, %s9545_s16 }
 0x336   :  { %3212 = vrot.lane.b32.xlu0 %v7912_v27, %s9558_s30  ;;  %2026 = vrot.lane.b32.xlu1 %v7914_v7, %s9546_s25 }
 0x33a   :  { %3311 = vrot.lane.b32.xlu0 %v7912_v27, %s6936_s15  ;;  %2022 = vrot.lane.b32.xlu1 %v7910_v14, %s9546_s25 }
 0x33e   :  { %2125 = vrot.lane.b32.xlu1 %v7914_v7, %s9547_s17  ;;  %3305 = vrot.lane.b32.xlu0 %v7839_v6, %s9551_s19 }
 0x342   :  { %2121 = vrot.lane.b32.xlu1 %v7910_v14, %s9547_s17  ;;  %3307 = vrot.lane.b32.xlu0 %v7801_v20, %s9551_s19 }
 0x346   :  { %2224 = vrot.lane.b32.xlu1 %v7914_v7, %s9548_s26 }
 0x34a   :  { %2220 = vrot.lane.b32.xlu1 %v7910_v14, %s9548_s26 }
 0x34e   :  { %2323 = vrot.lane.b32.xlu1 %v7914_v7, %s9549_s18 }
 0x352   :  { %2319 = vrot.lane.b32.xlu1 %v7910_v14, %s9549_s18 }
 0x354   :  { %v957_v11 = vpop.permute.xlu1 %956  ;;  %v1132_v8 = vpop.permute.xlu0 %1131 }
 0x356   :  { %2422 = vrot.lane.b32.xlu1 %v7914_v7, %s9550_s1 }
 0x358   :  { %v959_v45 = vpop.permute.xlu1 %958  ;;  %v1233_v40 = vpop.permute.xlu0 %1232 }
 0x359   :  { %v961_v57 = vsel %vm105_vm0, %v957_v11, %v959_v45 }
 0x35a   :  { %999 = vmatprep.subr.mxu0 %v961_v57  ;;  %6744 = vmatprep.subr.mxu1 %v961_v57 }
 0x35b   :  { %2418 = vrot.lane.b32.xlu1 %v7910_v14, %s9550_s1 }
 0x35c   :  { %v955_v9 = vpop.permute.xlu1 %954 }
 0x35d   :  { %v960_v56 = vsel %vm105_vm0, %v955_v9, %v957_v11  ;;  %vm9559_vm0 = vcmask 687104  }
 0x35e   :  { %1000 = vmatpush1.msra.mxu0 %v960_v56  ;;  %6745 = vmatpush1.msra.mxu1 %v960_v56 }
 0x35f   :  { %2519 = vrot.lane.b32.xlu1 %v7914_v7, %s9551_s19  ;;  %6345 = vmatmul.mubr.msk.f32.vlgmr.msra.gmra.mxu0 %vm964_vm14, %v7855_v0 }
 0x360   :  { %6346 = vmatmul.mubr.msk.f32.vlgmr.msra.gmra.mxu1 %vm964_vm14, %v7849_v24  ;;  %1080 = vmatprep.subr.mxu1 %v7912_v27  ;;  %v1134_v47 = vpop.permute.xlu1 %1133 }
 0x361   :  { %1081 = vmatpush1.msra.mxu1 %v7910_v14  ;;  %1114 = vmatprep.mubr.f32.mxu1 %v9490_v32  ;;  %v1137_v29 = vsel %vm137_vm1, %v1132_v8, %v1134_v47 }
 0x362   :  { %1209 = vmatprep.mubr.f32.mxu0 %v9490_v32 }
 0x363   :  { %2515 = vrot.lane.b32.xlu1 %v7910_v14, %s9551_s19 }
 0x364   :  { %6347 = vmatmul.mubr.msk.f32.vlgmr.msra.gmra.mxu1 %vm964_vm14, %v7767_v2  ;;  %v1136_v0 = vpop.permute.xlu1 %1135 }
 0x365   :  { %1120 = vmatprep.mubr.f32.mxu1 %v9490_v32  ;;  %v1138_v24 = vsel %vm137_vm1, %v1134_v47, %v1136_v0  ;;  %vm9560_vm1 = vmmov %vm9559_vm0 }
 0x366   :  { %1175 = vmatprep.subr.mxu0 %v1138_v24 }
 0x367   :  { %2618 = vrot.lane.b32.xlu1 %v7912_v27, %s9552_s27  ;;  %1176 = vmatpush1.msra.mxu0 %v1137_v29 }
 0x368   :  { %6348 = vmatmul.mubr.msk.f32.gmra.mxu1 %vm964_vm14, %v7760_v22  ;;  %6349 = vmatmul.mubr.msk.f32.vlgmr.msra.gmra.mxu0 %vm964_vm14, %v7863_v58  ;;  %v1235_v2 = vpop.permute.xlu1 %1234  ;;  %v1332_v58 = vpop.permute.xlu0 %1331 }
 0x369   :  { %v1237_v31 = vsel %vm169_vm2, %v1233_v40, %v1235_v2  ;;  %1215 = vmatprep.mubr.f32.mxu0 %v9490_v32  ;;  %1308 = vmatprep.mubr.f32.mxu1 %v9490_v32 }
 0x36a   :  { %1274 = vmatprep.subr.mxu1 %v1237_v31 }
 0x36b   :  { %2616 = vrot.lane.b32.xlu1 %v7910_v14, %s9552_s27 }
 0x36c   :  { %6350 = vmatmul.mubr.msk.f32.gmra.mxu0 %vm964_vm14, %v7851_v37  ;;  %v1231_v35 = vpop.permute.xlu1 %1230 }
 0x36d   :  { %v1236_v22 = vsel %vm169_vm2, %v1231_v35, %v1233_v40  ;;  %1407 = vmatprep.mubr.f32.mxu0 %v9490_v32  ;;  %vm9561_vm2 = vcmask 678912  }
 0x36e   :  { %1275 = vmatpush1.msra.mxu1 %v1236_v22 }
 0x36f   :  { %2719 = vrot.lane.b32.xlu1 %v7914_v7, %s9553_s23  ;;  %6351 = vmatmul.mubr.msk.f32.vlgmr.msra.gmra.mxu1 %vm964_vm14, %v7859_v53  ;;  %v1431_v53 = vpop.permute.xlu0 %1430 }
 0x370   :  { %v1334_v27 = vpop.permute.xlu1 %1333  ;;  %1314 = vmatprep.mubr.f32.mxu1 %v9490_v32 }
 0x371   :  { %v1336_v11 = vsel %vm201_vm3, %v1332_v58, %v1334_v27 }
 0x372   :  { %1373 = vmatprep.subr.mxu0 %v1336_v11 }
 0x373   :  { %2715 = vrot.lane.b32.xlu1 %v7910_v14, %s9553_s23  ;;  %6352 = vmatmul.mubr.msk.f32.gmra.mxu1 %vm964_vm14, %v7869_v55 }
 0x374   :  { %v1330_v37 = vpop.permute.xlu1 %1329  ;;  %1506 = vmatprep.mubr.f32.mxu1 %v9490_v32 }
 0x375   :  { %v1335_v45 = vsel %vm201_vm3, %v1330_v37, %v1332_v58  ;;  %vm9562_vm3 = vmmov %vm9561_vm2 }
 0x376   :  { %1374 = vmatpush1.msra.mxu0 %v1335_v45 }
 0x377   :  { %2818 = vrot.lane.b32.xlu1 %v7914_v7, %s9554_s29  ;;  %6353 = vmatmul.mubr.msk.f32.vlgmr.msra.gmra.mxu0 %vm964_vm14, %v7865_v52  ;;  %v1530_v52 = vpop.permute.xlu0 %1529 }
 0x378   :  { %v1433_v57 = vpop.permute.xlu1 %1432  ;;  %1413 = vmatprep.mubr.f32.mxu0 %v9490_v32 }
 0x379   :  { %v1435_v9 = vsel %vm233_vm4, %v1431_v53, %v1433_v57 }
 0x37a   :  { %1472 = vmatprep.subr.mxu1 %v1435_v9 }
 0x37b   :  { %2814 = vrot.lane.b32.xlu1 %v7910_v14, %s9554_s29  ;;  %6354 = vmatmul.mubr.msk.f32.gmra.mxu0 %vm964_vm14, %v7873_v63 }
 0x37c   :  { %v1429_v55 = vpop.permute.xlu1 %1428  ;;  %1605 = vmatprep.mubr.f32.mxu0 %v9490_v32 }
 0x37d   :  { %v1434_v56 = vsel %vm233_vm4, %v1429_v55, %v1431_v53  ;;  %vm9563_vm4 = vcmask 670720  }
 0x37e   :  { %1473 = vmatpush1.msra.mxu1 %v1434_v56 }
 0x37f   :  { %2917 = vrot.lane.b32.xlu1 %v7914_v7, %s9555_s3  ;;  %6355 = vmatmul.mubr.msk.f32.vlgmr.msra.gmra.mxu1 %vm964_vm14, %v7879_v38  ;;  %v1629_v38 = vpop.permute.xlu0 %1628 }
 0x380   :  { %v1532_v47 = vpop.permute.xlu1 %1531  ;;  %1512 = vmatprep.mubr.f32.mxu1 %v9490_v32 }
 0x381   :  { %v1534_v8 = vsel %vm265_vm5, %v1530_v52, %v1532_v47 }
 0x382   :  { %1571 = vmatprep.subr.mxu0 %v1534_v8 }
 0x383   :  { %2913 = vrot.lane.b32.xlu1 %v7910_v14, %s9555_s3  ;;  %6356 = vmatmul.mubr.msk.f32.gmra.mxu1 %vm964_vm14, %v7877_v36 }
 0x384   :  { %v1528_v63 = vpop.permute.xlu1 %1527  ;;  %1704 = vmatprep.mubr.f32.mxu1 %v9490_v32 }
 0x385   :  { %v1533_v0 = vsel %vm265_vm5, %v1528_v63, %v1530_v52  ;;  %vm9564_vm5 = vmmov %vm9563_vm4 }
 0x386   :  { %1572 = vmatpush1.msra.mxu0 %v1533_v0 }
 0x387   :  { %3016 = vrot.lane.b32.xlu1 %v7914_v7, %s9556_s4  ;;  %6357 = vmatmul.mubr.msk.f32.vlgmr.msra.gmra.mxu0 %vm964_vm14, %v7883_v42  ;;  %v1728_v42 = vpop.permute.xlu0 %1727 }
 0x388   :  { %v1631_v24 = vpop.permute.xlu1 %1630  ;;  %1611 = vmatprep.mubr.f32.mxu0 %v9490_v32 }
 0x389   :  { %v1633_v29 = vsel %vm297_vm6, %v1629_v38, %v1631_v24 }
 0x38a   :  { %1670 = vmatprep.subr.mxu1 %v1633_v29 }
 0x38b   :  { %3012 = vrot.lane.b32.xlu1 %v7910_v14, %s9556_s4  ;;  %6358 = vmatmul.mubr.msk.f32.gmra.mxu0 %vm964_vm14, %v7887_v41 }
 0x38c   :  { %v1627_v36 = vpop.permute.xlu1 %1626  ;;  %1803 = vmatprep.mubr.f32.mxu0 %v9490_v32 }
 0x38d   :  { %v1632_v40 = vsel %vm297_vm6, %v1627_v36, %v1629_v38  ;;  %vm9565_vm6 = vcmask 531456  }
 0x38e   :  { %1671 = vmatpush1.msra.mxu1 %v1632_v40 }
 0x38f   :  { %3115 = vrot.lane.b32.xlu1 %v7914_v7, %s9557_s22  ;;  %6359 = vmatmul.mubr.msk.f32.vlgmr.msra.gmra.mxu1 %vm964_vm14, %v7891_v12  ;;  %v1827_v12 = vpop.permute.xlu0 %1826 }
 0x390   :  { %v1730_v2 = vpop.permute.xlu1 %1729  ;;  %1710 = vmatprep.mubr.f32.mxu1 %v9490_v32 }
 0x391   :  { %v1732_v31 = vsel %vm329_vm7, %v1728_v42, %v1730_v2 }
 0x392   :  { %1769 = vmatprep.subr.mxu0 %v1732_v31 }
 0x393   :  { %3111 = vrot.lane.b32.xlu1 %v7910_v14, %s9557_s22  ;;  %6360 = vmatmul.mubr.msk.f32.gmra.mxu1 %vm964_vm14, %v7881_v30 }
 0x394   :  { %v1726_v41 = vpop.permute.xlu1 %1725  ;;  %1902 = vmatprep.mubr.f32.mxu1 %v9490_v32 }
 0x395   :  { %v1731_v35 = vsel %vm329_vm7, %v1726_v41, %v1728_v42  ;;  %vm9566_vm7 = vmmov %vm9565_vm6 }
 0x396   :  { %1770 = vmatpush1.msra.mxu0 %v1731_v35 }
 0x397   :  { %3214 = vrot.lane.b32.xlu1 %v7914_v7, %s9558_s30  ;;  %6361 = vmatmul.mubr.msk.f32.vlgmr.msra.gmra.mxu0 %vm964_vm14, %v7895_v19  ;;  %v1926_v19 = vpop.permute.xlu0 %1925 }
 0x398   :  { %v1829_v22 = vpop.permute.xlu1 %1828  ;;  %1809 = vmatprep.mubr.f32.mxu0 %v9490_v32 }
 0x399   :  { %v1831_v58 = vsel %vm361_vm8, %v1827_v12, %v1829_v22 }
 0x39a   :  { %1868 = vmatprep.subr.mxu1 %v1831_v58 }
 0x39b   :  { %3210 = vrot.lane.b32.xlu1 %v7910_v14, %s9558_s30  ;;  %6362 = vmatmul.mubr.msk.f32.gmra.mxu0 %vm964_vm14, %v7899_v39 }
 0x39c   :  { %v1825_v30 = vpop.permute.xlu1 %1824  ;;  %2001 = vmatprep.mubr.f32.mxu0 %v9490_v32 }
 0x39d   :  { %v1830_v27 = vsel %vm361_vm8, %v1825_v30, %v1827_v12  ;;  %vm9567_vm8 = vcmask 523264  }
 0x39e   :  { %1869 = vmatpush1.msra.mxu1 %v1830_v27 }
 0x39f   :  { %3313 = vrot.lane.b32.xlu1 %v7914_v7, %s6936_s15  ;;  %6363 = vmatmul.mubr.msk.f32.vlgmr.msra.gmra.mxu1 %vm964_vm14, %v7903_v5  ;;  %v2025_v5 = vpop.permute.xlu0 %2024 }
 0x3a0   :  { %v1928_v11 = vpop.permute.xlu1 %1927  ;;  %1908 = vmatprep.mubr.f32.mxu1 %v9490_v32 }
 0x3a1   :  { %v1930_v37 = vsel %vm393_vm9, %v1926_v19, %v1928_v11 }
 0x3a2   :  { %1967 = vmatprep.subr.mxu0 %v1930_v37 }
 0x3a3   :  { %3309 = vrot.lane.b32.xlu1 %v7910_v14, %s6936_s15  ;;  %6364 = vmatmul.mubr.msk.f32.gmra.mxu1 %vm964_vm14, %v7885_v49  ;;  %s6951_s15 = smov 46  }
 0x3a4   :  { %v1924_v39 = vpop.permute.xlu1 %1923  ;;  %2100 = vmatprep.mubr.f32.mxu1 %v9490_v32 }
 0x3a5   :  { %v1929_v7 = vsel %vm393_vm9, %v1924_v39, %v1926_v19  ;;  %vm9568_vm9 = vmmov %vm9567_vm8 }
 0x3a6   :  { %1968 = vmatpush1.msra.mxu0 %v1929_v7 }
 0x3a7   :  { %3208 = vrot.lane.b32.xlu1 %v7801_v20, %s6941_s28  ;;  %6365 = vmatmul.mubr.msk.f32.vlgmr.msra.gmra.mxu0 %vm964_vm14, %v7928_v10  ;;  %v2124_v10 = vpop.permute.xlu0 %2123  ;;  %s6952_s28 = smov 38  }
 0x3a8   :  { %v2027_v45 = vpop.permute.xlu1 %2026  ;;  %2007 = vmatprep.mubr.f32.mxu0 %v9490_v32 }
 0x3a9   :  { %v2029_v14 = vsel %vm425_vm10, %v2025_v5, %v2027_v45 }
 0x3aa   :  { %2066 = vmatprep.subr.mxu1 %v2029_v14 }
 0x3ab   :  { %6366 = vmatmul.mubr.msk.f32.gmra.mxu0 %vm964_vm14, %v7934_v59 }
 0x3ac   :  { %v2023_v49 = vpop.permute.xlu1 %2022  ;;  %2199 = vmatprep.mubr.f32.mxu0 %v9490_v32 }
 0x3ad   :  { %v2028_v53 = vsel %vm425_vm10, %v2023_v49, %v2025_v5  ;;  %vm9569_vm10 = vcmask 515072  }
 0x3ae   :  { %2067 = vmatpush1.msra.mxu1 %v2028_v53 }
 0x3af   :  { %6367 = vmatmul.mubr.msk.f32.vlgmr.msra.gmra.mxu1 %vm964_vm14, %v7944_v15  ;;  %v2223_v15 = vpop.permute.xlu0 %2222 }
 0x3b0   :  { %v2126_v57 = vpop.permute.xlu1 %2125  ;;  %2106 = vmatprep.mubr.f32.mxu1 %v9490_v32 }
 0x3b1   :  { %v2128_v9 = vsel %vm9559_vm0, %v2124_v10, %v2126_v57  ;;  %vm9570_vm0 = vmmov %vm9569_vm10 }
 0x3b2   :  { %2165 = vmatprep.subr.mxu0 %v2128_v9 }
 0x3b3   :  { %6368 = vmatmul.mubr.msk.f32.gmra.mxu1 %vm964_vm14, %v7889_v1 }
 0x3b4   :  { %v2122_v59 = vpop.permute.xlu1 %2121  ;;  %2298 = vmatprep.mubr.f32.mxu1 %v9490_v32 }
 0x3b5   :  { %v2127_v55 = vsel %vm9560_vm1, %v2122_v59, %v2124_v10  ;;  %vm9571_vm1 = vcmask 506880  }
 0x3b6   :  { %2166 = vmatpush1.msra.mxu0 %v2127_v55 }
 0x3b7   :  { %6369 = vmatmul.mubr.msk.f32.vlgmr.msra.gmra.mxu0 %vm964_vm14, %v7950_v54  ;;  %v2322_v54 = vpop.permute.xlu0 %2321 }
 0x3b8   :  { %v2225_v56 = vpop.permute.xlu1 %2224  ;;  %2205 = vmatprep.mubr.f32.mxu0 %v9490_v32 }
 0x3b9   :  { %v2227_v52 = vsel %vm9561_vm2, %v2223_v15, %v2225_v56  ;;  %vm9572_vm2 = vmmov %vm9571_vm1 }
 0x3ba   :  { %2264 = vmatprep.subr.mxu1 %v2227_v52 }
 0x3bb   :  { %6370 = vmatmul.mubr.msk.f32.gmra.mxu0 %vm964_vm14, %v7960_v33 }
 0x3bc   :  { %v2221_v1 = vpop.permute.xlu1 %2220  ;;  %2397 = vmatprep.mubr.f32.mxu0 %v9490_v32 }
 0x3bd   :  { %v2226_v47 = vsel %vm9562_vm3, %v2221_v1, %v2223_v15  ;;  %vm9573_vm3 = vcmask 359424  }
 0x3be   :  { %2265 = vmatpush1.msra.mxu1 %v2226_v47 }
 0x3bf   :  { %6371 = vmatmul.mubr.msk.f32.vlgmr.msra.gmra.mxu1 %vm964_vm14, %v7966_v60  ;;  %v2421_v60 = vpop.permute.xlu0 %2420 }
 0x3c0   :  { %v2324_v8 = vpop.permute.xlu1 %2323  ;;  %2304 = vmatprep.mubr.f32.mxu1 %v9490_v32 }
 0x3c1   :  { %v2326_v63 = vsel %vm9563_vm4, %v2322_v54, %v2324_v8  ;;  %vm9574_vm4 = vmmov %vm9573_vm3 }
 0x3c2   :  { %2363 = vmatprep.subr.mxu0 %v2326_v63 }
 0x3c3   :  { %6372 = vmatmul.mubr.msk.f32.gmra.mxu1 %vm964_vm14, %v7893_v48 }
 0x3c4   :  { %v2320_v33 = vpop.permute.xlu1 %2319  ;;  %2496 = vmatprep.mubr.f32.mxu1 %v9490_v32 }
 0x3c5   :  { %v2325_v0 = vsel %vm9564_vm5, %v2320_v33, %v2322_v54  ;;  %vm4023_vm5 = vcmask 1041408  }
 0x3c6   :  { %2364 = vmatpush1.msra.mxu0 %v2325_v0 }
 0x3c7   :  { %6373 = vmatmul.mubr.msk.f32.vlgmr.msra.gmra.mxu0 %vm964_vm14, %v7976_v13  ;;  %v2518_v13 = vpop.permute.xlu0 %2517 }
 0x3c8   :  { %v2423_v38 = vpop.permute.xlu1 %2422  ;;  %2403 = vmatprep.mubr.f32.mxu0 %v9490_v32 }
 0x3c9   :  { %v2425_v24 = vsel %vm9565_vm6, %v2421_v60, %v2423_v38  ;;  %vm6953_vm6 = vmmov 0  }
 0x3ca   :  { %2462 = vmatprep.subr.mxu1 %v2425_v24 }
 0x3cb   :  { %6374 = vmatmul.mubr.msk.f32.gmra.mxu0 %vm964_vm14, %v7982_v17 }
 0x3cc   :  { %2595 = vmatprep.mubr.f32.mxu0 %v9490_v32 }
 0x3cd   :  { %v2419_v48 = vpop.permute.xlu1 %2418 }
 0x3ce   :  { %v2424_v29 = vsel %vm9566_vm7, %v2419_v48, %v2421_v60  ;;  %vm4904_vm7 = vcmask 211968  }
 0x3cf   :  { %2463 = vmatpush1.msra.mxu1 %v2424_v29 }
 0x3d0   :  { %6375 = vmatmul.mubr.msk.f32.vlgmr.msra.gmra.mxu1 %vm964_vm14, %v7992_v25  ;;  %v2621_v25 = vpop.permute.xlu0 %2620 }
 0x3d1   :  { %v2520_v36 = vpop.permute.xlu1 %2519  ;;  %2502 = vmatprep.mubr.f32.mxu1 %v9490_v32 }
 0x3d2   :  { %v2522_v40 = vsel %vm9567_vm8, %v2518_v13, %v2520_v36  ;;  %vm6121_vm8 = vcmask 517120  }
 0x3d3   :  { %2561 = vmatprep.subr.mxu0 %v2522_v40 }
 0x3d4   :  { %6376 = vmatmul.mubr.msk.f32.gmra.mxu1 %vm964_vm14, %v7998_v28 }
 0x3d5   :  { %v2516_v17 = vpop.permute.xlu1 %2515  ;;  %2694 = vmatprep.mubr.f32.mxu1 %v9490_v32 }
 0x3d6   :  { %v2521_v42 = vsel %vm9568_vm9, %v2516_v17, %v2518_v13 }
 0x3d7   :  { %2562 = vmatpush1.msra.mxu0 %v2521_v42 }
 0x3d8   :  { %6377 = vmatmul.mubr.msk.f32.vlgmr.msra.gmra.mxu0 %vm964_vm14, %v7839_v6  ;;  %v2718_v6 = vpop.permute.xlu0 %2717 }
 0x3d9   :  { %v2619_v2 = vpop.permute.xlu1 %2618  ;;  %2601 = vmatprep.mubr.f32.mxu0 %v9490_v32 }
 0x3da   :  { %v2623_v31 = vsel %vm9569_vm10, %v2619_v2, %v2621_v25  ;;  %vm9582_vm10 = vmmov %vm9568_vm9 }
 0x3db   :  { %2660 = vmatprep.subr.mxu1 %v2623_v31 }
 0x3dc   :  { %6378 = vmatmul.mubr.msk.f32.gmra.mxu0 %vm964_vm14, %v7801_v20 }
 0x3dd   :  { %v2617_v28 = vpop.permute.xlu1 %2616  ;;  %2793 = vmatprep.mubr.f32.mxu0 %v9490_v32 }
 0x3de   :  { %v2622_v41 = vsel %vm9570_vm0, %v2617_v28, %v2619_v2  ;;  %vm6339_vm0 = vcmask 1024  }
 0x3df   :  { %2661 = vmatpush1.msra.mxu1 %v2622_v41 }
 0x3e0   :  { %6379 = vmatmul.mubr.msk.f32.vlgmr.msra.gmra.mxu1 %vm964_vm14, %v8008_v18  ;;  %v2817_v18 = vpop.permute.xlu0 %2816 }
 0x3e1   :  { %v2720_v35 = vpop.permute.xlu1 %2719  ;;  %2700 = vmatprep.mubr.f32.mxu1 %v9490_v32 }
 0x3e2   :  { %v2722_v12 = vsel %vm9571_vm1, %v2718_v6, %v2720_v35 }
 0x3e3   :  { %2759 = vmatprep.subr.mxu0 %v2722_v12 }
 0x3e4   :  { %6380 = vmatmul.mubr.msk.f32.gmra.mxu1 %vm964_vm14, %v7897_v44 }
 0x3e5   :  { %v2716_v20 = vpop.permute.xlu1 %2715  ;;  %2892 = vmatprep.mubr.f32.mxu1 %v9490_v32 }
 0x3e6   :  { %v2721_v22 = vsel %vm9572_vm2, %v2716_v20, %v2718_v6 }
 0x3e7   :  { %2760 = vmatpush1.msra.mxu0 %v2721_v22 }
 0x3e8   :  { %6381 = vmatmul.mubr.msk.f32.vlgmr.msra.gmra.mxu0 %vm964_vm14, %v8014_v62  ;;  %v2916_v62 = vpop.permute.xlu0 %2915 }
 0x3e9   :  { %v2819_v58 = vpop.permute.xlu1 %2818  ;;  %2799 = vmatprep.mubr.f32.mxu0 %v9490_v32 }
 0x3ea   :  { %v2821_v30 = vsel %vm681_vm13, %v2817_v18, %v2819_v58 }
 0x3eb   :  { %2858 = vmatprep.subr.mxu1 %v2821_v30 }
 0x3ec   :  { %6382 = vmatmul.mubr.msk.f32.gmra.mxu0 %vm964_vm14, %v8024_v51 }
 0x3ed   :  { %v2815_v44 = vpop.permute.xlu1 %2814  ;;  %2991 = vmatprep.mubr.f32.mxu0 %v9490_v32 }
 0x3ee   :  { %v2820_v27 = vsel %vm681_vm13, %v2815_v44, %v2817_v18 }
 0x3ef   :  { %2859 = vmatpush1.msra.mxu1 %v2820_v27 }
 0x3f0   :  { %6383 = vmatmul.mubr.msk.f32.vlgmr.msra.gmra.mxu1 %vm964_vm14, %v8030_v50  ;;  %v3015_v50 = vpop.permute.xlu0 %3014 }
 0x3f1   :  { %v2918_v19 = vpop.permute.xlu1 %2917  ;;  %2898 = vmatprep.mubr.f32.mxu1 %v9490_v32 }
 0x3f2   :  { %v2920_v11 = vsel %vm9573_vm3, %v2916_v62, %v2918_v19 }
 0x3f3   :  { %2957 = vmatprep.subr.mxu0 %v2920_v11 }
 0x3f4   :  { %6384 = vmatmul.mubr.msk.f32.gmra.mxu1 %vm964_vm14, %v7901_v61 }
 0x3f5   :  { %v2914_v51 = vpop.permute.xlu1 %2913  ;;  %3090 = vmatprep.mubr.f32.mxu1 %v9490_v32 }
 0x3f6   :  { %v2919_v37 = vsel %vm9574_vm4, %v2914_v51, %v2916_v62 }
 0x3f7   :  { %2958 = vmatpush1.msra.mxu0 %v2919_v37 }
 0x3f8   :  { %6385 = vmatmul.mubr.msk.f32.vlgmr.msra.gmra.mxu0 %vm964_vm14, %v8036_v23  ;;  %v3114_v23 = vpop.permute.xlu0 %3113 }
 0x3f9   :  { %v3017_v39 = vpop.permute.xlu1 %3016  ;;  %2997 = vmatprep.mubr.f32.mxu0 %v9490_v32 }
 0x3fa   :  { %v3019_v7 = vsel %vm745_vm15, %v3015_v50, %v3017_v39 }
 0x3fb   :  { %3056 = vmatprep.subr.mxu1 %v3019_v7 }
 0x3fc   :  { %6386 = vmatmul.mubr.msk.f32.gmra.mxu0 %vm964_vm14, %v8046_v46 }
 0x3fd   :  { %v3013_v61 = vpop.permute.xlu1 %3012  ;;  %3189 = vmatprep.mubr.f32.mxu0 %v9490_v32 }
 0x3fe   :  { %v3018_v5 = vsel %vm745_vm15, %v3013_v61, %v3015_v50  ;;  %vm3649_vm15 = vcmask 204904  }
 0x3ff   :  { %3057 = vmatpush1.msra.mxu1 %v3018_v5 }
 0x400   :  { %6387 = vmatmul.mubr.msk.f32.vlgmr.msra.gmra.mxu1 %vm964_vm14, %v8050_v43  ;;  %v3213_v43 = vpop.permute.xlu0 %3212 }
 0x401   :  { %v3116_v45 = vpop.permute.xlu1 %3115  ;;  %3096 = vmatprep.mubr.f32.mxu1 %v9490_v32 }
 0x402   :  { %v3118_v14 = vsel %vm777_vm11, %v3114_v23, %v3116_v45 }
 0x403   :  { %3155 = vmatprep.subr.mxu0 %v3118_v14 }
 0x404   :  { %6388 = vmatmul.mubr.msk.f32.gmra.mxu1 %vm964_vm14, %v7905_v34  ;;  %v3312_v9 = vpop.permute.xlu0 %3311 }
 0x405   :  { %v3112_v46 = vpop.permute.xlu1 %3111  ;;  %3288 = vmatprep.mubr.f32.mxu1 %v9490_v32 }
 0x406   :  { %v3117_v49 = vsel %vm777_vm11, %v3112_v46, %v3114_v23  ;;  %vm9575_vm11 = vcmask 326656  }
 0x407   :  { %3156 = vmatpush1.msra.mxu0 %v3117_v49  ;;  %vm9576_vm13 = vmmov %vm9575_vm11 }
 0x408   :  { %6389 = vmatmul.mubr.msk.f32.vlgmr.msra.gmra.mxu0 %vm964_vm14, %v8056_v26  ;;  %v3306_v55 = vpop.permute.xlu0 %3305 }
 0x409   :  { %v3215_v53 = vpop.permute.xlu1 %3214  ;;  %3195 = vmatprep.mubr.f32.mxu0 %v9490_v32 }
 0x40a   :  { %v3217_v10 = vsel %vm809_vm12, %v3213_v43, %v3215_v53 }
 0x40b   :  { %3254 = vmatprep.subr.mxu1 %v3217_v10 }
 0x40c   :  { %6390 = vmatmul.mubr.msk.f32.gmra.mxu0 %vm964_vm14, %v8060_v21  ;;  %v3308_v52 = vpop.permute.xlu0 %3307 }
 0x40d   :  { %v3211_v34 = vpop.permute.xlu1 %3210  ;;  %3387 = vmatprep.mubr.f32.mxu0 %v9490_v32 }
 0x40e   :  { %v3216_v57 = vsel %vm809_vm12, %v3211_v34, %v3213_v43  ;;  %vm3520_vm12 = vcmask 98304  }
 0x40f   :  { %3255 = vmatpush1.msra.mxu1 %v3216_v57 }
 0x410   :  { %6391 = vmatmul.mubr.msk.f32.vlgmr.msra.gmra.mxu1 %vm964_vm14, %v8067_v3  ;;  %6530 = vmatprep.subr.mxu1 %v9490_v32 }
 0x411   :  { %v3314_v26 = vpop.permute.xlu1 %3313  ;;  %3294 = vmatprep.mubr.f32.mxu1 %v9490_v32 }
 0x412   :  { %v3316_v59 = vsel %vm9575_vm11, %v3312_v9, %v3314_v26 }
 0x413   :  { %3353 = vmatprep.subr.mxu0 %v3316_v59 }
 0x415   :  { %v3310_v21 = vpop.permute.xlu1 %3309 }
 0x416   :  { %v3315_v15 = vsel %vm9576_vm13, %v3310_v21, %v3312_v9 }
 0x417   :  { %3354 = vmatpush1.msra.mxu0 %v3315_v15 }
 0x418   :  { %6393 = vmatmul.mubr.msk.f32.vlgmr.msra.gmra.mxu0 %vm964_vm14, %v3306_v55  ;;  %6541 = vmatprep.subr.mxu0 %v9490_v32 }
 0x419   :  { %v3209_v56 = vpop.permute.xlu1 %3208  ;;  %3393 = vmatprep.mubr.f32.mxu0 %v9490_v32 }
 0x41a   :  { %6392 = vmatmul.mubr.msk.f32.gmra.mxu1 %vm964_vm14, %v3209_v56 }
 0x41c   :  { %6394 = vmatmul.mubr.msk.f32.gmra.mxu0 %vm964_vm14, %v3308_v52  ;;  %vm3974_vm14 = vcmask 205824  }
 0x41f   :  { %v8305_v1 = vpop.f32.mrf.mxu0 }
 0x420   :  { %v8303_v3 = vpop.f32.mrf.mxu1 }
 0x421   :  { %v8309_v8 = vpop.f32.mrf.mxu0 }
 0x422   :  { %v1043_v47 = vpop.f32.mrf.mxu1 }
 0x424   :  { %v8307_v54 = vpop.f32.mrf.mxu1 }
 0x426   :  { %v8311_v63 = vpop.f32.mrf.mxu1 }
 0x428   :  { %v8313_v33 = vpop.f32.mrf.mxu1  ;;  %v8315_v0 = vpop.f32.mrf.mxu0 }
 0x42a   :  { %v1124_v60 = vpop.f32.mrf.mxu1  ;;  %v8317_v38 = vpop.f32.mrf.mxu0 }
 0x42b   :  { %v1125_v24 = vadd.f32 %v1124_v60, %v1043_v47 }
 0x42c   :  { %v8319_v48 = vpop.f32.mrf.mxu0 }
 0x42e   :  { %v1219_v29 = vpop.f32.mrf.mxu0 }
 0x42f   :  { %v1225_v13 = vadd.f32 %v1219_v29, %v1125_v24  ;;  %v8321_v36 = vpop.f32.mrf.mxu1 }
 0x431   :  { %v8323_v40 = vpop.f32.mrf.mxu1 }
 0x433   :  { %v8325_v17 = vpop.f32.mrf.mxu1 }
 0x435   :  { %v1318_v42 = vpop.f32.mrf.mxu1 }
 0x436   :  { %v1324_v25 = vadd.f32 %v1318_v42, %v1225_v13 }
 0x437   :  { %v8327_v2 = vpop.f32.mrf.mxu0 }
 0x439   :  { %v8329_v31 = vpop.f32.mrf.mxu0 }
 0x43b   :  { %v8331_v28 = vpop.f32.mrf.mxu0 }
 0x43d   :  { %v1417_v41 = vpop.f32.mrf.mxu0 }
 0x43e   :  { %v1423_v6 = vadd.f32 %v1417_v41, %v1324_v25 }
 0x43f   :  { %v8333_v35 = vpop.f32.mrf.mxu1 }
 0x441   :  { %v8335_v12 = vpop.f32.mrf.mxu1 }
 0x443   :  { %v8337_v20 = vpop.f32.mrf.mxu1 }
 0x445   :  { %v1516_v22 = vpop.f32.mrf.mxu1 }
 0x446   :  { %v1522_v18 = vadd.f32 %v1516_v22, %v1423_v6 }
 0x447   :  { %v8339_v58 = vpop.f32.mrf.mxu0 }
 0x449   :  { %v8341_v30 = vpop.f32.mrf.mxu0 }
 0x44b   :  { %v8343_v44 = vpop.f32.mrf.mxu0 }
 0x44d   :  { %v1615_v27 = vpop.f32.mrf.mxu0 }
 0x44e   :  { %v1621_v62 = vadd.f32 %v1615_v27, %v1522_v18 }
 0x44f   :  { %v8345_v19 = vpop.f32.mrf.mxu1 }
 0x451   :  { %v8347_v11 = vpop.f32.mrf.mxu1 }
 0x453   :  { %v8349_v51 = vpop.f32.mrf.mxu1 }
 0x455   :  { %v1714_v37 = vpop.f32.mrf.mxu1 }
 0x456   :  { %v1720_v50 = vadd.f32 %v1714_v37, %v1621_v62 }
 0x457   :  { %v8351_v39 = vpop.f32.mrf.mxu0 }
 0x459   :  { %v8353_v7 = vpop.f32.mrf.mxu0 }
 0x45b   :  { %v8355_v61 = vpop.f32.mrf.mxu0 }
 0x45d   :  { %v1813_v5 = vpop.f32.mrf.mxu0 }
 0x45e   :  { %v1819_v23 = vadd.f32 %v1813_v5, %v1720_v50 }
 0x45f   :  { %v8357_v45 = vpop.f32.mrf.mxu1 }
 0x461   :  { %v8359_v14 = vpop.f32.mrf.mxu1 }
 0x463   :  { %v8361_v46 = vpop.f32.mrf.mxu1 }
 0x465   :  { %v1912_v49 = vpop.f32.mrf.mxu1 }
 0x466   :  { %v1918_v43 = vadd.f32 %v1912_v49, %v1819_v23 }
 0x467   :  { %v8363_v53 = vpop.f32.mrf.mxu0 }
 0x469   :  { %v8365_v10 = vpop.f32.mrf.mxu0 }
 0x46b   :  { %v8367_v34 = vpop.f32.mrf.mxu0 }
 0x46d   :  { %v2011_v57 = vpop.f32.mrf.mxu0 }
 0x46e   :  { %v2017_v9 = vadd.f32 %v2011_v57, %v1918_v43 }
 0x46f   :  { %v8369_v26 = vpop.f32.mrf.mxu1 }
 0x471   :  { %v8371_v59 = vpop.f32.mrf.mxu1 }
 0x473   :  { %v8373_v55 = vpop.f32.mrf.mxu1 }
 0x475   :  { %v2110_v21 = vpop.f32.mrf.mxu1 }
 0x476   :  { %v2116_v15 = vadd.f32 %v2110_v21, %v2017_v9  ;;  %v1117_v21 = vadd.f32 %v8307_v54, %v8305_v1 }
 0x477   :  { %v8375_v56 = vpop.f32.mrf.mxu0 }
 0x479   :  { %v8377_v52 = vpop.f32.mrf.mxu0 }
 0x47b   :  { %v8379_v47 = vpop.f32.mrf.mxu0 }
 0x47d   :  { %v2209_v60 = vpop.f32.mrf.mxu0 }
 0x47e   :  { %v2215_v24 = vadd.f32 %v2209_v60, %v2116_v15 }
 0x47f   :  { %v8381_v29 = vpop.f32.mrf.mxu1 }
 0x481   :  { %v8383_v13 = vpop.f32.mrf.mxu1 }
 0x483   :  { %v8385_v42 = vpop.f32.mrf.mxu1 }
 0x485   :  { %v2308_v25 = vpop.f32.mrf.mxu1 }
 0x486   :  { %v2314_v41 = vadd.f32 %v2308_v25, %v2215_v24  ;;  %v1119_v24 = vadd.f32 %v8311_v63, %v8309_v8  ;;  %v1222_v25 = vadd.f32 %v8315_v0, %v1117_v21 }
 0x487   :  { %v8387_v6 = vpop.f32.mrf.mxu0 }
 0x488   :  { %v1223_v32 = vadd.f32 %v8317_v38, %v1119_v24  ;;  %v1321_v4 = vadd.f32 %v8321_v36, %v1222_v25 }
 0x489   :  { %v8389_v22 = vpop.f32.mrf.mxu0 }
 0x48a   :  { %v1322_v54 = vadd.f32 %v8323_v40, %v1223_v32 }
 0x48b   :  { %v8391_v18 = vpop.f32.mrf.mxu0 }
 0x48c   :  { %v1421_v0 = vadd.f32 %v8329_v31, %v1322_v54 }
 0x48d   :  { %v2407_v27 = vpop.f32.mrf.mxu0 }
 0x48e   :  { %v8393_v62 = vadd.f32 %v2407_v27, %v2314_v41  ;;  %v1123_v27 = vadd.f32 %v8313_v33, %v8303_v3  ;;  %v1520_v38 = vadd.f32 %v8335_v12, %v1421_v0 }
 0x490   :  { %v8395_v37 = vpop.f32.mrf.mxu1  ;;  %v1224_v1 = vadd.f32 %v8319_v48, %v1123_v27 }
 0x492   :  { %v8397_v50 = vpop.f32.mrf.mxu1  ;;  %v1323_v63 = vadd.f32 %v8325_v17, %v1224_v1 }
 0x494   :  { %v8401_v23 = vpop.f32.mrf.mxu1  ;;  %v1422_v33 = vadd.f32 %v8331_v28, %v1323_v63 }
 0x496   :  { %v8405_v43 = vpop.f32.mrf.mxu1  ;;  %v1521_v32 = vadd.f32 %v8337_v20, %v1422_v33 }
 0x498   :  { %v8399_v5 = vpop.f32.mrf.mxu0  ;;  %v1620_v17 = vadd.f32 %v8343_v44, %v1521_v32 }
 0x49a   :  { %v8403_v49 = vpop.f32.mrf.mxu0  ;;  %v1719_v12 = vadd.f32 %v8349_v51, %v1620_v17 }
 0x49c   :  { %v8407_v57 = vpop.f32.mrf.mxu0  ;;  %v1818_v20 = vadd.f32 %v8355_v61, %v1719_v12 }
 0x49e   :  { %v8413_v15 = vpop.f32.mrf.mxu0 }
 0x49f   :  { %9577 = vst [vmem:[#allocation8_spill] sm:$0xff] %v8413_v15  ;;  %v1420_v15 = vadd.f32 %v8327_v2, %v1321_v4  ;;  %v1619_v4 = vadd.f32 %v8341_v30, %v1520_v38 }
 0x4a0   :  { %v8409_v9 = vpop.f32.mrf.mxu1 }
 0x4a1   :  { %v1519_v21 = vadd.f32 %v8333_v35, %v1420_v15  ;;  %v1718_v2 = vadd.f32 %v8347_v11, %v1619_v4  ;;  %v1917_v11 = vadd.f32 %v8361_v46, %v1818_v20 }
 0x4a2   :  { %v8415_v60 = vpop.f32.mrf.mxu1 }
 0x4a3   :  { %v1618_v36 = vadd.f32 %v8339_v58, %v1519_v21  ;;  %v1817_v58 = vadd.f32 %v8353_v7, %v1718_v2  ;;  %v2016_v51 = vadd.f32 %v8367_v34, %v1917_v11 }
 0x4a4   :  { %v8426_v16 = vpop.f32.mrf.mxu1 }
 0x4a5   :  { %v1717_v40 = vadd.f32 %v8345_v19, %v1618_v36  ;;  %v1916_v30 = vadd.f32 %v8359_v14, %v1817_v58  ;;  %v2115_v61 = vadd.f32 %v8373_v55, %v2016_v51 }
 0x4a6   :  { %v8434_v3 = vpop.f32.mrf.mxu1 }
 0x4a7   :  { %v1816_v31 = vadd.f32 %v8351_v39, %v1717_v40  ;;  %v2015_v39 = vadd.f32 %v8365_v10, %v1916_v30  ;;  %v2214_v10 = vadd.f32 %v8379_v47, %v2115_v61 }
 0x4a8   :  { %v8420_v41 = vpop.f32.mrf.mxu0 }
 0x4a9   :  { %v1915_v15 = vadd.f32 %v8357_v45, %v1816_v31  ;;  %v2114_v7 = vadd.f32 %v8371_v59, %v2015_v39  ;;  %v2313_v34 = vadd.f32 %v8385_v42, %v2214_v10 }
 0x4aa   :  { %v2797_v8 = vpop.f32.mrf.mxu0 }
 0x4ab   :  { %v2014_v19 = vadd.f32 %v8363_v53, %v1915_v15  ;;  %v2213_v14 = vadd.f32 %v8377_v52, %v2114_v7  ;;  %v2412_v52 = vadd.f32 %v8391_v18, %v2313_v34  ;;  %v2512_v18 = vadd.f32 %v8405_v43, %v8393_v62 }
 0x4ac   :  { %v2801_v48 = vpop.f32.mrf.mxu0 }
 0x4ad   :  { %v2113_v27 = vadd.f32 %v8369_v26, %v2014_v19  ;;  %v2312_v26 = vadd.f32 %v8383_v13, %v2213_v14  ;;  %v2511_v47 = vadd.f32 %v8401_v23, %v2412_v52  ;;  %v6950_v23 = vmov 1966171168  }
 0x4ae   :  { %v2803_v35 = vpop.f32.mrf.mxu0  ;;  %v3408_v40 = vunpack.c.l.s4 %v6950_v23 }
 0x4af   :  { %v2212_v45 = vadd.f32 %v8375_v56, %v2113_v27  ;;  %v2411_v59 = vadd.f32 %v8389_v22, %v2312_v26  ;;  %v2610_v22 = vadd.f32 %v8407_v57, %v2511_v47 }
 0x4b0   :  { %v2894_v24 = vpop.f32.mrf.mxu1  ;;  %v3409_v43 = vunpack.c.0.s8 %v3408_v40 }
 0x4b1   :  { %v2311_v53 = vadd.f32 %v8381_v29, %v2212_v45  ;;  %v2510_v29 = vadd.f32 %v8397_v50, %v2411_v59 }
 0x4b2   :  { %v2896_v28 = vpop.f32.mrf.mxu1 }
 0x4b3   :  { %v2410_v0 = vadd.f32 %v8387_v6, %v2311_v53  ;;  %v2609_v13 = vadd.f32 %v8403_v49, %v2510_v29  ;;  %v9578_v49 = vld [vmem:[#allocation8_spill] sm:$0xff] }
 0x4b4   :  { %v2900_v44 = vpop.f32.mrf.mxu1  ;;  %v2611_v17 = vadd.f32 %v9578_v49, %v2512_v18 }
 0x4b5   :  { %v2509_v56 = vadd.f32 %v8395_v37, %v2410_v0  ;;  %v2708_v37 = vadd.f32 %v8415_v60, %v2609_v13 }
 0x4b6   :  { %v2902_v54 = vpop.f32.mrf.mxu1  ;;  %v2710_v60 = vadd.f32 %v8434_v3, %v2611_v17 }
 0x4b7   :  { %v2608_v33 = vadd.f32 %v8399_v5, %v2509_v56  ;;  %v2709_v5 = vadd.f32 %v8426_v16, %v2610_v22  ;;  %v2807_v32 = vadd.f32 %v2797_v8, %v2708_v37 }
 0x4b8   :  { %v2993_v25 = vpop.f32.mrf.mxu0  ;;  %v2809_v20 = vadd.f32 %v2803_v35, %v2710_v60 }
 0x4b9   :  { %v2707_v6 = vadd.f32 %v8409_v9, %v2608_v33  ;;  %v2808_v2 = vadd.f32 %v2801_v48, %v2709_v5  ;;  %v2906_v31 = vadd.f32 %v2896_v28, %v2807_v32  ;;  %v9579_v28 = vld [vmem:[#allocation5_spill] sm:$0xff] }
 0x4ba   :  { %v2995_v1 = vpop.f32.mrf.mxu0  ;;  %v2908_v30 = vadd.f32 %v2902_v54, %v2809_v20 }
 0x4bb   :  { %v2806_v36 = vadd.f32 %v8420_v41, %v2707_v6  ;;  %v2907_v58 = vadd.f32 %v2900_v44, %v2808_v2  ;;  %v3005_v15 = vadd.f32 %v2995_v1, %v2906_v31 }
 0x4bc   :  { %v2999_v63 = vpop.f32.mrf.mxu0 }
 0x4bd   :  { %v2905_v4 = vadd.f32 %v2894_v24, %v2806_v36  ;;  %v3006_v16 = vadd.f32 %v2999_v63, %v2907_v58  ;;  %v9580_v36 = vld [vmem:[#allocation6_spill] sm:$0xff] }
 0x4be   :  { %v3001_v21 = vpop.f32.mrf.mxu0 }
 0x4bf   :  { %v3004_v57 = vadd.f32 %v2993_v25, %v2905_v4  ;;  %v8481_v25 = vsub.s32 %v3409_v43, %v9579_v28  ;;  %v3007_v3 = vadd.f32 %v3001_v21, %v2908_v30 }
 0x4c0   :  { %v3092_v46 = vpop.f32.mrf.mxu1 }
 0x4c1   :  { %v3103_v62 = vadd.f32 %v3092_v46, %v3004_v57 }
 0x4c2   :  { %v3094_v55 = vpop.f32.mrf.mxu1 }
 0x4c3   :  { %v3104_v8 = vadd.f32 %v3094_v55, %v3005_v15 }
 0x4c4   :  { %v3098_v42 = vpop.f32.mrf.mxu1 }
 0x4c5   :  { %v3105_v39 = vadd.f32 %v3098_v42, %v3006_v16 }
 0x4c6   :  { %v3100_v9 = vpop.f32.mrf.mxu1 }
 0x4c7   :  { %v3106_v45 = vadd.f32 %v3100_v9, %v3007_v3 }
 0x4c8   :  { %v3191_v38 = vpop.f32.mrf.mxu0 }
 0x4c9   :  { %v3202_v24 = vadd.f32 %v3191_v38, %v3103_v62 }
 0x4ca   :  { %v3193_v50 = vpop.f32.mrf.mxu0 }
 0x4cb   :  { %v3203_v27 = vadd.f32 %v3193_v50, %v3104_v8 }
 0x4cc   :  { %v3197_v12 = vpop.f32.mrf.mxu0 }
 0x4cd   :  { %v3204_v7 = vadd.f32 %v3197_v12, %v3105_v39 }
 0x4ce   :  { %v3199_v19 = vpop.f32.mrf.mxu0 }
 0x4cf   :  { %v3205_v46 = vadd.f32 %v3199_v19, %v3106_v45 }
 0x4d0   :  { %v3290_v41 = vpop.f32.mrf.mxu1 }
 0x4d1   :  { %v3301_v48 = vadd.f32 %v3290_v41, %v3202_v24 }
 0x4d2   :  { %v3292_v11 = vpop.f32.mrf.mxu1 }
 0x4d3   :  { %v3302_v44 = vadd.f32 %v3292_v11, %v3203_v27 }
 0x4d8   :  { %v3389_v51 = vpop.f32.mrf.mxu0 }
 0x4d9   :  { %v3400_v1 = vadd.f32 %v3389_v51, %v3301_v48 }
 0x4da   :  { %v3296_v61 = vpop.f32.mrf.mxu1  ;;  %v3391_v35 = vpop.f32.mrf.mxu0 }
 0x4db   :  { %v3406_v14 = vcombine.high %v3400_v1, %v3400_v1  ;;  %v3413_v53 = vrot.slane %v3400_v1, %v8481_v25  ;;  %v3303_v54 = vadd.f32 %v3296_v61, %v3204_v7  ;;  %v8484_v63 = vadd.f32 %v3391_v35, %v3302_v44 }
 0x4dc   :  { %v3298_v10 = vpop.f32.mrf.mxu1  ;;  %v3395_v26 = vpop.f32.mrf.mxu0 }
 0x4dd   :  { %v3420_v0 = vrot.slane %v3406_v14, %v8481_v25  ;;  %v3421_v34 = vcombine.high %v3413_v53, %v3413_v53  ;;  %v3429_v59 = vrot.slane %v3413_v53, %v8481_v25  ;;  %v3675_v56 = vrot.slane %v8484_v63, %v8481_v25 }
 0x4de   :  { %v3304_v21 = vadd.f32 %v3298_v10, %v3205_v46  ;;  %v3402_v55 = vadd.f32 %v3395_v26, %v3303_v54  ;;  %v3397_v52 = vpop.f32.mrf.mxu0  ;;  %v3668_v48 = vcombine.high %v8484_v63, %v8484_v63 }
 0x4df   :  { %v3422_v29 = vcombine.high %v3420_v0, %v3420_v0  ;;  %v3436_v33 = vrot.slane %v3420_v0, %v8481_v25  ;;  %v3443_v38 = vrot.slane %v3421_v34, %v8481_v25  ;;  %v3451_v47 = vcombine.high %v3429_v59, %v3429_v59  ;;  %3521 = vst.msk [vmem:[#allocation3] sm:$0x1] %vm3520_vm12, %v3429_v59 }
 0x4e0   :  { %v3691_v13 = vrot.slane %v3675_v56, %v8481_v25  ;;  %v3455_v6 = vcombine.high %v3402_v55, %v3402_v55  ;;  %v3462_v22 = vrot.slane %v3402_v55, %v8481_v25  ;;  %v3403_v37 = vadd.f32 %v3397_v52, %v3304_v21 }
 0x4e1   :  { %v8495_v42 = vrot.slane %v3422_v29, %v8481_v25  ;;  %v3540_v18 = vrot.slane %v3429_v59, %v9580_v36  ;;  %3522 = vst.msk [vmem:[#allocation3 + $0x2] sm:$0x1] %vm3520_vm12, %v3443_v38  ;;  %3523 = vst.msk [vmem:[#allocation3 + $0x4] sm:$0x1] %vm3520_vm12, %v3451_v47  ;;  %v3683_v2 = vcombine.high %v3675_v56, %v3675_v56 }
 0x4e2   :  { %3525 = vst.msk [vmem:[#allocation3 + $0x8] sm:$0x1] %vm3520_vm12, %v3436_v33  ;;  %v3769_v50 = vrot.slane %v3691_v13, %v9580_v36  ;;  %v3469_v5 = vrot.slane %v3455_v6, %v8481_v25  ;;  %v3470_v32 = vcombine.high %v3462_v22, %v3462_v22  ;;  %v3478_v4 = vrot.slane %v3462_v22, %v8481_v25 }
 0x4e3   :  { %3601 = vrot.lane.b32.xlu0 %v3540_v18, %s6937_s2  ;;  %3526 = vst.msk [vmem:[#allocation3 + $0xa] sm:$0x1] %vm3520_vm12, %v8495_v42  ;;  %v3717_v23 = vcombine.high %v3403_v37, %v3403_v37  ;;  %v8519_v31 = vrot.slane %v3403_v37, %v8481_v25  ;;  %v3548_v60 = vrot.slane %v3451_v47, %v9580_v36 }
 0x4e4   :  { %v3471_v40 = vcombine.high %v3469_v5, %v3469_v5  ;;  %v8509_v49 = vrot.slane %v3469_v5, %v8481_v25  ;;  %v8512_v17 = vrot.slane %v3470_v32, %v8481_v25  ;;  %v8514_v9 = vcombine.high %v3478_v4, %v3478_v4  ;;  %3830 = vrot.lane.b32.xlu1 %v3769_v50, %s6951_s15 }
 0x4e5   :  { %3529 = vst.msk [vmem:[#allocation3 + $0x10] sm:$0x1] %vm3520_vm12, %v3478_v4  ;;  %v3731_v57 = vrot.slane %v3717_v23, %v8481_v25  ;;  %v3732_v41 = vcombine.high %v8519_v31, %v8519_v31  ;;  %v3452_v62 = vcombine.high %v3436_v33, %v3436_v33  ;;  %v3453_v43 = vcombine.high %v3443_v38, %v3443_v38 }
 0x4e6   :  { %v8524_v12 = vrot.slane %v3471_v40, %v8481_v25  ;;  %3530 = vst.msk [vmem:[#allocation3 + $0x12] sm:$0x1] %vm3520_vm12, %v8512_v17  ;;  %3531 = vst.msk [vmem:[#allocation3 + $0x14] sm:$0x1] %vm3520_vm12, %v8514_v9  ;;  %v3705_v20 = vrot.slane %v3683_v2, %v8481_v25  ;;  %v3556_v24 = vrot.slane %v3436_v33, %v9580_v36 }
 0x4e7   :  { %3533 = vst.msk [vmem:[#allocation3 + $0x18] sm:$0x1] %vm3520_vm12, %v8509_v49  ;;  %v3733_v58 = vcombine.high %v3731_v57, %v3731_v57  ;;  %v8535_v15 = vrot.slane %v3731_v57, %v8481_v25  ;;  %3605 = vrot.lane.b32.xlu0 %v3548_v60, %s6937_s2  ;;  %v8543_v16 = vrot.slane %v3732_v41, %v8481_v25  ;;  %3524 = vst.msk [vmem:[#allocation3 + $0x6] sm:$0x1] %vm3520_vm12, %v3453_v43 }
 0x4e8   :  { %3894 = vrot.lane.b32.xlu1 %v3769_v50, %s6952_s28  ;;  %3534 = vst.msk [vmem:[#allocation3 + $0x1a] sm:$0x1] %vm3520_vm12, %v8524_v12  ;;  %v3713_v30 = vcombine.high %v3691_v13, %v3691_v13  ;;  %v3544_v19 = vrot.slane %v3443_v38, %v9580_v36  ;;  %3527 = vst.msk [vmem:[#allocation3 + $0xc] sm:$0x1] %vm3520_vm12, %v3452_v62  ;;  %v3454_v11 = vcombine.high %v8495_v42, %v8495_v42 }
 0x4e9   :  { %v8546_v8 = vrot.slane %v3733_v58, %v8481_v25  ;;  %v3773_v39 = vrot.slane %v3705_v20, %v9580_v36  ;;  %v8559_v27 = vcombine.high %v8509_v49, %v8509_v49  ;;  %v8566_v3 = vcombine.high %v8512_v17, %v8512_v17 }
 0x4ea   :  { %v3777_v28 = vrot.slane %v3713_v30, %v9580_v36  ;;  %3528 = vst.msk [vmem:[#allocation3 + $0xe] sm:$0x1] %vm3520_vm12, %v3454_v11  ;;  %v8575_v51 = vcombine.high %v8524_v12, %v8524_v12  ;;  %v3682_v7 = vrot.slane %v3668_v48, %v8481_v25  ;;  %v3564_v44 = vrot.slane %v3452_v62, %v9580_v36 }
 0x4eb   :  { %3609 = vrot.lane.b32.xlu0 %v3556_v24, %s6937_s2  ;;  %3535 = vst.msk [vmem:[#allocation3 + $0x1c] sm:$0x1] %vm3520_vm12, %v8559_v27  ;;  %3532 = vst.msk [vmem:[#allocation3 + $0x16] sm:$0x1] %vm3520_vm12, %v8566_v3  ;;  %v3552_v45 = vrot.slane %v3453_v43, %v9580_v36  ;;  %v3715_v61 = vcombine.high %v3705_v20, %v3705_v20  ;;  %v3572_v35 = vrot.slane %v3478_v4, %v9580_v36 }
 0x4ec   :  { %3603 = vrot.lane.b32.xlu1 %v3544_v19, %s6937_s2  ;;  %3536 = vst.msk [vmem:[#allocation3 + $0x1e] sm:$0x1] %vm3520_vm12, %v8575_v51  ;;  %v3698_v1 = vrot.slane %v3682_v7, %v8481_v25  ;;  %v3684_v53 = vcombine.high %v3682_v7, %v3682_v7  ;;  %v3560_v10 = vrot.slane %v8495_v42, %v9580_v36 }
 0x4ed   :  { %v3781_v54 = vrot.slane %v3715_v61, %v9580_v36  ;;  %v3580_v34 = vrot.slane %v8514_v9, %v9580_v36  ;;  %v3740_v59 = vrot.slane %v8519_v31, %v8481_v25  ;;  %v3568_v56 = vrot.slane %v3454_v11, %v9580_v36 }
 0x4ee   :  { %v3785_v14 = vrot.slane %v3698_v1, %v9580_v36  ;;  %v3712_v63 = vrot.slane %v3684_v53, %v8481_v25  ;;  %v3714_v46 = vcombine.high %v3698_v1, %v3698_v1  ;;  %v3588_v21 = vrot.slane %v8509_v49, %v9580_v36 }
 0x4ef   :  { %3832 = vrot.lane.b32.xlu0 %v3773_v39, %s6951_s15  ;;  %v3801_v52 = vrot.slane %v3740_v59, %v9580_v36  ;;  %v3762_v25 = vcombine.high %v3740_v59, %v3740_v59  ;;  %v3576_v33 = vrot.slane %v8512_v17, %v9580_v36  ;;  %v3805_v38 = vrot.slane %v8543_v16, %v9580_v36 }
 0x4f0   :  { %3834 = vrot.lane.b32.xlu1 %v3777_v28, %s6951_s15  ;;  %v3789_v26 = vrot.slane %v3712_v63, %v9580_v36  ;;  %v3793_v0 = vrot.slane %v3714_v46, %v9580_v36  ;;  %v3716_v55 = vcombine.high %v3712_v63, %v3712_v63  ;;  %v3764_v13 = vcombine.high %v8543_v16, %v8543_v16 }
 0x4f1   :  { %v3809_v47 = vrot.slane %v3762_v25, %v9580_v36  ;;  %v3596_v6 = vrot.slane %v8559_v27, %v9580_v36  ;;  %v3584_v42 = vrot.slane %v8566_v3, %v9580_v36  ;;  %v3817_v37 = vrot.slane %v8535_v15, %v9580_v36 }
 0x4f2   :  { %v3797_v29 = vrot.slane %v3716_v55, %v9580_v36  ;;  %v3813_v22 = vrot.slane %v3764_v13, %v9580_v36  ;;  %v3821_v18 = vrot.slane %v8546_v8, %v9580_v36  ;;  %v3763_v50 = vcombine.high %v8535_v15, %v8535_v15 }
 0x4f3   :  { %3896 = vrot.lane.b32.xlu0 %v3773_v39, %s6952_s28  ;;  %v3592_v5 = vrot.slane %v8524_v12, %v9580_v36  ;;  %v3765_v32 = vcombine.high %v8546_v8, %v8546_v8  ;;  %v3600_v40 = vrot.slane %v8575_v51, %v9580_v36 }
 0x4f4   :  { %3898 = vrot.lane.b32.xlu1 %v3777_v28, %s6952_s28  ;;  %v3825_v4 = vrot.slane %v3763_v50, %v9580_v36 }
 0x4f5   :  { %v3829_v23 = vrot.slane %v3765_v32, %v9580_v36 }
 0x4f7   :  { %3613 = vrot.lane.b32.xlu0 %v3564_v44, %s6937_s2 }
 0x4f8   :  { %3607 = vrot.lane.b32.xlu1 %v3552_v45, %s6937_s2 }
 0x4fb   :  { %3617 = vrot.lane.b32.xlu0 %v3572_v35, %s6937_s2 }
 0x4fc   :  { %3838 = vrot.lane.b32.xlu1 %v3785_v14, %s6951_s15 }
 0x4ff   :  { %3836 = vrot.lane.b32.xlu0 %v3781_v54, %s6951_s15 }
 0x500   :  { %3902 = vrot.lane.b32.xlu1 %v3785_v14, %s6952_s28 }
 0x503   :  { %3900 = vrot.lane.b32.xlu0 %v3781_v54, %s6952_s28 }
 0x504   :  { %3611 = vrot.lane.b32.xlu1 %v3560_v10, %s6937_s2 }
 0x507   :  { %3840 = vrot.lane.b32.xlu0 %v3789_v26, %s6951_s15 }
 0x508   :  { %3842 = vrot.lane.b32.xlu1 %v3793_v0, %s6951_s15 }
 0x50b   :  { %3904 = vrot.lane.b32.xlu0 %v3789_v26, %s6952_s28 }
 0x50c   :  { %3906 = vrot.lane.b32.xlu1 %v3793_v0, %s6952_s28 }
 0x50f   :  { %3621 = vrot.lane.b32.xlu0 %v3580_v34, %s6937_s2 }
 0x510   :  { %3615 = vrot.lane.b32.xlu1 %v3568_v56, %s6937_s2 }
 0x513   :  { %3625 = vrot.lane.b32.xlu0 %v3588_v21, %s6937_s2 }
 0x514   :  { %3846 = vrot.lane.b32.xlu1 %v3801_v52, %s6951_s15 }
 0x517   :  { %3844 = vrot.lane.b32.xlu0 %v3797_v29, %s6951_s15 }
 0x518   :  { %3910 = vrot.lane.b32.xlu1 %v3801_v52, %s6952_s28 }
 0x51b   :  { %3908 = vrot.lane.b32.xlu0 %v3797_v29, %s6952_s28 }
 0x51c   :  { %3619 = vrot.lane.b32.xlu1 %v3576_v33, %s6937_s2 }
 0x51f   :  { %3848 = vrot.lane.b32.xlu0 %v3805_v38, %s6951_s15 }
 0x520   :  { %3850 = vrot.lane.b32.xlu1 %v3809_v47, %s6951_s15 }
 0x523   :  { %3912 = vrot.lane.b32.xlu0 %v3805_v38, %s6952_s28 }
 0x524   :  { %3914 = vrot.lane.b32.xlu1 %v3809_v47, %s6952_s28 }
 0x527   :  { %3629 = vrot.lane.b32.xlu0 %v3596_v6, %s6937_s2 }
 0x528   :  { %3623 = vrot.lane.b32.xlu1 %v3584_v42, %s6937_s2 }
 0x52b   :  { %3852 = vrot.lane.b32.xlu0 %v3813_v22, %s6951_s15 }
 0x52c   :  { %3854 = vrot.lane.b32.xlu1 %v3817_v37, %s6951_s15 }
 0x52f   :  { %3916 = vrot.lane.b32.xlu0 %v3813_v22, %s6952_s28 }
 0x530   :  { %3918 = vrot.lane.b32.xlu1 %v3817_v37, %s6952_s28 }
 0x533   :  { %3856 = vrot.lane.b32.xlu0 %v3821_v18, %s6951_s15 }
 0x534   :  { %3627 = vrot.lane.b32.xlu1 %v3592_v5, %s6937_s2 }
 0x537   :  { %3920 = vrot.lane.b32.xlu0 %v3821_v18, %s6952_s28 }
 0x538   :  { %3858 = vrot.lane.b32.xlu1 %v3825_v4, %s6951_s15 }
 0x53b   :  { %3860 = vrot.lane.b32.xlu0 %v3829_v23, %s6951_s15 }
 0x53c   :  { %3922 = vrot.lane.b32.xlu1 %v3825_v4, %s6952_s28 }
 0x53f   :  { %3924 = vrot.lane.b32.xlu0 %v3829_v23, %s6952_s28 }
 0x540   :  { %3631 = vrot.lane.b32.xlu1 %v3600_v40, %s6937_s2 }
 0x555   :  { %v3602_v49 = vpop.permute.xlu0 %3601 }
 0x556   :  { %3650 = vst.msk [vmem:[#allocation3] sm:$0x1] %vm3649_vm15, %v3602_v49  ;;  %v3831_v17 = vpop.permute.xlu1 %3830 }
 0x557   :  { %3878 = vst.msk [vmem:[#allocation3 + $0x1] sm:$0x1] %vm3520_vm12, %v3831_v17 }
 0x559   :  { %v3606_v9 = vpop.permute.xlu0 %3605 }
 0x55a   :  { %3652 = vst.msk [vmem:[#allocation3 + $0x4] sm:$0x1] %vm3649_vm15, %v3606_v9  ;;  %v3895_v2 = vpop.permute.xlu1 %3894 }
 0x55b   :  { %3942 = vst.msk [vmem:[#allocation3 + $0x1] sm:$0x1] %vm3649_vm15, %v3895_v2 }
 0x55d   :  { %v3610_v31 = vpop.permute.xlu0 %3609 }
 0x55e   :  { %3654 = vst.msk [vmem:[#allocation3 + $0x8] sm:$0x1] %vm3649_vm15, %v3610_v31  ;;  %v3604_v57 = vpop.permute.xlu1 %3603 }
 0x55f   :  { %3651 = vst.msk [vmem:[#allocation3 + $0x2] sm:$0x1] %vm3649_vm15, %v3604_v57 }
 0x561   :  { %v3833_v60 = vpop.permute.xlu0 %3832 }
 0x562   :  { %3879 = vst.msk [vmem:[#allocation3 + $0x3] sm:$0x1] %vm3520_vm12, %v3833_v60  ;;  %v3835_v12 = vpop.permute.xlu1 %3834  ;;  %v3958_v41 = vld [vmem:[#allocation3] sm:$0x3] }
 0x563   :  { %3880 = vst.msk [vmem:[#allocation3 + $0x5] sm:$0x1] %vm3520_vm12, %v3835_v12  ;;  %v3975_v58 = vsel %vm3974_vm14, %v3958_v41, 0.0  ;;  %v4136_v11 = vmul.f32 %v3958_v41, %v3958_v41 }
 0x564   :  { %3976 = vadd.xlane.f32.xlu1 %v3975_v58 }
 0x565   :  { %v3897_v15 = vpop.permute.xlu0 %3896  ;;  %v4152_v48 = vsel %vm3974_vm14, %v4136_v11, 0.0 }
 0x566   :  { %3943 = vst.msk [vmem:[#allocation3 + $0x3] sm:$0x1] %vm3649_vm15, %v3897_v15  ;;  %v3899_v62 = vpop.permute.xlu1 %3898 }
 0x567   :  { %3944 = vst.msk [vmem:[#allocation3 + $0x5] sm:$0x1] %vm3649_vm15, %v3899_v62 }
 0x569   :  { %v3614_v43 = vpop.permute.xlu0 %3613 }
 0x56a   :  { %3656 = vst.msk [vmem:[#allocation3 + $0xc] sm:$0x1] %vm3649_vm15, %v3614_v43  ;;  %v3608_v20 = vpop.permute.xlu1 %3607 }
 0x56b   :  { %3653 = vst.msk [vmem:[#allocation3 + $0x6] sm:$0x1] %vm3649_vm15, %v3608_v20 }
 0x56d   :  { %v3618_v16 = vpop.permute.xlu0 %3617  ;;  %v3959_v8 = vld [vmem:[#allocation3 + $0x2] sm:$0x3] }
 0x56e   :  { %3658 = vst.msk [vmem:[#allocation3 + $0x10] sm:$0x1] %vm3649_vm15, %v3618_v16  ;;  %v3978_v24 = vsel %vm3974_vm14, %v3959_v8, 0.0  ;;  %v3839_v30 = vpop.permute.xlu1 %3838  ;;  %v4137_v19 = vmul.f32 %v3959_v8, %v3959_v8  ;;  %v3960_v3 = vld [vmem:[#allocation3 + $0x4] sm:$0x3] }
 0x56f   :  { %3979 = vadd.xlane.f32.xlu0 %v3978_v24  ;;  %3882 = vst.msk [vmem:[#allocation3 + $0x9] sm:$0x1] %vm3520_vm12, %v3839_v30  ;;  %v3981_v7 = vsel %vm3974_vm14, %v3960_v3, 0.0  ;;  %v4138_v1 = vmul.f32 %v3960_v3, %v3960_v3 }
 0x570   :  { %v4155_v39 = vsel %vm3974_vm14, %v4137_v19, 0.0 }
 0x571   :  { %v3837_v27 = vpop.permute.xlu0 %3836  ;;  %4156 = vadd.xlane.f32.xlu1 %v4155_v39  ;;  %v4158_v61 = vsel %vm3974_vm14, %v4138_v1, 0.0 }
 0x572   :  { %3881 = vst.msk [vmem:[#allocation3 + $0x7] sm:$0x1] %vm3520_vm12, %v3837_v27  ;;  %v3903_v28 = vpop.permute.xlu1 %3902 }
 0x573   :  { %4153 = vadd.xlane.f32.xlu0 %v4152_v48  ;;  %3946 = vst.msk [vmem:[#allocation3 + $0x9] sm:$0x1] %vm3649_vm15, %v3903_v28 }
 0x575   :  { %v3901_v51 = vpop.permute.xlu0 %3900 }
 0x576   :  { %3945 = vst.msk [vmem:[#allocation3 + $0x7] sm:$0x1] %vm3649_vm15, %v3901_v51  ;;  %v3612_v44 = vpop.permute.xlu1 %3611 }
 0x577   :  { %3982 = vadd.xlane.f32.xlu0 %v3981_v7  ;;  %3655 = vst.msk [vmem:[#allocation3 + $0xa] sm:$0x1] %vm3649_vm15, %v3612_v44 }
 0x579   :  { %v3841_v45 = vpop.permute.xlu0 %3840 }
 0x57a   :  { %3883 = vst.msk [vmem:[#allocation3 + $0xb] sm:$0x1] %vm3520_vm12, %v3841_v45  ;;  %v3843_v35 = vpop.permute.xlu1 %3842  ;;  %v3962_v14 = vld [vmem:[#allocation3 + $0x8] sm:$0x3] }
 0x57b   :  { %4159 = vadd.xlane.f32.xlu0 %v4158_v61  ;;  %3884 = vst.msk [vmem:[#allocation3 + $0xd] sm:$0x1] %vm3520_vm12, %v3843_v35  ;;  %v3987_v46 = vsel %vm3974_vm14, %v3962_v14, 0.0  ;;  %v4140_v0 = vmul.f32 %v3962_v14, %v3962_v14 }
 0x57d   :  { %v3905_v53 = vpop.permute.xlu0 %3904  ;;  %v3961_v54 = vld [vmem:[#allocation3 + $0x6] sm:$0x3]  ;;  %v4164_v56 = vsel %vm3974_vm14, %v4140_v0, 0.0 }
 0x57e   :  { %3947 = vst.msk [vmem:[#allocation3 + $0xb] sm:$0x1] %vm3649_vm15, %v3905_v53  ;;  %v3984_v63 = vsel %vm3974_vm14, %v3961_v54, 0.0  ;;  %v3907_v10 = vpop.permute.xlu1 %3906  ;;  %v4139_v26 = vmul.f32 %v3961_v54, %v3961_v54 }
 0x57f   :  { %3985 = vadd.xlane.f32.xlu1 %v3984_v63  ;;  %3988 = vadd.xlane.f32.xlu0 %v3987_v46  ;;  %3948 = vst.msk [vmem:[#allocation3 + $0xd] sm:$0x1] %vm3649_vm15, %v3907_v10 }
 0x580   :  { %v4161_v59 = vsel %vm3974_vm14, %v4139_v26, 0.0 }
 0x581   :  { %v3622_v34 = vpop.permute.xlu0 %3621 }
 0x582   :  { %3660 = vst.msk [vmem:[#allocation3 + $0x14] sm:$0x1] %vm3649_vm15, %v3622_v34  ;;  %v3616_v21 = vpop.permute.xlu1 %3615 }
 0x583   :  { %4162 = vadd.xlane.f32.xlu1 %v4161_v59  ;;  %4165 = vadd.xlane.f32.xlu0 %v4164_v56  ;;  %3657 = vst.msk [vmem:[#allocation3 + $0xe] sm:$0x1] %vm3649_vm15, %v3616_v21 }
 0x585   :  { %v3626_v55 = vpop.permute.xlu0 %3625  ;;  %v3963_v52 = vld [vmem:[#allocation3 + $0xa] sm:$0x3] }
 0x586   :  { %3662 = vst.msk [vmem:[#allocation3 + $0x18] sm:$0x1] %vm3649_vm15, %v3626_v55  ;;  %v3990_v29 = vsel %vm3974_vm14, %v3963_v52, 0.0  ;;  %v3847_v25 = vpop.permute.xlu1 %3846  ;;  %v3964_v33 = vld [vmem:[#allocation3 + $0xc] sm:$0x3]  ;;  %v4141_v38 = vmul.f32 %v3963_v52, %v3963_v52 }
 0x587   :  { %3991 = vadd.xlane.f32.xlu1 %v3990_v29  ;;  %3886 = vst.msk [vmem:[#allocation3 + $0x11] sm:$0x1] %vm3520_vm12, %v3847_v25  ;;  %v3993_v47 = vsel %vm3974_vm14, %v3964_v33, 0.0  ;;  %v4142_v13 = vmul.f32 %v3964_v33, %v3964_v33 }
 0x588   :  { %3994 = vadd.xlane.f32.xlu0 %v3993_v47  ;;  %v4167_v42 = vsel %vm3974_vm14, %v4141_v38, 0.0 }
 0x589   :  { %v3845_v6 = vpop.permute.xlu0 %3844  ;;  %v4170_v37 = vsel %vm3974_vm14, %v4142_v13, 0.0 }
 0x58a   :  { %3885 = vst.msk [vmem:[#allocation3 + $0xf] sm:$0x1] %vm3520_vm12, %v3845_v6  ;;  %v3911_v22 = vpop.permute.xlu1 %3910 }
 0x58b   :  { %4168 = vadd.xlane.f32.xlu1 %v4167_v42  ;;  %3950 = vst.msk [vmem:[#allocation3 + $0x11] sm:$0x1] %vm3649_vm15, %v3911_v22 }
 0x58c   :  { %4171 = vadd.xlane.f32.xlu0 %v4170_v37 }
 0x58d   :  { %v3909_v18 = vpop.permute.xlu0 %3908 }
 0x58e   :  { %3949 = vst.msk [vmem:[#allocation3 + $0xf] sm:$0x1] %vm3649_vm15, %v3909_v18  ;;  %v3620_v50 = vpop.permute.xlu1 %3619 }
 0x58f   :  { %3659 = vst.msk [vmem:[#allocation3 + $0x12] sm:$0x1] %vm3649_vm15, %v3620_v50 }
 0x591   :  { %v3849_v5 = vpop.permute.xlu0 %3848 }
 0x592   :  { %3887 = vst.msk [vmem:[#allocation3 + $0x13] sm:$0x1] %vm3520_vm12, %v3849_v5  ;;  %v3851_v32 = vpop.permute.xlu1 %3850  ;;  %v3966_v4 = vld [vmem:[#allocation3 + $0x10] sm:$0x3] }
 0x593   :  { %3888 = vst.msk [vmem:[#allocation3 + $0x15] sm:$0x1] %vm3520_vm12, %v3851_v32  ;;  %v3999_v23 = vsel %vm3974_vm14, %v3966_v4, 0.0  ;;  %v4144_v40 = vmul.f32 %v3966_v4, %v3966_v4 }
 0x594   :  { %4000 = vadd.xlane.f32.xlu0 %v3999_v23 }
 0x595   :  { %v3913_v49 = vpop.permute.xlu0 %3912  ;;  %v3965_v17 = vld [vmem:[#allocation3 + $0xe] sm:$0x3]  ;;  %v4176_v57 = vsel %vm3974_vm14, %v4144_v40, 0.0 }
 0x596   :  { %3951 = vst.msk [vmem:[#allocation3 + $0x13] sm:$0x1] %vm3649_vm15, %v3913_v49  ;;  %v3996_v9 = vsel %vm3974_vm14, %v3965_v17, 0.0  ;;  %v3915_v2 = vpop.permute.xlu1 %3914  ;;  %v4143_v31 = vmul.f32 %v3965_v17, %v3965_v17 }
 0x597   :  { %3997 = vadd.xlane.f32.xlu1 %v3996_v9  ;;  %3952 = vst.msk [vmem:[#allocation3 + $0x15] sm:$0x1] %vm3649_vm15, %v3915_v2 }
 0x598   :  { %4177 = vadd.xlane.f32.xlu0 %v4176_v57  ;;  %v4173_v12 = vsel %vm3974_vm14, %v4143_v31, 0.0 }
 0x599   :  { %v3630_v60 = vpop.permute.xlu0 %3629 }
 0x59a   :  { %3664 = vst.msk [vmem:[#allocation3 + $0x1c] sm:$0x1] %vm3649_vm15, %v3630_v60  ;;  %v3624_v41 = vpop.permute.xlu1 %3623 }
 0x59b   :  { %4174 = vadd.xlane.f32.xlu1 %v4173_v12  ;;  %3661 = vst.msk [vmem:[#allocation3 + $0x16] sm:$0x1] %vm3649_vm15, %v3624_v41 }
 0x59d   :  { %v3853_v58 = vpop.permute.xlu0 %3852  ;;  %v3967_v15 = vld [vmem:[#allocation3 + $0x12] sm:$0x3] }
 0x59e   :  { %3889 = vst.msk [vmem:[#allocation3 + $0x17] sm:$0x1] %vm3520_vm12, %v3853_v58  ;;  %v4002_v62 = vsel %vm3974_vm14, %v3967_v15, 0.0  ;;  %v3855_v43 = vpop.permute.xlu1 %3854  ;;  %v3968_v20 = vld [vmem:[#allocation3 + $0x14] sm:$0x3]  ;;  %v4145_v16 = vmul.f32 %v3967_v15, %v3967_v15 }
 0x59f   :  { %4003 = vadd.xlane.f32.xlu1 %v4002_v62  ;;  %3890 = vst.msk [vmem:[#allocation3 + $0x19] sm:$0x1] %vm3520_vm12, %v3855_v43  ;;  %v4005_v8 = vsel %vm3974_vm14, %v3968_v20, 0.0  ;;  %v4146_v24 = vmul.f32 %v3968_v20, %v3968_v20 }
 0x5a0   :  { %4006 = vadd.xlane.f32.xlu0 %v4005_v8  ;;  %v4179_v19 = vsel %vm3974_vm14, %v4145_v16, 0.0 }
 0x5a1   :  { %v3917_v30 = vpop.permute.xlu0 %3916  ;;  %v4182_v39 = vsel %vm3974_vm14, %v4146_v24, 0.0 }
 0x5a2   :  { %3953 = vst.msk [vmem:[#allocation3 + $0x17] sm:$0x1] %vm3649_vm15, %v3917_v30  ;;  %v3919_v11 = vpop.permute.xlu1 %3918 }
 0x5a3   :  { %4180 = vadd.xlane.f32.xlu1 %v4179_v19  ;;  %3954 = vst.msk [vmem:[#allocation3 + $0x19] sm:$0x1] %vm3649_vm15, %v3919_v11 }
 0x5a4   :  { %4183 = vadd.xlane.f32.xlu0 %v4182_v39 }
 0x5a5   :  { %v3857_v27 = vpop.permute.xlu0 %3856 }
 0x5a6   :  { %3891 = vst.msk [vmem:[#allocation3 + $0x1b] sm:$0x1] %vm3520_vm12, %v3857_v27  ;;  %v3628_v48 = vpop.permute.xlu1 %3627 }
 0x5a7   :  { %3663 = vst.msk [vmem:[#allocation3 + $0x1a] sm:$0x1] %vm3649_vm15, %v3628_v48 }
 0x5a9   :  { %v3921_v28 = vpop.permute.xlu0 %3920  ;;  %v3969_v3 = vld [vmem:[#allocation3 + $0x16] sm:$0x3] }
 0x5aa   :  { %3955 = vst.msk [vmem:[#allocation3 + $0x1b] sm:$0x1] %vm3649_vm15, %v3921_v28  ;;  %v4008_v51 = vsel %vm3974_vm14, %v3969_v3, 0.0  ;;  %v3859_v7 = vpop.permute.xlu1 %3858  ;;  %v3970_v44 = vld [vmem:[#allocation3 + $0x18] sm:$0x3]  ;;  %v4147_v1 = vmul.f32 %v3969_v3, %v3969_v3 }
 0x5ab   :  { %4009 = vadd.xlane.f32.xlu1 %v4008_v51  ;;  %3892 = vst.msk [vmem:[#allocation3 + $0x1d] sm:$0x1] %vm3520_vm12, %v3859_v7  ;;  %v4011_v45 = vsel %vm3974_vm14, %v3970_v44, 0.0  ;;  %v4148_v61 = vmul.f32 %v3970_v44, %v3970_v44 }
 0x5ac   :  { %4012 = vadd.xlane.f32.xlu0 %v4011_v45  ;;  %v4185_v14 = vsel %vm3974_vm14, %v4147_v1, 0.0 }
 0x5ad   :  { %v3861_v35 = vpop.permute.xlu0 %3860  ;;  %v4188_v54 = vsel %vm3974_vm14, %v4148_v61, 0.0 }
 0x5ae   :  { %3893 = vst.msk [vmem:[#allocation3 + $0x1f] sm:$0x1] %vm3520_vm12, %v3861_v35  ;;  %v3923_v53 = vpop.permute.xlu1 %3922 }
 0x5af   :  { %4186 = vadd.xlane.f32.xlu1 %v4185_v14  ;;  %3956 = vst.msk [vmem:[#allocation3 + $0x1d] sm:$0x1] %vm3649_vm15, %v3923_v53 }
 0x5b0   :  { %4189 = vadd.xlane.f32.xlu0 %v4188_v54 }
 0x5b1   :  { %v3925_v63 = vpop.permute.xlu0 %3924  ;;  %v3971_v46 = vld [vmem:[#allocation3 + $0x1a] sm:$0x3] }
 0x5b2   :  { %3957 = vst.msk [vmem:[#allocation3 + $0x1f] sm:$0x1] %vm3649_vm15, %v3925_v63  ;;  %v4014_v10 = vsel %vm3974_vm14, %v3971_v46, 0.0  ;;  %v3632_v26 = vpop.permute.xlu1 %3631  ;;  %v4149_v0 = vmul.f32 %v3971_v46, %v3971_v46 }
 0x5b3   :  { %4015 = vadd.xlane.f32.xlu1 %v4014_v10  ;;  %3665 = vst.msk [vmem:[#allocation3 + $0x1e] sm:$0x1] %vm3649_vm15, %v3632_v26 }
 0x5b4   :  { %v4191_v34 = vsel %vm3974_vm14, %v4149_v0, 0.0 }
 0x5b6   :  { %v3972_v59 = vld [vmem:[#allocation3 + $0x1c] sm:$0x3] }
 0x5b7   :  { %4192 = vadd.xlane.f32.xlu1 %v4191_v34  ;;  %v4017_v56 = vsel %vm3974_vm14, %v3972_v59, 0.0  ;;  %v4150_v21 = vmul.f32 %v3972_v59, %v3972_v59 }
 0x5b8   :  { %4018 = vadd.xlane.f32.xlu0 %v4017_v56 }
 0x5b9   :  { %v4194_v52 = vsel %vm3974_vm14, %v4150_v21, 0.0 }
 0x5ba   :  { %v3973_v55 = vld [vmem:[#allocation3 + $0x1e] sm:$0x3] }
 0x5bb   :  { %v4020_v29 = vsel %vm3974_vm14, %v3973_v55, 0.0  ;;  %v4151_v25 = vmul.f32 %v3973_v55, %v3973_v55 }
 0x5bc   :  { %4195 = vadd.xlane.f32.xlu0 %v4194_v52  ;;  %4021 = vadd.xlane.f32.xlu1 %v4020_v29 }
 0x5bd   :  { %v4197_v33 = vsel %vm3974_vm14, %v4151_v25, 0.0 }
 0x5c0   :  { %4198 = vadd.xlane.f32.xlu1 %v4197_v33 }
 0x5ed   :  { %v3977_v38 = vpop.xlane.xlu1 %3976 }
 0x5ee   :  { %v4024_v47 = vsel %vm4023_vm5, %v3977_v38, 0.0 }
 0x5ef   :  { %v4025_v13 = vrot.slane %v4024_v47, 4 }
 0x5f1   :  { %v4026_v6 = vadd.f32 %v4025_v13, %v4024_v47 }
 0x5f3   :  { %v4027_v42 = vrot.slane %v4026_v6, 2 }
 0x5f5   :  { %v4028_v37 = vadd.f32 %v4027_v42, %v4026_v6 }
 0x5f7   :  { %v4029_v49 = vrot.slane %v4028_v37, 1 }
 0x5f8   :  { %v3980_v22 = vpop.xlane.xlu0 %3979 }
 0x5f9   :  { %v4031_v18 = vsel %vm4023_vm5, %v3980_v22, 0.0  ;;  %v4030_v58 = vadd.f32 %v4029_v49, %v4028_v37 }
 0x5fa   :  { %v4032_v50 = vrot.slane %v4031_v18, 4  ;;  %v4157_v5 = vpop.xlane.xlu1 %4156 }
 0x5fb   :  { %v4207_v32 = vsel %vm4023_vm5, %v4157_v5, 0.0  ;;  %v8753_v39 = vmul.f32 0.01923077, %v4030_v58 }
 0x5fc   :  { %v4033_v4 = vadd.f32 %v4032_v50, %v4031_v18  ;;  %v4208_v23 = vrot.slane %v4207_v32, 4  ;;  %v4154_v40 = vpop.xlane.xlu0 %4153 }
 0x5fd   :  { %v4200_v17 = vsel %vm4023_vm5, %v4154_v40, 0.0  ;;  %v4344_v53 = vmul.f32 %v8753_v39, %v8753_v39 }
 0x5fe   :  { %v4034_v9 = vrot.slane %v4033_v4, 2  ;;  %v4209_v2 = vadd.f32 %v4208_v23, %v4207_v32  ;;  %v4201_v31 = vrot.slane %v4200_v17, 4 }
 0x600   :  { %v4035_v57 = vadd.f32 %v4034_v9, %v4033_v4  ;;  %v4210_v60 = vrot.slane %v4209_v2, 2  ;;  %v4202_v12 = vadd.f32 %v4201_v31, %v4200_v17  ;;  %v3983_v41 = vpop.xlane.xlu0 %3982 }
 0x601   :  { %v4038_v15 = vsel %vm4023_vm5, %v3983_v41, 0.0 }
 0x602   :  { %v4036_v62 = vrot.slane %v4035_v57, 1  ;;  %v4211_v43 = vadd.f32 %v4210_v60, %v4209_v2  ;;  %v4203_v20 = vrot.slane %v4202_v12, 2  ;;  %v4039_v16 = vrot.slane %v4038_v15, 4 }
 0x604   :  { %v4037_v8 = vadd.f32 %v4036_v62, %v4035_v57  ;;  %v4212_v24 = vrot.slane %v4211_v43, 1  ;;  %v4204_v30 = vadd.f32 %v4203_v20, %v4202_v12  ;;  %v4040_v19 = vadd.f32 %v4039_v16, %v4038_v15  ;;  %v4160_v11 = vpop.xlane.xlu0 %4159 }
 0x605   :  { %v4214_v27 = vsel %vm4023_vm5, %v4160_v11, 0.0 }
 0x606   :  { %v8756_v48 = vmul.f32 0.01923077, %v4037_v8  ;;  %v4213_v28 = vadd.f32 %v4212_v24, %v4211_v43  ;;  %v4205_v3 = vrot.slane %v4204_v30, 1  ;;  %v4041_v51 = vrot.slane %v4040_v19, 2 }
 0x607   :  { %v4215_v7 = vrot.slane %v4214_v27, 4 }
 0x608   :  { %v4345_v44 = vmul.f32 %v8756_v48, %v8756_v48  ;;  %v4329_v1 = vmul.f32 0.01923077, %v4213_v28  ;;  %v4206_v45 = vadd.f32 %v4205_v3, %v4204_v30  ;;  %v4042_v61 = vadd.f32 %v4041_v51, %v4040_v19  ;;  %v3989_v35 = vpop.xlane.xlu0 %3988  ;;  %v3986_v14 = vpop.xlane.xlu1 %3985 }
 0x609   :  { %v4216_v54 = vadd.f32 %v4215_v7, %v4214_v27  ;;  %v4052_v63 = vsel %vm4023_vm5, %v3989_v35, 0.0  ;;  %v4045_v46 = vsel %vm4023_vm5, %v3986_v14, 0.0 }
 0x60a   :  { %v4361_v10 = vsub.f32 %v4329_v1, %v4345_v44  ;;  %v4328_v26 = vmul.f32 0.01923077, %v4206_v45  ;;  %v4043_v0 = vrot.slane %v4042_v61, 1  ;;  %v4053_v34 = vrot.slane %v4052_v63, 4 }
 0x60b   :  { %v4217_v59 = vrot.slane %v4216_v54, 2  ;;  %v4046_v56 = vrot.slane %v4045_v46, 4 }
 0x60c   :  { %v4377_v21 = vmax.f32 %v4361_v10, 0.0  ;;  %v4360_v55 = vsub.f32 %v4328_v26, %v4344_v53  ;;  %v4044_v52 = vadd.f32 %v4043_v0, %v4042_v61  ;;  %v4054_v29 = vadd.f32 %v4053_v34, %v4052_v63  ;;  %v4166_v25 = vpop.xlane.xlu0 %4165  ;;  %v4163_v33 = vpop.xlane.xlu1 %4162 }
 0x60d   :  { %v4218_v38 = vadd.f32 %v4217_v59, %v4216_v54  ;;  %v4047_v47 = vadd.f32 %v4046_v56, %v4045_v46  ;;  %v4228_v13 = vsel %vm4023_vm5, %v4166_v25, 0.0  ;;  %v4221_v6 = vsel %vm4023_vm5, %v4163_v33, 0.0 }
 0x60e   :  { %v4409_v42 = vadd.f32 1e-05, %v4377_v21  ;;  %v4376_v22 = vmax.f32 %v4360_v55, 0.0  ;;  %v8766_v37 = vmul.f32 0.01923077, %v4044_v52  ;;  %v4055_v18 = vrot.slane %v4054_v29, 2 }
 0x60f   :  { %v4219_v50 = vrot.slane %v4218_v38, 1  ;;  %v4048_v5 = vrot.slane %v4047_v47, 2  ;;  %v4229_v32 = vrot.slane %v4228_v13, 4  ;;  %v4222_v4 = vrot.slane %v4221_v6, 4 }
 0x610   :  { %6840 = vrsqrt.f32 %v4409_v42  ;;  %v4408_v23 = vadd.f32 1e-05, %v4376_v22  ;;  %v4056_v40 = vadd.f32 %v4055_v18, %v4054_v29  ;;  %v3992_v49 = vpop.xlane.xlu1 %3991  ;;  %v4346_v60 = vmul.f32 %v8766_v37, %v8766_v37 }
 0x611   :  { %v4220_v17 = vadd.f32 %v4219_v50, %v4218_v38  ;;  %v4049_v9 = vadd.f32 %v4048_v5, %v4047_v47  ;;  %v4230_v2 = vadd.f32 %v4229_v32, %v4228_v13  ;;  %v4223_v31 = vadd.f32 %v4222_v4, %v4221_v6  ;;  %v3995_v57 = vpop.xlane.xlu0 %3994  ;;  %v4393_v50 = vld [vmem:[%s9413_s6 + $0x1] sm:$0x1] }
 0x612   :  { %v4057_v12 = vrot.slane %v4056_v40, 1  ;;  %v4059_v41 = vsel %vm4023_vm5, %v3992_v49, 0.0  ;;  %v4066_v58 = vsel %vm4023_vm5, %v3995_v57, 0.0  ;;  %6842 = vrsqrt.f32 %v4408_v23 }
 0x613   :  { %v4330_v15 = vmul.f32 0.01923077, %v4220_v17  ;;  %v4050_v62 = vrot.slane %v4049_v9, 1  ;;  %v4231_v43 = vrot.slane %v4230_v2, 2  ;;  %v4224_v20 = vrot.slane %v4223_v31, 2 }
 0x614   :  { %v4058_v16 = vadd.f32 %v4057_v12, %v4056_v40  ;;  %v4060_v8 = vrot.slane %v4059_v41, 4  ;;  %v4067_v24 = vrot.slane %v4066_v58, 4  ;;  %v4169_v30 = vpop.xlane.xlu1 %4168 }
 0x615   :  { %v4362_v19 = vsub.f32 %v4330_v15, %v4346_v60  ;;  %v4051_v11 = vadd.f32 %v4050_v62, %v4049_v9  ;;  %v4232_v27 = vadd.f32 %v4231_v43, %v4230_v2  ;;  %v4225_v28 = vadd.f32 %v4224_v20, %v4223_v31  ;;  %v4172_v14 = vpop.xlane.xlu0 %4171 }
 0x616   :  { %v8772_v3 = vmul.f32 0.01923077, %v4058_v16  ;;  %v4061_v51 = vadd.f32 %v4060_v8, %v4059_v41  ;;  %v4068_v7 = vadd.f32 %v4067_v24, %v4066_v58  ;;  %v4235_v44 = vsel %vm4023_vm5, %v4169_v30, 0.0 }
 0x617   :  { %v4378_v1 = vmax.f32 %v4362_v19, 0.0  ;;  %v8775_v45 = vmul.f32 0.01923077, %v4051_v11  ;;  %v4233_v61 = vrot.slane %v4232_v27, 1  ;;  %v4226_v35 = vrot.slane %v4225_v28, 1 }
 0x618   :  { %v4062_v53 = vrot.slane %v4061_v51, 2  ;;  %v4069_v54 = vrot.slane %v4068_v7, 2  ;;  %v4236_v63 = vrot.slane %v4235_v44, 4  ;;  %v4348_v10 = vmul.f32 %v8772_v3, %v8772_v3 }
 0x619   :  { %v4410_v46 = vadd.f32 1e-05, %v4378_v1  ;;  %v4234_v26 = vadd.f32 %v4233_v61, %v4232_v27  ;;  %v4227_v0 = vadd.f32 %v4226_v35, %v4225_v28  ;;  %v4242_v21 = vsel %vm4023_vm5, %v4172_v14, 0.0  ;;  %v4392_v28 = vld [vmem:[%s9413_s6] sm:$0x1] }
 0x61a   :  { %v4063_v34 = vadd.f32 %v4062_v53, %v4061_v51  ;;  %v4070_v59 = vadd.f32 %v4069_v54, %v4068_v7  ;;  %v4237_v56 = vadd.f32 %v4236_v63, %v4235_v44  ;;  %v4347_v55 = vmul.f32 %v8775_v45, %v8775_v45 }
 0x61b   :  { %v4332_v52 = vmul.f32 0.01923077, %v4234_v26  ;;  %v4331_v29 = vmul.f32 0.01923077, %v4227_v0  ;;  %v4243_v25 = vrot.slane %v4242_v21, 4  ;;  %6844 = vrsqrt.f32 %v4410_v46 }
 0x61c   :  { %v4064_v33 = vrot.slane %v4063_v34, 1  ;;  %v4071_v38 = vrot.slane %v4070_v59, 1  ;;  %v4238_v47 = vrot.slane %v4237_v56, 2  ;;  %v4457_v26 = vld [vmem:[%s9414_s7 + $0x1] sm:$0x1] }
 0x61d   :  { %v6841_v13 = vpop.eup %6840  ;;  %v4364_v6 = vsub.f32 %v4332_v52, %v4348_v10  ;;  %v4363_v42 = vsub.f32 %v4331_v29, %v4347_v55  ;;  %v4244_v22 = vadd.f32 %v4243_v25, %v4242_v21  ;;  %v4001_v18 = vpop.xlane.xlu0 %4000  ;;  %v4456_v10 = vld [vmem:[%s9414_s7] sm:$0x1]  ;;  %v4843_v55 = vld [vmem:[%s9415_s8 + $0x18] sm:$0x3] }
 0x61e   :  { %v4065_v5 = vadd.f32 %v4064_v33, %v4063_v34  ;;  %v4072_v32 = vadd.f32 %v4071_v38, %v4070_v59  ;;  %v4239_v4 = vadd.f32 %v4238_v47, %v4237_v56  ;;  %v4080_v23 = vsel %vm4023_vm5, %v4001_v18, 0.0  ;;  %6531 = vmatpush3.msk.msra.mxu1 %vm4023_vm5, %v4843_v55  ;;  %v4842_v47 = vld [vmem:[%s9415_s8 + $0x10] sm:$0xff] }
 0x61f   :  { %v4380_v40 = vmax.f32 %v4364_v6, 0.0  ;;  %v4379_v49 = vmax.f32 %v4363_v42, 0.0  ;;  %v4245_v17 = vrot.slane %v4244_v22, 2  ;;  %v4081_v9 = vrot.slane %v4080_v23, 4  ;;  %v6843_v41 = vpop.eup %6842 }
 0x620   :  { %v8786_v2 = vmul.f32 0.01923077, %v4065_v5  ;;  %v8788_v31 = vmul.f32 0.01923077, %v4072_v32  ;;  %v4240_v57 = vrot.slane %v4239_v4, 1  ;;  %v3998_v60 = vpop.xlane.xlu1 %3997  ;;  %v4441_v12 = vmul.f32 %v6841_v13, %v4393_v50  ;;  %v4846_v13 = vld [vmem:[%s9415_s8 + $0x30] sm:$0xff] }
 0x621   :  { %v4412_v58 = vadd.f32 1e-05, %v4380_v40  ;;  %v4411_v15 = vadd.f32 1e-05, %v4379_v49  ;;  %v4246_v62 = vadd.f32 %v4245_v17, %v4244_v22  ;;  %v4082_v43 = vadd.f32 %v4081_v9, %v4080_v23  ;;  %v4178_v20 = vpop.xlane.xlu0 %4177 }
 0x622   :  { %v4349_v16 = vmul.f32 %v8786_v2, %v8786_v2  ;;  %v4350_v8 = vmul.f32 %v8788_v31, %v8788_v31  ;;  %v4241_v24 = vadd.f32 %v4240_v57, %v4239_v4  ;;  %v4073_v30 = vsel %vm4023_vm5, %v3998_v60, 0.0  ;;  %v4394_v60 = vld [vmem:[%s9413_s6 + $0x2] sm:$0x1] }
 0x623   :  { %6846 = vrsqrt.f32 %v4412_v58  ;;  %v4247_v19 = vrot.slane %v4246_v62, 1  ;;  %v4083_v11 = vrot.slane %v4082_v43, 2  ;;  %v4074_v27 = vrot.slane %v4073_v30, 4 }
 0x624   :  { %6848 = vrsqrt.f32 %v4411_v15  ;;  %v4333_v51 = vmul.f32 0.01923077, %v4241_v24  ;;  %v4256_v7 = vsel %vm4023_vm5, %v4178_v20, 0.0  ;;  %v4527_v44 = vrot.slane %v4441_v12, %v9580_v36  ;;  %v4175_v1 = vpop.xlane.xlu1 %4174  ;;  %v4841_v15 = vld [vmem:[%s9415_s8 + $0x8] sm:$0xff] }
 0x625   :  { %v4248_v61 = vadd.f32 %v4247_v19, %v4246_v62  ;;  %v4084_v35 = vadd.f32 %v4083_v11, %v4082_v43  ;;  %v4075_v14 = vadd.f32 %v4074_v27, %v4073_v30  ;;  %v4257_v53 = vrot.slane %v4256_v7, 4  ;;  %v4845_v62 = vld [vmem:[%s9415_s8 + $0x28] sm:$0xff]  ;;  %v4840_v30 = vld [vmem:[%s9415_s8] sm:$0xff] }
 0x626   :  { %v4365_v54 = vsub.f32 %v4333_v51, %v4349_v16  ;;  %4589 = vperm.xlu1 %6836, %v4527_v44   ;;  %v4440_v63 = vmul.f32 %v6843_v41, %v4392_v28  ;;  %v4249_v46 = vsel %vm4023_vm5, %v4175_v1, 0.0  ;;  %v4473_v0 = vmul.f32 %v4441_v12, %v8756_v48  ;;  %v4847_v48 = vld [vmem:[%s9415_s8 + $0x38] sm:$0x3]  ;;  %v4844_v19 = vld [vmem:[%s9415_s8 + $0x20] sm:$0xff] }
 0x627   :  { %v4334_v34 = vmul.f32 0.01923077, %v4248_v61  ;;  %v4085_v59 = vrot.slane %v4084_v35, 1  ;;  %v4076_v56 = vrot.slane %v4075_v14, 2  ;;  %v4258_v21 = vadd.f32 %v4257_v53, %v4256_v7  ;;  %6542 = vmatpush3.msk.msra.mxu0 %vm4023_vm5, %v4847_v48 }
 0x628   :  { %v4381_v52 = vmax.f32 %v4365_v54, 0.0  ;;  %v4523_v29 = vrot.slane %v4440_v63, %v9580_v36  ;;  %v4250_v25 = vrot.slane %v4249_v46, 4  ;;  %v4472_v33 = vmul.f32 %v4440_v63, %v8753_v39  ;;  %v4004_v38 = vpop.xlane.xlu1 %4003  ;;  %v6845_v5 = vpop.eup %6844 }
 0x629   :  { %v4366_v6 = vsub.f32 %v4334_v34, %v4350_v8  ;;  %v4086_v42 = vadd.f32 %v4085_v59, %v4084_v35  ;;  %v4077_v22 = vadd.f32 %v4076_v56, %v4075_v14  ;;  %v4259_v18 = vrot.slane %v4258_v21, 2  ;;  %v4007_v39 = vpop.xlane.xlu0 %4006  ;;  %v4396_v56 = vld [vmem:[%s9413_s6 + $0x4] sm:$0x1] }
 0x62a   :  { %v9581_v50 = vmov 0.0   ;;  %v4413_v32 = vadd.f32 1e-05, %v4381_v52  ;;  %4585 = vperm.xlu0 %6837, %v4523_v29   ;;  %v4251_v4 = vadd.f32 %v4250_v25, %v4249_v46  ;;  %v4488_v23 = vsub.f32 %v4456_v10, %v4472_v33  ;;  %v4458_v46 = vld [vmem:[%s9414_s7 + $0x2] sm:$0x1] }
 0x62b   :  { %6532 = vmatprep.subr.mxu1 %v9581_v50  ;;  %v4489_v40 = vsub.f32 %v4457_v26, %v4473_v0  ;;  %6543 = vmatprep.subr.mxu0 %v9581_v50  ;;  %v4382_v49 = vmax.f32 %v4366_v6, 0.0  ;;  %v8826_v17 = vmul.f32 0.01923077, %v4086_v42  ;;  %v4078_v9 = vrot.slane %v4077_v22, 1 }
 0x62c   :  { %v4260_v57 = vadd.f32 %v4259_v18, %v4258_v21  ;;  %6533 = vmatpush3.msra.mxu1 %v4842_v47  ;;  %6544 = vmatpush3.msra.mxu0 %v4846_v13  ;;  %6850 = vrsqrt.f32 %v4413_v32  ;;  %v4252_v12 = vrot.slane %v4251_v4, 2  ;;  %v4683_v41 = vrot.slane %v4488_v23, %v9580_v36  ;;  %v4181_v24 = vpop.xlane.xlu1 %4180 }
 0x62d   :  { %v4687_v58 = vrot.slane %v4489_v40, %v9580_v36  ;;  %6534 = vmatprep.subr.mxu1 %v9581_v50  ;;  %6545 = vmatprep.subr.mxu0 %v9581_v50  ;;  %v4414_v43 = vadd.f32 1e-05, %v4382_v49  ;;  %v4352_v20 = vmul.f32 %v8826_v17, %v8826_v17  ;;  %v4079_v16 = vadd.f32 %v4078_v9, %v4077_v22  ;;  %v4184_v61 = vpop.xlane.xlu0 %4183 }
 0x62e   :  { %v4261_v8 = vrot.slane %v4260_v57, 1  ;;  %6535 = vmatpush3.msra.mxu1 %v4841_v15  ;;  %6546 = vmatpush3.msra.mxu0 %v4845_v62  ;;  %v4253_v11 = vadd.f32 %v4252_v12, %v4251_v4  ;;  %v4087_v27 = vsel %vm4023_vm5, %v4004_v38, 0.0  ;;  %v4094_v28 = vsel %vm4023_vm5, %v4007_v39, 0.0  ;;  %v4395_v4 = vld [vmem:[%s9413_s6 + $0x3] sm:$0x1] }
 0x62f   :  { %4745 = vperm.xlu1 %6836, %v4683_v41   ;;  %4749 = vperm.xlu0 %6837, %v4687_v58   ;;  %v4442_v51 = vmul.f32 %v6845_v5, %v4394_v60  ;;  %6852 = vrsqrt.f32 %v4414_v43  ;;  %v8851_v7 = vmul.f32 0.01923077, %v4079_v16  ;;  %v4088_v1 = vrot.slane %v4087_v27, 4 }
 0x630   :  { %v4262_v44 = vadd.f32 %v4261_v8, %v4260_v57  ;;  %6536 = vmatprep.subr.mxu1 %v9581_v50  ;;  %6547 = vmatprep.subr.mxu0 %v9581_v50  ;;  %v6847_v35 = vpop.eup %6846  ;;  %v4254_v14 = vrot.slane %v4253_v11, 1  ;;  %v4095_v53 = vrot.slane %v4094_v28, 4  ;;  %v4263_v63 = vsel %vm4023_vm5, %v4181_v24, 0.0 }
 0x631   :  { %v4531_v54 = vrot.slane %v4442_v51, %v9580_v36  ;;  %6537 = vmatpush3.msra.mxu1 %v4840_v30  ;;  %6548 = vmatpush3.msra.mxu0 %v4844_v19  ;;  %v6849_v10 = vpop.eup %6848  ;;  %v4351_v26 = vmul.f32 %v8851_v7, %v8851_v7  ;;  %v4089_v34 = vadd.f32 %v4088_v1, %v4087_v27  ;;  %v4264_v59 = vrot.slane %v4263_v63, 4 }
 0x632   :  { %v4336_v0 = vmul.f32 0.01923077, %v4262_v44  ;;  %6552 = vmatprep.subr.mxu1 %v9581_v50  ;;  %6563 = vmatprep.subr.mxu0 %v9581_v50  ;;  %v4255_v21 = vadd.f32 %v4254_v14, %v4253_v11  ;;  %v4096_v55 = vadd.f32 %v4095_v53, %v4094_v28  ;;  %v4270_v52 = vsel %vm4023_vm5, %v4184_v61, 0.0 }
 0x633   :  { %4593 = vperm.xlu1 %6836, %v4531_v54   ;;  %v4474_v29 = vmul.f32 %v4442_v51, %v8766_v37  ;;  %v4090_v33 = vrot.slane %v4089_v34, 2  ;;  %v4265_v38 = vadd.f32 %v4264_v59, %v4263_v63  ;;  %v4271_v48 = vrot.slane %v4270_v52, 4  ;;  %v4460_v63 = vld [vmem:[%s9414_s7 + $0x4] sm:$0x1]  ;;  %6538 = vmatprep.mubr.msk.f32.mxu1 %vm6953_vm6, %v9581_v50 }
 0x634   :  { %v4368_v25 = vsub.f32 %v4336_v0, %v4352_v20  ;;  %v4335_v47 = vmul.f32 0.01923077, %v4255_v21  ;;  %v4097_v13 = vrot.slane %v4096_v55, 2  ;;  %v4444_v42 = vmul.f32 %v6847_v35, %v4396_v56  ;;  %v4010_v22 = vpop.xlane.xlu1 %4009  ;;  %6549 = vmatprep.mubr.msk.f32.mxu0 %vm6953_vm6, %v9581_v50 }
 0x635   :  { %v4490_v6 = vsub.f32 %v4458_v46, %v4474_v29  ;;  %v4091_v39 = vadd.f32 %v4090_v33, %v4089_v34  ;;  %v4266_v5 = vrot.slane %v4265_v38, 2  ;;  %v4272_v32 = vadd.f32 %v4271_v48, %v4270_v52  ;;  %v4013_v43 = vpop.xlane.xlu0 %4012  ;;  %v4459_v34 = vld [vmem:[%s9414_s7 + $0x3] sm:$0x1] }
 0x636   :  { %v4384_v18 = vmax.f32 %v4368_v25, 0.0  ;;  %v4367_v23 = vsub.f32 %v4335_v47, %v4351_v26  ;;  %v4098_v40 = vadd.f32 %v4097_v13, %v4096_v55  ;;  %v4539_v49 = vrot.slane %v4444_v42, %v9580_v36 }
 0x637   :  { %v4691_v37 = vrot.slane %v4490_v6, %v9580_v36  ;;  %v4092_v57 = vrot.slane %v4091_v39, 1  ;;  %v4267_v60 = vadd.f32 %v4266_v5, %v4265_v38  ;;  %v4273_v12 = vrot.slane %v4272_v32, 2  ;;  %v4397_v6 = vld [vmem:[%s9413_s6 + $0x5] sm:$0x1] }
 0x638   :  { %v4416_v9 = vadd.f32 1e-05, %v4384_v18  ;;  %v4383_v41 = vmax.f32 %v4367_v23, 0.0  ;;  %v4099_v58 = vrot.slane %v4098_v40, 1  ;;  %v4443_v15 = vmul.f32 %v6849_v10, %v4395_v4  ;;  %v4187_v28 = vpop.xlane.xlu1 %4186 }
 0x639   :  { %4753 = vperm.xlu1 %6836, %v4691_v37   ;;  %v4101_v62 = vsel %vm4023_vm5, %v4010_v22, 0.0  ;;  %v6851_v20 = vpop.eup %6850  ;;  %v4093_v16 = vadd.f32 %v4092_v57, %v4091_v39  ;;  %v4268_v8 = vrot.slane %v4267_v60, 1  ;;  %v4274_v24 = vadd.f32 %v4273_v12, %v4272_v32  ;;  %v4190_v52 = vpop.xlane.xlu0 %4189 }
 0x63a   :  { %6854 = vrsqrt.f32 %v4416_v9  ;;  %v4415_v30 = vadd.f32 1e-05, %v4383_v41  ;;  %v4100_v19 = vadd.f32 %v4099_v58, %v4098_v40  ;;  %v4535_v11 = vrot.slane %v4443_v15, %v9580_v36  ;;  %v4398_v58 = vld [vmem:[%s9413_s6 + $0x6] sm:$0x1] }
 0x63b   :  { %v4102_v27 = vrot.slane %v4101_v62, 4  ;;  %v8876_v51 = vmul.f32 0.01923077, %v4093_v16  ;;  %v4269_v44 = vadd.f32 %v4268_v8, %v4267_v60  ;;  %v4275_v1 = vrot.slane %v4274_v24, 1 }
 0x63c   :  { %v4108_v61 = vsel %vm4023_vm5, %v4013_v43, 0.0  ;;  %v6853_v35 = vpop.eup %6852  ;;  %6856 = vrsqrt.f32 %v4415_v30  ;;  %v8879_v14 = vmul.f32 0.01923077, %v4100_v19  ;;  %4597 = vperm.xlu0 %6837, %v4535_v11   ;;  %v4476_v0 = vmul.f32 %v4444_v42, %v8772_v3  ;;  %v4016_v42 = vpop.xlane.xlu1 %4015  ;;  %v4461_v11 = vld [vmem:[%s9414_s7 + $0x5] sm:$0x1] }
 0x63d   :  { %4601 = vperm.xlu1 %6836, %v4539_v49   ;;  %v4103_v53 = vadd.f32 %v4102_v27, %v4101_v62  ;;  %v4109_v54 = vrot.slane %v4108_v61, 4  ;;  %v4353_v46 = vmul.f32 %v8876_v51, %v8876_v51  ;;  %v4337_v10 = vmul.f32 0.01923077, %v4269_v44 }
 0x63e   :  { %v4276_v26 = vadd.f32 %v4275_v1, %v4274_v24  ;;  %v4354_v59 = vmul.f32 %v8879_v14, %v8879_v14  ;;  %v4475_v55 = vmul.f32 %v4443_v15, %v8775_v45  ;;  %v4492_v33 = vsub.f32 %v4460_v63, %v4476_v0 }
 0x63f   :  { %v4104_v56 = vrot.slane %v4103_v53, 2  ;;  %v4110_v21 = vadd.f32 %v4109_v54, %v4108_v61  ;;  %v4369_v29 = vsub.f32 %v4337_v10, %v4353_v46  ;;  %v4277_v38 = vsel %vm4023_vm5, %v4187_v28, 0.0 }
 0x640   :  { %v4338_v25 = vmul.f32 0.01923077, %v4276_v26  ;;  %v4491_v3 = vsub.f32 %v4459_v34, %v4475_v55  ;;  %v4278_v13 = vrot.slane %v4277_v38, 4  ;;  %v4699_v39 = vrot.slane %v4492_v33, %v9580_v36  ;;  %v4193_v27 = vpop.xlane.xlu1 %4192 }
 0x641   :  { %v4105_v48 = vadd.f32 %v4104_v56, %v4103_v53  ;;  %v4111_v47 = vrot.slane %v4110_v21, 2  ;;  %v4385_v22 = vmax.f32 %v4369_v29, 0.0  ;;  %v4284_v45 = vsel %vm4023_vm5, %v4190_v52, 0.0  ;;  %v4019_v15 = vpop.xlane.xlu0 %4018 }
 0x642   :  { %v4370_v18 = vsub.f32 %v4338_v25, %v4354_v59  ;;  %v4695_v4 = vrot.slane %v4491_v3, %v9580_v36  ;;  %v4279_v23 = vadd.f32 %v4278_v13, %v4277_v38  ;;  %4761 = vperm.xlu1 %6836, %v4699_v39   ;;  %v4285_v49 = vrot.slane %v4284_v45, 4 }
 0x643   :  { %v4106_v5 = vrot.slane %v4105_v48, 1  ;;  %v4112_v32 = vadd.f32 %v4111_v47, %v4110_v21  ;;  %v4417_v40 = vadd.f32 1e-05, %v4385_v22  ;;  %v4445_v9 = vmul.f32 %v6851_v20, %v4397_v6  ;;  %v4462_v21 = vld [vmem:[%s9414_s7 + $0x6] sm:$0x1] }
 0x644   :  { %v4386_v37 = vmax.f32 %v4370_v18, 0.0  ;;  %4757 = vperm.xlu0 %6837, %v4695_v4   ;;  %v4280_v12 = vrot.slane %v4279_v23, 2  ;;  %v4115_v41 = vsel %vm4023_vm5, %v4016_v42, 0.0  ;;  %v4286_v43 = vadd.f32 %v4285_v49, %v4284_v45  ;;  %v4400_v4 = vld [vmem:[%s9413_s6 + $0x8] sm:$0x1] }
 0x645   :  { %v4107_v57 = vadd.f32 %v4106_v5, %v4105_v48  ;;  %v4113_v60 = vrot.slane %v4112_v32, 1  ;;  %6858 = vrsqrt.f32 %v4417_v40  ;;  %v4543_v16 = vrot.slane %v4445_v9, %v9580_v36  ;;  %v4196_v55 = vpop.xlane.xlu0 %4195  ;;  %v4022_v52 = vpop.xlane.xlu1 %4021 }
 0x646   :  { %v4418_v62 = vadd.f32 1e-05, %v4386_v37  ;;  %v4281_v30 = vadd.f32 %v4280_v12, %v4279_v23  ;;  %v4116_v19 = vrot.slane %v4115_v41, 4  ;;  %v4287_v28 = vrot.slane %v4286_v43, 2 }
 0x647   :  { %v6855_v8 = vpop.eup %6854  ;;  %v8905_v24 = vmul.f32 0.01923077, %v4107_v57  ;;  %v4114_v20 = vadd.f32 %v4113_v60, %v4112_v32  ;;  %v4446_v44 = vmul.f32 %v6853_v35, %v4398_v58  ;;  %v4477_v1 = vmul.f32 %v4445_v9, %v8786_v2 }
 0x648   :  { %6860 = vrsqrt.f32 %v4418_v62  ;;  %v4282_v54 = vrot.slane %v4281_v30, 1  ;;  %4605 = vperm.xlu0 %6837, %v4543_v16   ;;  %v4117_v63 = vadd.f32 %v4116_v19, %v4115_v41  ;;  %v4288_v10 = vadd.f32 %v4287_v28, %v4286_v43 }
 0x649   :  { %v4355_v61 = vmul.f32 %v8905_v24, %v8905_v24  ;;  %v8913_v53 = vmul.f32 0.01923077, %v4114_v20  ;;  %v8915_v46 = vpop.eup %6856  ;;  %v4547_v26 = vrot.slane %v4446_v44, %v9580_v36  ;;  %v4493_v0 = vsub.f32 %v4461_v11, %v4477_v1  ;;  %v4199_v19 = vpop.xlane.xlu1 %4198  ;;  %v4399_v1 = vld [vmem:[%s9413_s6 + $0x7] sm:$0x1] }
 0x64a   :  { %v4291_v34 = vsel %vm4023_vm5, %v4193_v27, 0.0  ;;  %v4283_v2 = vadd.f32 %v4282_v54, %v4281_v30  ;;  %v4118_v59 = vrot.slane %v4117_v63, 2  ;;  %v4289_v29 = vrot.slane %v4288_v10, 1 }
 0x64b   :  { %v4356_v35 = vmul.f32 %v8913_v53, %v8913_v53  ;;  %v4292_v56 = vrot.slane %v4291_v34, 4  ;;  %4609 = vperm.xlu1 %6836, %v4547_v26   ;;  %v4703_v25 = vrot.slane %v4493_v0, %v9580_v36  ;;  %v4122_v33 = vsel %vm4023_vm5, %v4019_v15, 0.0 }
 0x64c   :  { %v4478_v38 = vmul.f32 %v4446_v44, %v8788_v31  ;;  %v4339_v48 = vmul.f32 0.01923077, %v4283_v2  ;;  %v4119_v47 = vadd.f32 %v4118_v59, %v4117_v63  ;;  %v4123_v13 = vrot.slane %v4122_v33, 4 }
 0x64d   :  { %v4293_v3 = vadd.f32 %v4292_v56, %v4291_v34  ;;  %v4290_v6 = vadd.f32 %v4289_v29, %v4288_v10  ;;  %4765 = vperm.xlu0 %6837, %v4703_v25   ;;  %v4298_v22 = vsel %vm4023_vm5, %v4196_v55, 0.0  ;;  %v4129_v18 = vsel %vm4023_vm5, %v4022_v52, 0.0  ;;  %v4401_v25 = vld [vmem:[%s9413_s6 + $0x9] sm:$0x1] }
 0x64e   :  { %v4494_v42 = vsub.f32 %v4462_v21, %v4478_v38  ;;  %v4371_v39 = vsub.f32 %v4339_v48, %v4355_v61  ;;  %v4120_v45 = vrot.slane %v4119_v47, 1  ;;  %v4124_v32 = vadd.f32 %v4123_v13, %v4122_v33  ;;  %v4464_v21 = vld [vmem:[%s9414_s7 + $0x8] sm:$0x1] }
 0x64f   :  { %v4294_v5 = vrot.slane %v4293_v3, 2  ;;  %v4340_v31 = vmul.f32 0.01923077, %v4290_v6  ;;  %v4299_v40 = vrot.slane %v4298_v22, 4  ;;  %v4130_v37 = vrot.slane %v4129_v18, 4 }
 0x650   :  { %v4707_v23 = vrot.slane %v4494_v42, %v9580_v36  ;;  %v4387_v49 = vmax.f32 %v4371_v39, 0.0  ;;  %v4121_v9 = vadd.f32 %v4120_v45, %v4119_v47  ;;  %v4125_v60 = vrot.slane %v4124_v32, 2 }
 0x651   :  { %v4295_v57 = vadd.f32 %v4294_v5, %v4293_v3  ;;  %v4372_v12 = vsub.f32 %v4340_v31, %v4356_v35  ;;  %v4300_v41 = vadd.f32 %v4299_v40, %v4298_v22  ;;  %v4131_v58 = vadd.f32 %v4130_v37, %v4129_v18 }
 0x652   :  { %4769 = vperm.xlu1 %6836, %v4707_v23   ;;  %v4448_v15 = vmul.f32 %v6855_v8, %v4400_v4  ;;  %v6859_v62 = vpop.eup %6858  ;;  %v4419_v43 = vadd.f32 1e-05, %v4387_v49  ;;  %v8933_v16 = vmul.f32 0.01923077, %v4121_v9  ;;  %v4126_v30 = vadd.f32 %v4125_v60, %v4124_v32  ;;  %v4466_v60 = vld [vmem:[%s9414_s7 + $0xa] sm:$0x1] }
 0x653   :  { %v4296_v20 = vrot.slane %v4295_v57, 1  ;;  %v4388_v11 = vmax.f32 %v4372_v12, 0.0  ;;  %v4301_v27 = vrot.slane %v4300_v41, 2  ;;  %v4132_v28 = vrot.slane %v4131_v58, 2 }
 0x654   :  { %v4555_v44 = vrot.slane %v4448_v15, %v9580_v36  ;;  %6862 = vrsqrt.f32 %v4419_v43  ;;  %v4357_v8 = vmul.f32 %v8933_v16, %v8933_v16  ;;  %v4127_v63 = vrot.slane %v4126_v30, 1 }
 0x655   :  { %v6861_v61 = vpop.eup %6860  ;;  %v4297_v54 = vadd.f32 %v4296_v20, %v4295_v57  ;;  %v4420_v10 = vadd.f32 1e-05, %v4388_v11  ;;  %v4302_v26 = vadd.f32 %v4301_v27, %v4300_v41  ;;  %v4133_v0 = vadd.f32 %v4132_v28, %v4131_v58  ;;  %v4403_v20 = vld [vmem:[%s9413_s6 + $0xb] sm:$0x1] }
 0x656   :  { %4617 = vperm.xlu1 %6836, %v4555_v44   ;;  %v4305_v34 = vsel %vm4023_vm5, %v4199_v19, 0.0  ;;  %v4128_v2 = vadd.f32 %v4127_v63, %v4126_v30  ;;  %v4447_v56 = vmul.f32 %v8915_v46, %v4399_v1  ;;  %v4480_v29 = vmul.f32 %v4448_v15, %v8826_v17  ;;  %v4463_v46 = vld [vmem:[%s9414_s7 + $0x7] sm:$0x1]  ;;  %v4402_v17 = vld [vmem:[%s9413_s6 + $0xa] sm:$0x1] }
 0x657   :  { %v4341_v35 = vmul.f32 0.01923077, %v4297_v54  ;;  %v4306_v59 = vrot.slane %v4305_v34, 4  ;;  %6864 = vrsqrt.f32 %v4420_v10  ;;  %v4303_v55 = vrot.slane %v4302_v26, 1  ;;  %v4404_v1 = vld [vmem:[%s9413_s6 + $0xc] sm:$0x1] }
 0x658   :  { %v4134_v52 = vrot.slane %v4133_v0, 1  ;;  %v8950_v38 = vmul.f32 0.01923077, %v4128_v2  ;;  %v4551_v47 = vrot.slane %v4447_v56, %v9580_v36  ;;  %v4496_v6 = vsub.f32 %v4464_v21, %v4480_v29  ;;  %v4467_v63 = vld [vmem:[%s9414_s7 + $0xb] sm:$0x1] }
 0x659   :  { %v4373_v33 = vsub.f32 %v4341_v35, %v4357_v8  ;;  %v4307_v48 = vadd.f32 %v4306_v59, %v4305_v34  ;;  %v4304_v3 = vadd.f32 %v4303_v55, %v4302_v26  ;;  %v4479_v42 = vmul.f32 %v4447_v56, %v8851_v7  ;;  %v4465_v7 = vld [vmem:[%s9414_s7 + $0x9] sm:$0x1]  ;;  %v4468_v34 = vld [vmem:[%s9414_s7 + $0xc] sm:$0x1] }
 0x65a   :  { %v4135_v13 = vadd.f32 %v4134_v52, %v4133_v0  ;;  %4613 = vperm.xlu0 %6837, %v4551_v47   ;;  %v4449_v39 = vmul.f32 %v6859_v62, %v4401_v25  ;;  %v4358_v45 = vmul.f32 %v8950_v38, %v8950_v38  ;;  %v4715_v32 = vrot.slane %v4496_v6, %v9580_v36  ;;  %v4406_v47 = vld [vmem:[%s9413_s6 + $0xe] sm:$0x1] }
 0x65b   :  { %v4389_v22 = vmax.f32 %v4373_v33, 0.0  ;;  %v4308_v18 = vrot.slane %v4307_v48, 2  ;;  %v4342_v5 = vmul.f32 0.01923077, %v4304_v3  ;;  %v4495_v4 = vsub.f32 %v4463_v46, %v4479_v42  ;;  %v4470_v42 = vld [vmem:[%s9414_s7 + $0xe] sm:$0x1] }
 0x65c   :  { %v4450_v40 = vmul.f32 %v6861_v61, %v4402_v17  ;;  %v8966_v49 = vmul.f32 0.01923077, %v4135_v13  ;;  %4777 = vperm.xlu1 %6836, %v4715_v32   ;;  %v4481_v57 = vmul.f32 %v4449_v39, %v8876_v51  ;;  %v4559_v62 = vrot.slane %v4449_v39, %v9580_v36  ;;  %v4407_v39 = vld [vmem:[%s9413_s6 + $0xf] sm:$0x1] }
 0x65d   :  { %v4421_v31 = vadd.f32 1e-05, %v4389_v22  ;;  %v4309_v23 = vadd.f32 %v4308_v18, %v4307_v48  ;;  %v4374_v37 = vsub.f32 %v4342_v5, %v4358_v45  ;;  %v4711_v9 = vrot.slane %v4495_v4, %v9580_v36  ;;  %v4471_v4 = vld [vmem:[%s9414_s7 + $0xf] sm:$0x1] }
 0x65e   :  { %v4563_v41 = vrot.slane %v4450_v40, %v9580_v36  ;;  %v4482_v58 = vmul.f32 %v4450_v40, %v8879_v14  ;;  %v4497_v43 = vsub.f32 %v4465_v7, %v4481_v57  ;;  %v4359_v11 = vmul.f32 %v8966_v49, %v8966_v49 }
 0x65f   :  { %6866 = vrsqrt.f32 %v4421_v31  ;;  %v4310_v12 = vrot.slane %v4309_v23, 1  ;;  %v4390_v15 = vmax.f32 %v4374_v37, 0.0  ;;  %4773 = vperm.xlu0 %6837, %v4711_v9   ;;  %v6872_v9 = vld [vmem:[#allocation3 + $0x2] sm:$0x3] }
 0x660   :  { %v4498_v30 = vsub.f32 %v4466_v60, %v4482_v58  ;;  %4625 = vperm.xlu1 %6836, %v4563_v41   ;;  %v4719_v61 = vrot.slane %v4497_v43, %v9580_v36  ;;  %v6873_v60 = vld [vmem:[#allocation3] sm:$0x3] }
 0x661   :  { %v4311_v51 = vadd.f32 %v4310_v12, %v4309_v23  ;;  %v6863_v19 = vpop.eup %6862  ;;  %v4422_v14 = vadd.f32 1e-05, %v4390_v15 }
 0x662   :  { %v4723_v28 = vrot.slane %v4498_v30, %v9580_v36  ;;  %v4451_v44 = vmul.f32 %v6863_v19, %v4403_v20  ;;  %v4850_v30 = vld [vmem:[%s9415_s8 + $0x50] sm:$0xff] }
 0x663   :  { %v4343_v27 = vmul.f32 0.01923077, %v4311_v51  ;;  %6868 = vrsqrt.f32 %v4422_v14  ;;  %4621 = vperm.xlu0 %6837, %v4559_v62   ;;  %v4854_v19 = vld [vmem:[%s9415_s8 + $0x70] sm:$0xff]  ;;  %v4849_v14 = vld [vmem:[%s9415_s8 + $0x48] sm:$0xff] }
 0x664   :  { %v6865_v8 = vpop.eup %6864  ;;  %v4483_v10 = vmul.f32 %v4451_v44, %v8905_v24  ;;  %4785 = vperm.xlu1 %6836, %v4723_v28   ;;  %v4567_v35 = vrot.slane %v4451_v44, %v9580_v36  ;;  %v4405_v24 = vld [vmem:[%s9413_s6 + $0xd] sm:$0x1]  ;;  %v4848_v44 = vld [vmem:[%s9415_s8 + $0x40] sm:$0xff] }
 0x665   :  { %v4375_v54 = vsub.f32 %v4343_v27, %v4359_v11  ;;  %v4452_v26 = vmul.f32 %v6865_v8, %v4404_v1  ;;  %v4853_v11 = vld [vmem:[%s9415_s8 + $0x68] sm:$0xff]  ;;  %v6874_v27 = vld [vmem:[#allocation3 + $0x4] sm:$0x3] }
 0x666   :  { %v4499_v59 = vsub.f32 %v4467_v63, %v4483_v10  ;;  %v4859_v63 = vld [vmem:[%s9415_s8 + $0x98] sm:$0x3] }
 0x667   :  { %v4391_v0 = vmax.f32 %v4375_v54, 0.0  ;;  %4781 = vperm.xlu0 %6837, %v4719_v61   ;;  %v4571_v2 = vrot.slane %v4452_v26, %v9580_v36  ;;  %v4484_v56 = vmul.f32 %v4452_v26, %v8913_v53  ;;  %v4469_v53 = vld [vmem:[%s9414_s7 + $0xd] sm:$0x1]  ;;  %v4852_v61 = vld [vmem:[%s9415_s8 + $0x60] sm:$0xff]  ;;  %v4858_v26 = vld [vmem:[%s9415_s8 + $0x90] sm:$0xff] }
 0x668   :  { %v4727_v29 = vrot.slane %v4499_v59, %v9580_v36 }
 0x669   :  { %v4423_v21 = vadd.f32 1e-05, %v4391_v0  ;;  %4633 = vperm.xlu1 %6836, %v4571_v2   ;;  %v4500_v55 = vsub.f32 %v4468_v34, %v4484_v56  ;;  %v4857_v34 = vld [vmem:[%s9415_s8 + $0x88] sm:$0xff]  ;;  %v6876_v56 = vld [vmem:[#allocation3 + $0x6] sm:$0x3] }
 0x66a   :  { %v6875_v2 = vld [vmem:[#allocation3 + $0x8] sm:$0x3] }
 0x66b   :  { %6870 = vrsqrt.f32 %v4423_v21  ;;  %4629 = vperm.xlu0 %6837, %v4567_v35   ;;  %v4731_v25 = vrot.slane %v4500_v55, %v9580_v36  ;;  %v4856_v35 = vld [vmem:[%s9415_s8 + $0x80] sm:$0xff] }
 0x66c   :  { %v6867_v52 = vpop.eup %6866 }
 0x66d   :  { %v4453_v33 = vmul.f32 %v6867_v52, %v4405_v24  ;;  %4793 = vperm.xlu1 %6836, %v4731_v25  }
 0x66f   :  { %v4485_v48 = vmul.f32 %v4453_v33, %v8933_v16  ;;  %4789 = vperm.xlu0 %6837, %v4727_v29   ;;  %v4575_v46 = vrot.slane %v4453_v33, %v9580_v36  ;;  %v4867_v33 = vld [vmem:[%s9415_s8 + $0xd8] sm:$0x3] }
 0x670   :  { %v6869_v3 = vpop.eup %6868 }
 0x671   :  { %v4501_v13 = vsub.f32 %v4469_v53, %v4485_v48  ;;  %v4454_v6 = vmul.f32 %v6869_v3, %v4406_v47  ;;  %v4863_v48 = vld [vmem:[%s9415_s8 + $0xb8] sm:$0x3]  ;;  %v4862_v3 = vld [vmem:[%s9415_s8 + $0xb0] sm:$0xff] }
 0x673   :  { %4637 = vperm.xlu0 %6837, %v4575_v46   ;;  %v4735_v17 = vrot.slane %v4501_v13, %v9580_v36  ;;  %v4579_v22 = vrot.slane %v4454_v6, %v9580_v36  ;;  %v4486_v16 = vmul.f32 %v4454_v6, %v8950_v38  ;;  %v4866_v46 = vld [vmem:[%s9415_s8 + $0xd0] sm:$0xff]  ;;  %v4861_v6 = vld [vmem:[%s9415_s8 + $0xa8] sm:$0xff] }
 0x675   :  { %4641 = vperm.xlu1 %6836, %v4579_v22   ;;  %v4502_v18 = vsub.f32 %v4470_v42, %v4486_v16  ;;  %v4865_v42 = vld [vmem:[%s9415_s8 + $0xc8] sm:$0xff] }
 0x677   :  { %4797 = vperm.xlu0 %6837, %v4735_v17   ;;  %v4739_v5 = vrot.slane %v4502_v18, %v9580_v36  ;;  %v6877_v17 = vld [vmem:[#allocation3 + $0xa] sm:$0x3]  ;;  %v4860_v18 = vld [vmem:[%s9415_s8 + $0xa0] sm:$0xff] }
 0x678   :  { %v6871_v45 = vpop.eup %6870 }
 0x679   :  { %v4455_v32 = vmul.f32 %v6871_v45, %v4407_v39  ;;  %4801 = vperm.xlu1 %6836, %v4739_v5   ;;  %v4864_v39 = vld [vmem:[%s9415_s8 + $0xc0] sm:$0xff]  ;;  %v6878_v5 = vld [vmem:[#allocation3 + $0xc] sm:$0x3] }
 0x67b   :  { %v4583_v31 = vrot.slane %v4455_v32, %v9580_v36  ;;  %v4487_v38 = vmul.f32 %v4455_v32, %v8966_v49  ;;  %v4851_v49 = vld [vmem:[%s9415_s8 + $0x58] sm:$0x3] }
 0x67d   :  { %4645 = vperm.xlu0 %6837, %v4583_v31   ;;  %v4503_v23 = vsub.f32 %v4471_v4, %v4487_v38  ;;  %v4871_v31 = vld [vmem:[%s9415_s8 + $0xf8] sm:$0x3] }
 0x67f   :  { %v4743_v40 = vrot.slane %v4503_v23, %v9580_v36  ;;  %v4855_v36 = vld [vmem:[%s9415_s8 + $0x78] sm:$0x3] }
 0x681   :  { %4805 = vperm.xlu0 %6837, %v4743_v40   ;;  %v4870_v40 = vld [vmem:[%s9415_s8 + $0xf0] sm:$0xff] }
 0x6a1   :  { %v4590_v7 = vpop.permute.xlu1 %4589 }
 0x6a2   :  { %v4649_v57 = vmul.f32 %v6872_v9, %v4590_v7  ;;  %v4869_v9 = vld [vmem:[%s9415_s8 + $0xe8] sm:$0xff] }
 0x6a5   :  { %v4586_v37 = vpop.permute.xlu0 %4585 }
 0x6a6   :  { %v4648_v12 = vmul.f32 %v6873_v60, %v4586_v37  ;;  %v4875_v37 = vld [vmem:[%s9415_s8 + $0x118] sm:$0x3] }
 0x6aa   :  { %v4750_v41 = vpop.permute.xlu0 %4749  ;;  %v4746_v58 = vpop.permute.xlu1 %4745 }
 0x6ab   :  { %v4809_v15 = vadd.f32 %v4750_v41, %v4649_v57  ;;  %v4808_v62 = vadd.f32 %v4746_v58, %v4648_v12  ;;  %v4874_v57 = vld [vmem:[%s9415_s8 + $0x110] sm:$0xff]  ;;  %v4868_v12 = vld [vmem:[%s9415_s8 + $0xe0] sm:$0xff]  ;;  %v4873_v41 = vld [vmem:[%s9415_s8 + $0x108] sm:$0xff] }
 0x6ad   :  { %v4825_v43 = vmax.f32 %v4809_v15, 0.0  ;;  %v4824_v20 = vmax.f32 %v4808_v62, 0.0  ;;  %v4872_v15 = vld [vmem:[%s9415_s8 + $0x100] sm:$0xff]  ;;  %v6879_v62 = vld [vmem:[#allocation3 + $0x10] sm:$0x3] }
 0x6ae   :  { %v4594_v51 = vpop.permute.xlu1 %4593 }
 0x6af   :  { %6539 = vmatmul.mubr.msk.f32.vlgmr.msra.gmra.mxu1 %vm4904_vm7, %v4824_v20  ;;  %6550 = vmatmul.mubr.msk.f32.vlgmr.msra.gmra.mxu0 %vm4904_vm7, %v4825_v43  ;;  %v4650_v28 = vmul.f32 %v6874_v27, %v4594_v51 }
 0x6b0   :  { %6553 = vmatpush3.msk.msra.mxu1 %vm4023_vm5, %v4851_v49  ;;  %6560 = vmatprep.mubr.msk.f32.mxu1 %vm6953_vm6, %v9581_v50  ;;  %v6880_v49 = vld [vmem:[#allocation3 + $0xe] sm:$0x3] }
 0x6b1   :  { %6554 = vmatprep.subr.mxu1 %v9581_v50  ;;  %6564 = vmatpush3.msk.msra.mxu0 %vm4023_vm5, %v4855_v36 }
 0x6b2   :  { %6555 = vmatpush3.msra.mxu1 %v4850_v30  ;;  %6565 = vmatprep.subr.mxu0 %v9581_v50 }
 0x6b3   :  { %6556 = vmatprep.subr.mxu1 %v9581_v50  ;;  %6566 = vmatpush3.msra.mxu0 %v4854_v19 }
 0x6b4   :  { %v4754_v1 = vpop.permute.xlu1 %4753  ;;  %6557 = vmatpush3.msra.mxu1 %v4849_v14  ;;  %6567 = vmatprep.subr.mxu0 %v9581_v50 }
 0x6b5   :  { %v4810_v8 = vadd.f32 %v4754_v1, %v4650_v28  ;;  %6558 = vmatprep.subr.mxu1 %v9581_v50  ;;  %6568 = vmatpush3.msra.mxu0 %v4853_v11  ;;  %v4883_v11 = vld [vmem:[%s9415_s8 + $0x158] sm:$0x3]  ;;  %v4882_v1 = vld [vmem:[%s9415_s8 + $0x150] sm:$0xff] }
 0x6b6   :  { %6559 = vmatpush3.msra.mxu1 %v4848_v44  ;;  %6569 = vmatprep.subr.mxu0 %v9581_v50  ;;  %v4879_v44 = vld [vmem:[%s9415_s8 + $0x138] sm:$0x3] }
 0x6b7   :  { %v4826_v54 = vmax.f32 %v4810_v8, 0.0  ;;  %6574 = vmatprep.subr.mxu1 %v9581_v50  ;;  %6570 = vmatpush3.msra.mxu0 %v4852_v61  ;;  %v4598_v0 = vpop.permute.xlu0 %4597  ;;  %v6881_v8 = vld [vmem:[#allocation3 + $0x14] sm:$0x3] }
 0x6b8   :  { %6571 = vmatprep.mubr.msk.f32.mxu0 %vm6953_vm6, %v9581_v50  ;;  %6585 = vmatprep.subr.mxu0 %v9581_v50  ;;  %v4602_v10 = vpop.permute.xlu1 %4601  ;;  %v4651_v21 = vmul.f32 %v6876_v56, %v4598_v0  ;;  %v6882_v0 = vld [vmem:[#allocation3 + $0x12] sm:$0x3]  ;;  %v4880_v56 = vld [vmem:[%s9415_s8 + $0x140] sm:$0xff] }
 0x6b9   :  { %6561 = vmatmul.mubr.msk.f32.vlgmr.msra.gmra.mxu1 %vm4904_vm7, %v4826_v54  ;;  %v4652_v59 = vmul.f32 %v6875_v2, %v4602_v10 }
 0x6ba   :  { %6575 = vmatpush3.msk.msra.mxu1 %vm4023_vm5, %v4859_v63  ;;  %6582 = vmatprep.mubr.msk.f32.mxu1 %vm6953_vm6, %v9581_v50  ;;  %v4878_v63 = vld [vmem:[%s9415_s8 + $0x130] sm:$0xff] }
 0x6bb   :  { %6576 = vmatprep.subr.mxu1 %v9581_v50 }
 0x6bc   :  { %6577 = vmatpush3.msra.mxu1 %v4858_v26  ;;  %v4881_v26 = vld [vmem:[%s9415_s8 + $0x148] sm:$0xff] }
 0x6bd   :  { %6578 = vmatprep.subr.mxu1 %v9581_v50  ;;  %v4762_v55 = vpop.permute.xlu1 %4761 }
 0x6be   :  { %6579 = vmatpush3.msra.mxu1 %v4857_v34  ;;  %v4812_v52 = vadd.f32 %v4762_v55, %v4652_v59 }
 0x6bf   :  { %6580 = vmatprep.subr.mxu1 %v9581_v50  ;;  %v4758_v24 = vpop.permute.xlu0 %4757 }
 0x6c0   :  { %6581 = vmatpush3.msra.mxu1 %v4856_v35  ;;  %v4811_v29 = vadd.f32 %v4758_v24, %v4651_v21  ;;  %v4828_v25 = vmax.f32 %v4812_v52, 0.0  ;;  %v4877_v35 = vld [vmem:[%s9415_s8 + $0x128] sm:$0xff]  ;;  %v4876_v24 = vld [vmem:[%s9415_s8 + $0x120] sm:$0xff] }
 0x6c1   :  { %6596 = vmatprep.subr.mxu1 %v9581_v50 }
 0x6c2   :  { %v4827_v53 = vmax.f32 %v4811_v29, 0.0  ;;  %6583 = vmatmul.mubr.msk.f32.vlgmr.msra.gmra.mxu1 %vm4904_vm7, %v4828_v25  ;;  %v4887_v25 = vld [vmem:[%s9415_s8 + $0x178] sm:$0x3] }
 0x6c3   :  { %v4606_v47 = vpop.permute.xlu0 %4605  ;;  %6597 = vmatpush3.msk.msra.mxu1 %vm4023_vm5, %v4867_v33  ;;  %6604 = vmatprep.mubr.msk.f32.mxu1 %vm6953_vm6, %v9581_v50 }
 0x6c4   :  { %6572 = vmatmul.mubr.msk.f32.vlgmr.msra.gmra.mxu0 %vm4904_vm7, %v4827_v53  ;;  %6598 = vmatprep.subr.mxu1 %v9581_v50  ;;  %v4653_v22 = vmul.f32 %v6877_v17, %v4606_v47  ;;  %v4891_v53 = vld [vmem:[%s9415_s8 + $0x198] sm:$0x3]  ;;  %v4885_v17 = vld [vmem:[%s9415_s8 + $0x168] sm:$0xff] }
 0x6c5   :  { %6586 = vmatpush3.msk.msra.mxu0 %vm4023_vm5, %v4863_v48  ;;  %6599 = vmatpush3.msra.mxu1 %v4866_v46  ;;  %v4886_v48 = vld [vmem:[%s9415_s8 + $0x170] sm:$0xff]  ;;  %v6883_v47 = vld [vmem:[#allocation3 + $0x18] sm:$0x3] }
 0x6c6   :  { %v4610_v13 = vpop.permute.xlu1 %4609  ;;  %6587 = vmatprep.subr.mxu0 %v9581_v50  ;;  %6600 = vmatprep.subr.mxu1 %v9581_v50 }
 0x6c7   :  { %6588 = vmatpush3.msra.mxu0 %v4862_v3  ;;  %6593 = vmatprep.mubr.msk.f32.mxu0 %vm6953_vm6, %v9581_v50  ;;  %v4654_v32 = vmul.f32 %v6878_v5, %v4610_v13  ;;  %v4890_v3 = vld [vmem:[%s9415_s8 + $0x190] sm:$0xff] }
 0x6c8   :  { %v4766_v16 = vpop.permute.xlu0 %4765  ;;  %6589 = vmatprep.subr.mxu0 %v9581_v50  ;;  %6601 = vmatpush3.msra.mxu1 %v4865_v42 }
 0x6c9   :  { %v4813_v45 = vadd.f32 %v4766_v16, %v4653_v22  ;;  %6590 = vmatpush3.msra.mxu0 %v4861_v6  ;;  %6602 = vmatprep.subr.mxu1 %v9581_v50  ;;  %v6884_v6 = vld [vmem:[#allocation3 + $0x16] sm:$0x3] }
 0x6ca   :  { %6591 = vmatprep.subr.mxu0 %v9581_v50  ;;  %6603 = vmatpush3.msra.mxu1 %v4864_v39  ;;  %v4884_v39 = vld [vmem:[%s9415_s8 + $0x160] sm:$0xff] }
 0x6cb   :  { %v4829_v4 = vmax.f32 %v4813_v45, 0.0  ;;  %6592 = vmatpush3.msra.mxu0 %v4860_v18  ;;  %6618 = vmatprep.subr.mxu1 %v9581_v50  ;;  %v4889_v45 = vld [vmem:[%s9415_s8 + $0x188] sm:$0xff] }
 0x6cc   :  { %6607 = vmatprep.subr.mxu0 %v9581_v50 }
 0x6cd   :  { %v4770_v38 = vpop.permute.xlu1 %4769  ;;  %6594 = vmatmul.mubr.msk.f32.vlgmr.msra.gmra.mxu0 %vm4904_vm7, %v4829_v4 }
 0x6ce   :  { %v4814_v23 = vadd.f32 %v4770_v38, %v4654_v32  ;;  %6608 = vmatpush3.msk.msra.mxu0 %vm4023_vm5, %v4871_v31  ;;  %6615 = vmatprep.mubr.msk.f32.mxu0 %vm6953_vm6, %v9581_v50  ;;  %v4888_v32 = vld [vmem:[%s9415_s8 + $0x180] sm:$0xff]  ;;  %v4895_v38 = vld [vmem:[%s9415_s8 + $0x1b8] sm:$0x3] }
 0x6cf   :  { %6609 = vmatprep.subr.mxu0 %v9581_v50 }
 0x6d0   :  { %v4830_v7 = vmax.f32 %v4814_v23, 0.0  ;;  %6610 = vmatpush3.msra.mxu0 %v4870_v40  ;;  %v4894_v23 = vld [vmem:[%s9415_s8 + $0x1b0] sm:$0xff] }
 0x6d1   :  { %6611 = vmatprep.subr.mxu0 %v9581_v50  ;;  %v4618_v60 = vpop.permute.xlu1 %4617 }
 0x6d2   :  { %6605 = vmatmul.mubr.msk.f32.vlgmr.msra.gmra.mxu1 %vm4904_vm7, %v4830_v7  ;;  %6612 = vmatpush3.msra.mxu0 %v4869_v9  ;;  %v4656_v43 = vmul.f32 %v6879_v62, %v4618_v60  ;;  %v6885_v7 = vld [vmem:[#allocation3 + $0x1a] sm:$0x3]  ;;  %v4899_v60 = vld [vmem:[%s9415_s8 + $0x1d8] sm:$0x3]  ;;  %v4898_v62 = vld [vmem:[%s9415_s8 + $0x1d0] sm:$0xff] }
 0x6d3   :  { %6619 = vmatpush3.msk.msra.mxu1 %vm4023_vm5, %v4875_v37  ;;  %6626 = vmatprep.mubr.msk.f32.mxu1 %vm6953_vm6, %v9581_v50 }
 0x6d4   :  { %6620 = vmatprep.subr.mxu1 %v9581_v50  ;;  %6613 = vmatprep.subr.mxu0 %v9581_v50 }
 0x6d5   :  { %6621 = vmatpush3.msra.mxu1 %v4874_v57  ;;  %v4614_v58 = vpop.permute.xlu0 %4613  ;;  %6614 = vmatpush3.msra.mxu0 %v4868_v12  ;;  %v4893_v57 = vld [vmem:[%s9415_s8 + $0x1a8] sm:$0xff] }
 0x6d6   :  { %6622 = vmatprep.subr.mxu1 %v9581_v50  ;;  %6629 = vmatprep.subr.mxu0 %v9581_v50  ;;  %v4655_v51 = vmul.f32 %v6880_v49, %v4614_v58 }
 0x6d7   :  { %6623 = vmatpush3.msra.mxu1 %v4873_v41  ;;  %v4778_v20 = vpop.permute.xlu1 %4777  ;;  %v6886_v41 = vld [vmem:[#allocation3 + $0x1c] sm:$0x3] }
 0x6d8   :  { %6624 = vmatprep.subr.mxu1 %v9581_v50  ;;  %v4816_v36 = vadd.f32 %v4778_v20, %v4656_v43 }
 0x6d9   :  { %6625 = vmatpush3.msra.mxu1 %v4872_v15  ;;  %v4892_v15 = vld [vmem:[%s9415_s8 + $0x1a0] sm:$0xff] }
 0x6da   :  { %6640 = vmatprep.subr.mxu1 %v9581_v50  ;;  %v4774_v30 = vpop.permute.xlu0 %4773  ;;  %v4832_v19 = vmax.f32 %v4816_v36, 0.0 }
 0x6db   :  { %v4815_v14 = vadd.f32 %v4774_v30, %v4655_v51  ;;  %v4626_v27 = vpop.permute.xlu1 %4625  ;;  %v4897_v51 = vld [vmem:[%s9415_s8 + $0x1c8] sm:$0xff]  ;;  %v4903_v30 = vld [vmem:[%s9415_s8 + $0x1f8] sm:$0x3] }
 0x6dc   :  { %6627 = vmatmul.mubr.msk.f32.vlgmr.msra.gmra.mxu1 %vm4904_vm7, %v4832_v19  ;;  %v4658_v54 = vmul.f32 %v6881_v8, %v4626_v27  ;;  %v4896_v19 = vld [vmem:[%s9415_s8 + $0x1c0] sm:$0xff]  ;;  %v6887_v27 = vld [vmem:[#allocation3 + $0x1e] sm:$0x3] }
 0x6dd   :  { %v4831_v28 = vmax.f32 %v4815_v14, 0.0  ;;  %6641 = vmatpush3.msk.msra.mxu1 %vm4023_vm5, %v4883_v11  ;;  %6648 = vmatprep.mubr.msk.f32.mxu1 %vm6953_vm6, %v9581_v50  ;;  %v4902_v11 = vld [vmem:[%s9415_s8 + $0x1f0] sm:$0xff]  ;;  %v4900_v8 = vld [vmem:[%s9415_s8 + $0x1e0] sm:$0xff] }
 0x6de   :  { %v4622_v61 = vpop.permute.xlu0 %4621  ;;  %6642 = vmatprep.subr.mxu1 %v9581_v50 }
 0x6df   :  { %6616 = vmatmul.mubr.msk.f32.vlgmr.msra.gmra.mxu0 %vm4904_vm7, %v4831_v28  ;;  %6643 = vmatpush3.msra.mxu1 %v4882_v1  ;;  %v4786_v10 = vpop.permute.xlu1 %4785  ;;  %v4657_v34 = vmul.f32 %v6882_v0, %v4622_v61  ;;  %v4901_v1 = vld [vmem:[%s9415_s8 + $0x1e8] sm:$0xff]  ;;  %v6166_v0 = vld [vmem:[%s9416_s10 + $0x20] sm:$0xff] }
 0x6e0   :  { %6630 = vmatpush3.msk.msra.mxu0 %vm4023_vm5, %v4879_v44  ;;  %v4818_v2 = vadd.f32 %v4786_v10, %v4658_v54  ;;  %6644 = vmatprep.subr.mxu1 %v9581_v50  ;;  %v6168_v10 = vld [vmem:[%s9416_s10 + $0x30] sm:$0xff] }
 0x6e1   :  { %6631 = vmatprep.subr.mxu0 %v9581_v50  ;;  %6637 = vmatprep.mubr.msk.f32.mxu0 %vm6953_vm6, %v9581_v50 }
 0x6e2   :  { %v4782_v59 = vpop.permute.xlu0 %4781  ;;  %6632 = vmatpush3.msra.mxu0 %v4878_v63  ;;  %v4834_v55 = vmax.f32 %v4818_v2, 0.0  ;;  %6645 = vmatpush3.msra.mxu1 %v4881_v26  ;;  %v6169_v63 = vld [vmem:[%s9416_s10 + $0x38] sm:$0xff]  ;;  %v6167_v26 = vld [vmem:[%s9416_s10 + $0x28] sm:$0xff] }
 0x6e3   :  { %v4817_v21 = vadd.f32 %v4782_v59, %v4657_v34  ;;  %6633 = vmatprep.subr.mxu0 %v9581_v50  ;;  %6646 = vmatprep.subr.mxu1 %v9581_v50  ;;  %v6165_v34 = vld [vmem:[%s9416_s10 + $0x18] sm:$0xff]  ;;  %v6163_v2 = vld [vmem:[%s9416_s10 + $0x8] sm:$0xff]  ;;  %v6162_v59 = vld [vmem:[%s9416_s10] sm:$0xff] }
 0x6e4   :  { %6634 = vmatpush3.msra.mxu0 %v4877_v35  ;;  %v4634_v52 = vpop.permute.xlu1 %4633  ;;  %6647 = vmatpush3.msra.mxu1 %v4880_v56  ;;  %v6164_v35 = vld [vmem:[%s9416_s10 + $0x10] sm:$0xff]  ;;  %v6258_v56 = vld [vmem:[%s9417_s12 + $0x38] sm:$0xff] }
 0x6e5   :  { %v4833_v29 = vmax.f32 %v4817_v21, 0.0  ;;  %6635 = vmatprep.subr.mxu0 %v9581_v50  ;;  %6649 = vmatmul.mubr.msk.f32.vlgmr.msra.gmra.mxu1 %vm4904_vm7, %v4834_v55  ;;  %v4660_v46 = vmul.f32 %v6883_v47, %v4634_v52  ;;  %v6257_v21 = vld [vmem:[%s9417_s12 + $0x30] sm:$0xff]  ;;  %v6256_v55 = vld [vmem:[%s9417_s12 + $0x28] sm:$0xff]  ;;  %v6254_v52 = vld [vmem:[%s9417_s12 + $0x18] sm:$0xff] }
 0x6e6   :  { %6636 = vmatpush3.msra.mxu0 %v4876_v24  ;;  %v4630_v33 = vpop.permute.xlu0 %4629  ;;  %6662 = vmatprep.subr.mxu1 %v9581_v50  ;;  %v6255_v24 = vld [vmem:[%s9417_s12 + $0x20] sm:$0xff] }
 0x6e7   :  { %6638 = vmatmul.mubr.msk.f32.vlgmr.msra.gmra.mxu0 %vm4904_vm7, %v4833_v29  ;;  %6651 = vmatprep.subr.mxu0 %v9581_v50  ;;  %v4659_v42 = vmul.f32 %v6884_v6, %v4630_v33 }
 0x6e8   :  { %6652 = vmatpush3.msk.msra.mxu0 %vm4023_vm5, %v4887_v25  ;;  %v4794_v13 = vpop.permute.xlu1 %4793  ;;  %6663 = vmatpush3.msk.msra.mxu1 %vm4023_vm5, %v4891_v53 }
 0x6e9   :  { %6653 = vmatprep.subr.mxu0 %v9581_v50  ;;  %6664 = vmatprep.subr.mxu1 %v9581_v50  ;;  %v4820_v16 = vadd.f32 %v4794_v13, %v4660_v46 }
 0x6ea   :  { %v4790_v22 = vpop.permute.xlu0 %4789  ;;  %6654 = vmatpush3.msra.mxu0 %v4886_v48  ;;  %6665 = vmatpush3.msra.mxu1 %v4890_v3 }
 0x6eb   :  { %v4819_v18 = vadd.f32 %v4790_v22, %v4659_v42  ;;  %6655 = vmatprep.subr.mxu0 %v9581_v50  ;;  %6666 = vmatprep.subr.mxu1 %v9581_v50  ;;  %v4836_v4 = vmax.f32 %v4820_v16, 0.0 }
 0x6ec   :  { %6656 = vmatpush3.msra.mxu0 %v4885_v17  ;;  %6659 = vmatprep.mubr.msk.f32.mxu0 %vm6953_vm6, %v9581_v50 }
 0x6ed   :  { %v4835_v5 = vmax.f32 %v4819_v18, 0.0  ;;  %6657 = vmatprep.subr.mxu0 %v9581_v50  ;;  %6667 = vmatpush3.msra.mxu1 %v4889_v45 }
 0x6ee   :  { %v4638_v31 = vpop.permute.xlu0 %4637  ;;  %6658 = vmatpush3.msra.mxu0 %v4884_v39  ;;  %6668 = vmatprep.subr.mxu1 %v9581_v50 }
 0x6ef   :  { %6660 = vmatmul.mubr.msk.f32.vlgmr.msra.gmra.mxu0 %vm4904_vm7, %v4835_v5  ;;  %6673 = vmatprep.subr.mxu0 %v9581_v50  ;;  %v4661_v37 = vmul.f32 %v6885_v7, %v4638_v31 }
 0x6f0   :  { %6669 = vmatpush3.msra.mxu1 %v4888_v32  ;;  %v4642_v40 = vpop.permute.xlu1 %4641  ;;  %6670 = vmatprep.mubr.msk.f32.mxu1 %vm6953_vm6, %v9581_v50 }
 0x6f1   :  { %6674 = vmatpush3.msk.msra.mxu0 %vm4023_vm5, %v4895_v38  ;;  %6671 = vmatmul.mubr.msk.f32.vlgmr.msra.gmra.mxu1 %vm4904_vm7, %v4836_v4  ;;  %v4662_v58 = vmul.f32 %v6886_v41, %v4642_v40 }
 0x6f2   :  { %6675 = vmatprep.subr.mxu0 %v9581_v50  ;;  %v4798_v9 = vpop.permute.xlu0 %4797  ;;  %6684 = vmatprep.subr.mxu1 %v9581_v50 }
 0x6f3   :  { %v4821_v12 = vadd.f32 %v4798_v9, %v4661_v37  ;;  %6676 = vmatpush3.msra.mxu0 %v4894_v23  ;;  %6681 = vmatprep.mubr.msk.f32.mxu0 %vm6953_vm6, %v9581_v50 }
 0x6f4   :  { %6677 = vmatprep.subr.mxu0 %v9581_v50  ;;  %v4802_v43 = vpop.permute.xlu1 %4801  ;;  %6685 = vmatpush3.msk.msra.mxu1 %vm4023_vm5, %v4899_v60 }
 0x6f5   :  { %v4837_v20 = vmax.f32 %v4821_v12, 0.0  ;;  %6678 = vmatpush3.msra.mxu0 %v4893_v57  ;;  %v4822_v49 = vadd.f32 %v4802_v43, %v4662_v58  ;;  %6686 = vmatprep.subr.mxu1 %v9581_v50 }
 0x6f6   :  { %6679 = vmatprep.subr.mxu0 %v9581_v50  ;;  %6687 = vmatpush3.msra.mxu1 %v4898_v62 }
 0x6f7   :  { %6680 = vmatpush3.msra.mxu0 %v4892_v15  ;;  %6688 = vmatprep.subr.mxu1 %v9581_v50  ;;  %v4838_v14 = vmax.f32 %v4822_v49, 0.0 }
 0x6f8   :  { %v4646_v36 = vpop.permute.xlu0 %4645  ;;  %6682 = vmatmul.mubr.msk.f32.vlgmr.msra.gmra.mxu0 %vm4904_vm7, %v4837_v20  ;;  %6695 = vmatprep.subr.mxu0 %v9581_v50 }
 0x6f9   :  { %6689 = vmatpush3.msra.mxu1 %v4897_v51  ;;  %v4663_v28 = vmul.f32 %v6887_v27, %v4646_v36  ;;  %6696 = vmatpush3.msk.msra.mxu0 %vm4023_vm5, %v4903_v30 }
 0x6fa   :  { %6690 = vmatprep.subr.mxu1 %v9581_v50  ;;  %6697 = vmatprep.subr.mxu0 %v9581_v50 }
 0x6fb   :  { %6691 = vmatpush3.msra.mxu1 %v4896_v19  ;;  %6692 = vmatprep.mubr.msk.f32.mxu1 %vm6953_vm6, %v9581_v50 }
 0x6fc   :  { %v4806_v44 = vpop.permute.xlu0 %4805  ;;  %6698 = vmatpush3.msra.mxu0 %v4902_v11  ;;  %6693 = vmatmul.mubr.msk.f32.vlgmr.msra.gmra.mxu1 %vm4904_vm7, %v4838_v14 }
 0x6fd   :  { %v4823_v61 = vadd.f32 %v4806_v44, %v4663_v28  ;;  %6699 = vmatprep.subr.mxu0 %v9581_v50  ;;  %6703 = vmatprep.mubr.msk.f32.mxu0 %vm6953_vm6, %v9581_v50 }
 0x6fe   :  { %6700 = vmatpush3.msra.mxu0 %v4901_v1  ;;  %6706 = vmatprep.subr.mxu1 %v9581_v50 }
 0x6ff   :  { %v4839_v54 = vmax.f32 %v4823_v61, 0.0  ;;  %6701 = vmatprep.subr.mxu0 %v9581_v50  ;;  %6722 = vmatprep.mubr.msk.f32.mxu1 %vm6953_vm6, %v9581_v50 }
 0x700   :  { %6702 = vmatpush3.msra.mxu0 %v4900_v8  ;;  %6707 = vmatpush3.msra.mxu1 %v6169_v63 }
 0x701   :  { %6704 = vmatmul.mubr.msk.f32.vlgmr.msra.gmra.mxu0 %vm4904_vm7, %v4839_v54  ;;  %6725 = vmatprep.subr.mxu0 %v9581_v50 }
 0x702   :  { %6741 = vmatprep.mubr.msk.f32.mxu0 %vm6953_vm6, %v9581_v50  ;;  %6708 = vmatprep.subr.mxu1 %v9581_v50 }
 0x703   :  { %6709 = vmatpush3.msra.mxu1 %v6168_v10  ;;  %6726 = vmatpush3.msra.mxu0 %v6258_v56 }
 0x704   :  { %6710 = vmatprep.subr.mxu1 %v9581_v50  ;;  %6727 = vmatprep.subr.mxu0 %v9581_v50 }
 0x705   :  { %6711 = vmatpush3.msra.mxu1 %v6167_v26  ;;  %6728 = vmatpush3.msra.mxu0 %v6257_v21 }
 0x706   :  { %6712 = vmatprep.subr.mxu1 %v9581_v50  ;;  %6729 = vmatprep.subr.mxu0 %v9581_v50 }
 0x707   :  { %6713 = vmatpush3.msra.mxu1 %v6166_v0  ;;  %6730 = vmatpush3.msra.mxu0 %v6256_v55 }
 0x708   :  { %6714 = vmatprep.subr.mxu1 %v9581_v50  ;;  %6731 = vmatprep.subr.mxu0 %v9581_v50 }
 0x709   :  { %6715 = vmatpush3.msra.mxu1 %v6165_v34  ;;  %6732 = vmatpush3.msra.mxu0 %v6255_v24  ;;  %v6427_v24 = vld [vmem:[%s9418_s9] ss:$0 sm:$0xff] }
 0x70a   :  { %6716 = vmatprep.subr.mxu1 %v9581_v50  ;;  %6733 = vmatprep.subr.mxu0 %v9581_v50 }
 0x70b   :  { %6717 = vmatpush3.msra.mxu1 %v6164_v35  ;;  %6734 = vmatpush3.msra.mxu0 %v6254_v52 }
 0x70c   :  { %6718 = vmatprep.subr.mxu1 %v9581_v50  ;;  %6735 = vmatprep.subr.mxu0 %v9581_v50 }
 0x70d   :  { %6719 = vmatpush3.msra.mxu1 %v6163_v2 }
 0x70e   :  { %6720 = vmatprep.subr.mxu1 %v9581_v50 }
 0x70f   :  { %6721 = vmatpush3.msra.mxu1 %v6162_v59 }
 0x76f   :  { %v4977_v29 = vpop.f32.mrf.mxu1  ;;  %v5053_v25 = vpop.f32.mrf.mxu0 }
 0x770   :  { %v6122_v18 = vsel %vm6121_vm8, %v4977_v29, 0.0  ;;  %v6123_v39 = vsel %vm6121_vm8, %v5053_v25, 0.0 }
 0x771   :  { %v6540_v33 = vpop.f32.mrf.mxu1  ;;  %v6551_v53 = vpop.f32.mrf.mxu0  ;;  %v6124_v5 = vadd.f32 %v6123_v39, %v6122_v18 }
 0x772   :  { %v6253_v53 = vld [vmem:[%s9417_s12 + $0x10] sm:$0xff] }
 0x773   :  { %6736 = vmatpush3.msra.mxu0 %v6253_v53 }
 0x774   :  { %6737 = vmatprep.subr.mxu0 %v9581_v50 }
 0x779   :  { %v5129_v48 = vpop.f32.mrf.mxu1 }
 0x77a   :  { %v6125_v45 = vsel %vm6121_vm8, %v5129_v48, 0.0  ;;  %v6252_v48 = vld [vmem:[%s9417_s12 + $0x8] sm:$0xff] }
 0x77b   :  { %v6562_v47 = vpop.f32.mrf.mxu1  ;;  %v6126_v31 = vadd.f32 %v6125_v45, %v6124_v5  ;;  %6738 = vmatpush3.msra.mxu0 %v6252_v48 }
 0x77c   :  { %v6251_v47 = vld [vmem:[%s9417_s12] sm:$0xff]  ;;  %6739 = vmatprep.subr.mxu0 %v9581_v50 }
 0x77d   :  { %6740 = vmatpush3.msra.mxu0 %v6251_v47 }
 0x782   :  { %v5281_v46 = vpop.f32.mrf.mxu1 }
 0x783   :  { %v6129_v37 = vsel %vm6121_vm8, %v5281_v46, 0.0  ;;  %v19_v46 = vstv %s9419_s13 }
 0x784   :  { %v5205_v3 = vpop.f32.mrf.mxu0  ;;  %v6584_v13 = vpop.f32.mrf.mxu1  ;;  %20 = vst [vmem:[#allocation4] sm:$0x1] %v19_v46 }
 0x785   :  { %v6127_v4 = vsel %vm6121_vm8, %v5205_v3, 0.0  ;;  %v6428_v3 = vld [vmem:[%s9420_s11] ss:$0 sm:$0xff] }
 0x786   :  { %v6573_v6 = vpop.f32.mrf.mxu0  ;;  %v6128_v40 = vadd.f32 %v6127_v4, %v6126_v31 }
 0x788   :  { %v6130_v57 = vadd.f32 %v6129_v37, %v6128_v40 }
 0x78d   :  { %v5357_v42 = vpop.f32.mrf.mxu0 }
 0x78e   :  { %v6131_v9 = vsel %vm6121_vm8, %v5357_v42, 0.0 }
 0x78f   :  { %v6595_v17 = vpop.f32.mrf.mxu0  ;;  %v6132_v12 = vadd.f32 %v6131_v9, %v6130_v57 }
 0x792   :  { %v5433_v22 = vpop.f32.mrf.mxu1 }
 0x793   :  { %v6133_v58 = vsel %vm6121_vm8, %v5433_v22, 0.0  ;;  %v6430_v22 = vld [vmem:[#allocation4] ss:$0 sm:$0xff] }
 0x794   :  { %v6606_v16 = vpop.f32.mrf.mxu1  ;;  %v6134_v20 = vadd.f32 %v6133_v58, %v6132_v12 }
 0x79c   :  { %v5585_v32 = vpop.f32.mrf.mxu1 }
 0x79d   :  { %v6137_v36 = vsel %vm6121_vm8, %v5585_v32, 0.0 }
 0x79e   :  { %v6628_v23 = vpop.f32.mrf.mxu1 }
 0x79f   :  { %v5509_v38 = vpop.f32.mrf.mxu0 }
 0x7a0   :  { %v6135_v43 = vsel %vm6121_vm8, %v5509_v38, 0.0 }
 0x7a1   :  { %v6617_v7 = vpop.f32.mrf.mxu0  ;;  %v6136_v49 = vadd.f32 %v6135_v43, %v6134_v20 }
 0x7a3   :  { %v6138_v19 = vadd.f32 %v6137_v36, %v6136_v49 }
 0x7a5   :  { %v5737_v60 = vpop.f32.mrf.mxu1 }
 0x7a6   :  { %v6141_v28 = vsel %vm6121_vm8, %v5737_v60, 0.0 }
 0x7a7   :  { %v5661_v41 = vpop.f32.mrf.mxu0  ;;  %v6650_v15 = vpop.f32.mrf.mxu1 }
 0x7a8   :  { %v6139_v30 = vsel %vm6121_vm8, %v5661_v41, 0.0 }
 0x7a9   :  { %v6639_v62 = vpop.f32.mrf.mxu0  ;;  %v6140_v27 = vadd.f32 %v6139_v30, %v6138_v19 }
 0x7ab   :  { %v6142_v61 = vadd.f32 %v6141_v28, %v6140_v27 }
 0x7af   :  { %v5813_v51 = vpop.f32.mrf.mxu0 }
 0x7b0   :  { %v6143_v1 = vsel %vm6121_vm8, %v5813_v51, 0.0 }
 0x7b1   :  { %v6661_v14 = vpop.f32.mrf.mxu0  ;;  %v5889_v11 = vpop.f32.mrf.mxu1  ;;  %v6144_v54 = vadd.f32 %v6143_v1, %v6142_v61 }
 0x7b2   :  { %v6145_v63 = vsel %vm6121_vm8, %v5889_v11, 0.0 }
 0x7b3   :  { %v6672_v44 = vpop.f32.mrf.mxu1  ;;  %v6146_v0 = vadd.f32 %v6145_v63, %v6144_v54 }
 0x7b8   :  { %v5965_v8 = vpop.f32.mrf.mxu0 }
 0x7b9   :  { %v6147_v26 = vsel %vm6121_vm8, %v5965_v8, 0.0 }
 0x7ba   :  { %v6683_v10 = vpop.f32.mrf.mxu0  ;;  %v6148_v2 = vadd.f32 %v6147_v26, %v6146_v0 }
 0x7bc   :  { %v6041_v34 = vpop.f32.mrf.mxu1 }
 0x7bd   :  { %v6149_v35 = vsel %vm6121_vm8, %v6041_v34, 0.0 }
 0x7be   :  { %v6694_v59 = vpop.f32.mrf.mxu1  ;;  %v6150_v56 = vadd.f32 %v6149_v35, %v6148_v2 }
 0x7c1   :  { %v6117_v21 = vpop.f32.mrf.mxu0 }
 0x7c2   :  { %v6151_v55 = vsel %vm6121_vm8, %v6117_v21, 0.0 }
 0x7c3   :  { %v6152_v52 = vadd.f32 %v6151_v55, %v6150_v56  ;;  %v6705_v29 = vpop.f32.mrf.mxu0 }
 0x7c5   :  { %v6160_v25 = vadd.f32 %v6427_v24, %v6152_v52 }
 0x7c7   :  { %v6161_v33 = vmax.f32 %v6160_v25, 0.0 }
 0x7c9   :  { %6723 = vmatmul.mubr.msk.f32.vlgmr.msra.gmra.mxu1 %vm9568_vm9, %v6161_v33 }
 0x889   :  { %v6246_v13 = vpop.f32.mrf.mxu1 }
 0x88a   :  { %v6247_v6 = vadd.f32 %v6428_v3, %v6246_v13 }
 0x88b   :  { %v6724_v42 = vpop.f32.mrf.mxu1 }
 0x88c   :  { %v6250_v17 = vmax.f32 %v6247_v6, 0.0 }
 0x88e   :  { %6742 = vmatmul.mubr.msk.f32.vlgmr.msra.gmra.mxu0 %vm9582_vm10, %v6250_v17 }
 0x94e   :  { %v6335_v16 = vpop.f32.mrf.mxu0 }
 0x94f   :  { %v6336_v18 = vadd.f32 %v6430_v22, %v6335_v16 }
 0x950   :  { %v6743_v39 = vpop.f32.mrf.mxu0 }
 0x951   :  { %6340 = vst.msk [vmem:[%s9421_s14] sm:$0x3] %vm6339_vm0, %v6336_v18 }

</bundles_post_ra>
